<compile_context>
chip_gen: v5e
topology: v5e:2x2
jax: 0.10.0
libtpu: 0.0.40
codegen_flags: <defaults>
</compile_context>

<pallas_src>
import functools

import jax
import jax.numpy as jnp
from jax.experimental import pallas as pl
from jax.experimental.pallas import tpu as pltpu

_LN_EPS = 1e-5                 # torch nn.LayerNorm default eps
_MXU_DTYPE = jnp.bfloat16      # MXU operand dtype (accumulation stays f32)


def _layernorm(x, w, b):
    """LayerNorm over the last axis; statistics and affine kept in f32."""
    mu = jnp.mean(x, axis=-1, keepdims=True)
    xc = x - mu
    var = jnp.mean(xc * xc, axis=-1, keepdims=True)
    return xc * jax.lax.rsqrt(var + _LN_EPS) * w + b


def _gelu(x):
    # TODO(synk): torch nn.GELU() default is erf-exact; tanh approximation used
    # because lax.erf lowering is not guaranteed under Mosaic.
    c = 0.7978845608028654  # sqrt(2/pi)
    return 0.5 * x * (1.0 + jnp.tanh(c * (x + 0.044715 * x * x * x)))


def _bcast_spec(shape):
    """Full-array block with a constant block index (re-used every grid step)."""
    zeros = (0,) * len(shape)
    # TODO(synk): pipeline_mode=pl.Buffered(1) would drop the redundant second
    # buffer for these constant-index weight blocks (v7x VMEM advice), but
    # single-buffer pipeline_mode support is not guaranteed to lower; total
    # weights here are <100 KB so double-buffering is harmless.
    return pl.BlockSpec(shape, lambda *_: zeros)


def _pick_group_block(bt, n, m):
    """Largest (b,t)-group block that divides bt, keeps >=2 grid steps (v7x's
    two TensorCores) and keeps per-step rows bounded."""
    if bt <= 1:
        return 1
    rows_target = 512
    best = 1
    for cand in range(1, bt // 2 + 1):
        if bt % cand == 0 and cand * max(n, m) <= rows_target:
            best = cand
    return best


# ------------------------- fused resampler kernel ---------------------------
# One grid step processes TB (b, t) groups through all layers + final LN.
# att_mask path (None in this setup) is not implemented; ipdb.set_trace() in the
# reference is a debugger artifact and is skipped.
def _resampler_kernel(x_ref, latp_ref,
                      nmw_ref, nmb_ref, nlw_ref, nlb_ref,
                      wq_ref, wk_ref, wv_ref, wo_ref,
                      flnw_ref, flnb_ref, fw1_ref, fw2_ref,
                      gnw_ref, gnb_ref,
                      out_ref,
                      *, depth, heads, dim_head, tb, n, m, d):
    kk = n + m
    bf16 = _MXU_DTYPE

    x = x_ref[...].astype(jnp.float32)                                   # (tb, n, d)
    lat = jnp.broadcast_to(latp_ref[...].astype(jnp.float32)[None], (tb, m, d))

    for l in range(depth):                       # static unroll; weights resident in VMEM
        # ---- PerceiverAttention ----
        xn = _layernorm(x, nmw_ref[l], nmb_ref[l])                        # norm_media   (tb, n, d)
        ln = _layernorm(lat, nlw_ref[l], nlb_ref[l])                      # norm_latents (tb, m, d)
        kv_in = jnp.concatenate([xn, ln], axis=1)                         # (tb, n+m, d)

        # flatten (tb, rows, d) -> (tb*rows, d): leading-dim merge, layout-free
        ln2 = ln.reshape(tb * m, d).astype(bf16)
        kv2 = kv_in.reshape(tb * kk, d).astype(bf16)

        attn_out = jnp.zeros((tb * m, d), jnp.float32)
        for h in range(heads):   # static unroll; per-head pre-split weights => no lane slice/concat
            qh = jnp.dot(ln2, wq_ref[l, h], preferred_element_type=jnp.float32)  # scale folded in wq
            kh = jnp.dot(kv2, wk_ref[l, h], preferred_element_type=jnp.float32)
            vh = jnp.dot(kv2, wv_ref[l, h], preferred_element_type=jnp.float32)
            qh = qh.reshape(tb, m, dim_head).astype(bf16)
            kh = kh.reshape(tb, kk, dim_head).astype(bf16)
            vh = vh.reshape(tb, kk, dim_head).astype(bf16)

            sim = jnp.einsum('bqe,bke->bqk', qh, kh,
                             preferred_element_type=jnp.float32)          # (tb, m, n+m)
            sim = sim - jnp.max(sim, axis=-1, keepdims=True)
            p = jnp.exp(sim)
            probs = p * pl.reciprocal(jnp.sum(p, axis=-1, keepdims=True), approx=True)

            oh = jnp.einsum('bqk,bke->bqe', probs.astype(bf16), vh,
                            preferred_element_type=jnp.float32)           # (tb, m, dh)
            # per-head out projection accumulated == concat(heads) @ W_out
            attn_out = attn_out + jnp.dot(oh.reshape(tb * m, dim_head).astype(bf16),
                                          wo_ref[l, h],
                                          preferred_element_type=jnp.float32)

        lat = lat + attn_out.reshape(tb, m, d)    # residual (resampler: latents = attn(...) + latents)

        # ---- FeedForward: LN -> Linear(4d) -> GELU -> Linear(d), + residual ----
        hf = _layernorm(lat, flnw_ref[l], flnb_ref[l]).reshape(tb * m, d).astype(bf16)
        hf = jnp.dot(hf, fw1_ref[l], preferred_element_type=jnp.float32)
        hf = _gelu(hf).astype(bf16)
        hf = jnp.dot(hf, fw2_ref[l], preferred_element_type=jnp.float32)
        lat = lat + hf.reshape(tb, m, d)

    # ---- final LayerNorm ----
    out = _layernorm(lat, gnw_ref[...], gnb_ref[...])
    # TODO(synk): lane-densifying the store to (tb, m*d) needs a minor-dims
    # reshape whose Mosaic lowering is not guaranteed at d=32; kept as
    # (tb, m, d) stores (2 KB/step, negligible here).
    out_ref[...] = out.astype(out_ref.dtype)


# ----------------------- wrapper / weight preparation -----------------------
def _prepare_weights(params, *, heads, dim_head):
    """Stacked per-layer weights -> kernel layout: per-head split, scale folded
    into wq, matmul weights cast to bf16 (LN params stay f32)."""
    wq_s = params["wq"]                       # (depth, d, inner)
    depth, d, inner = wq_s.shape
    scale = dim_head ** -0.5

    def split_heads(w):                       # (depth, d, inner) -> (depth, H, d, dh)
        return w.reshape(depth, d, heads, dim_head).transpose(0, 2, 1, 3)

    wq = split_heads(wq_s * scale).astype(_MXU_DTYPE)
    wk = split_heads(params["wkv"][:, :, :inner]).astype(_MXU_DTYPE)
    wv = split_heads(params["wkv"][:, :, inner:]).astype(_MXU_DTYPE)
    wo = params["wo"].reshape(depth, heads, dim_head, d).astype(_MXU_DTYPE)

    return (params["nm_w"], params["nm_b"], params["nl_w"], params["nl_b"],
            wq, wk, wv, wo,
            params["ff_ln_w"], params["ff_ln_b"],
            params["ff_w1"].astype(_MXU_DTYPE), params["ff_w2"].astype(_MXU_DTYPE),
            params["norm_w"], params["norm_b"])


def perceiver_resampler(x, params, *, heads, dim_head):
    if x.ndim == 3:                                   # 'b n d -> b 1 n d'
        x = x[:, None]
    b, t, n, d = x.shape
    x = x + params["media_pos_emb"][:t]               # (t, 1, d) broadcast add (glue)

    latents_p = params["latents"]                     # (m, d)
    m = latents_p.shape[0]
    depth = params["wq"].shape[0]
    bt = b * t
    tb = _pick_group_block(bt, n, m)

    weights = _prepare_weights(params, heads=heads, dim_head=dim_head)
    kernel = functools.partial(_resampler_kernel, depth=depth, heads=heads,
                               dim_head=dim_head, tb=tb, n=n, m=m, d=d)

    out = pl.pallas_call(
        kernel,
        out_shape=jax.ShapeDtypeStruct((bt, m, d), latents_p.dtype),
        grid=(bt // tb,),
        in_specs=[pl.BlockSpec((tb, n, d), lambda i: (i, 0, 0)),   # x groups
                  _bcast_spec(latents_p.shape)]                    # learned latents
                 + [_bcast_spec(w.shape) for w in weights],        # resident weights
        out_specs=pl.BlockSpec((tb, m, d), lambda i: (i, 0, 0)),
        compiler_params=pltpu.CompilerParams(
            dimension_semantics=("parallel",),
            vmem_limit_bytes=32 * 1024 * 1024),
    )(x.reshape(bt, n, d), latents_p, *weights)

    return out.reshape(b, t, m, d)


# ------------------------------- parameters ---------------------------------
def init_params(key, *, dim, depth, dim_head, heads, num_latents,
                num_time_embeds, ff_mult):
    inner = dim_head * heads
    ff_inner = int(dim * ff_mult)
    keys = jax.random.split(key, 2 + depth)

    wq, wkv, wo, fw1, fw2 = [], [], [], [], []
    for i in range(depth):
        k = jax.random.split(keys[2 + i], 5)
        wq.append(jax.random.normal(k[0], (dim, inner), jnp.float32) * dim ** -0.5)
        wkv.append(jax.random.normal(k[1], (dim, 2 * inner), jnp.float32) * dim ** -0.5)
        wo.append(jax.random.normal(k[2], (inner, dim), jnp.float32) * inner ** -0.5)
        fw1.append(jax.random.normal(k[3], (dim, ff_inner), jnp.float32) * dim ** -0.5)
        fw2.append(jax.random.normal(k[4], (ff_inner, dim), jnp.float32) * ff_inner ** -0.5)

    ones = jnp.ones((depth, 1, dim), jnp.float32)
    zeros = jnp.zeros((depth, 1, dim), jnp.float32)
    return {
        "latents": jax.random.normal(keys[0], (num_latents, dim), jnp.float32),
        "media_pos_emb": jax.random.normal(keys[1], (num_time_embeds, 1, dim),
                                           jnp.float32),
        "norm_w": jnp.ones((1, dim), jnp.float32),
        "norm_b": jnp.zeros((1, dim), jnp.float32),
        "nm_w": ones, "nm_b": zeros,          # norm_media
        "nl_w": ones, "nl_b": zeros,          # norm_latents
        "ff_ln_w": ones, "ff_ln_b": zeros,    # FFN LayerNorm
        "wq": jnp.stack(wq), "wkv": jnp.stack(wkv), "wo": jnp.stack(wo),
        "ff_w1": jnp.stack(fw1), "ff_w2": jnp.stack(fw2),
    }


if __name__ == "__main__":
    DIM, DEPTH, DIM_HEAD, HEADS = 32, 2, 8, 4
    NUM_LATENTS, NUM_TIME, FF_MULT = 8, 4, 4
    B, T, N = 2, 2, 8

    key = jax.random.PRNGKey(0)
    kx, kp = jax.random.split(key)
    x = jax.random.normal(kx, (B, T, N, DIM), jnp.float32)
    params = init_params(kp, dim=DIM, depth=DEPTH, dim_head=DIM_HEAD,
                         heads=HEADS, num_latents=NUM_LATENTS,
                         num_time_embeds=NUM_TIME, ff_mult=FF_MULT)

    fwd = jax.jit(functools.partial(perceiver_resampler,
                                    heads=HEADS, dim_head=DIM_HEAD))
    out = fwd(x, params)
    jax.block_until_ready(out)
    assert out.shape == (B, T, NUM_LATENTS, DIM)
    assert bool(jnp.all(jnp.isfinite(out)))
    print("KERNEL_OK")
</pallas_src>

<mosaic_0001>
module attributes {stable_mosaic.version = 11 : i64} {
  func.func @_resampler_kernel(%arg0: i32, %arg1: memref<2x8x32xf32, #tpu.memory_space<vmem>>, %arg2: memref<8x32xf32, #tpu.memory_space<vmem>>, %arg3: memref<2x1x32xf32, #tpu.memory_space<vmem>>, %arg4: memref<2x1x32xf32, #tpu.memory_space<vmem>>, %arg5: memref<2x1x32xf32, #tpu.memory_space<vmem>>, %arg6: memref<2x1x32xf32, #tpu.memory_space<vmem>>, %arg7: memref<2x4x32x8xbf16, #tpu.memory_space<vmem>>, %arg8: memref<2x4x32x8xbf16, #tpu.memory_space<vmem>>, %arg9: memref<2x4x32x8xbf16, #tpu.memory_space<vmem>>, %arg10: memref<2x4x8x32xbf16, #tpu.memory_space<vmem>>, %arg11: memref<2x1x32xf32, #tpu.memory_space<vmem>>, %arg12: memref<2x1x32xf32, #tpu.memory_space<vmem>>, %arg13: memref<2x32x128xbf16, #tpu.memory_space<vmem>>, %arg14: memref<2x128x32xbf16, #tpu.memory_space<vmem>>, %arg15: memref<1x32xf32, #tpu.memory_space<vmem>>, %arg16: memref<1x32xf32, #tpu.memory_space<vmem>>, %arg17: memref<2x8x32xf32, #tpu.memory_space<vmem>>) attributes {dimension_semantics = [#tpu.dimension_semantics<parallel>], iteration_bounds = array<i64: 2>, scalar_prefetch = 0 : i64, scratch_operands = 0 : i64, tpu.core_type = #tpu.core_type<tc>, window_params = [{transform_indices = @transform_0, window_bounds = array<i64: 2, 8, 32>}, {pipeline_mode = #tpu.pipeline_mode<synchronous>, transform_indices = @transform_1, window_bounds = array<i64: 8, 32>}, {pipeline_mode = #tpu.pipeline_mode<synchronous>, transform_indices = @transform_2, window_bounds = array<i64: 2, 1, 32>}, {pipeline_mode = #tpu.pipeline_mode<synchronous>, transform_indices = @transform_3, window_bounds = array<i64: 2, 1, 32>}, {pipeline_mode = #tpu.pipeline_mode<synchronous>, transform_indices = @transform_4, window_bounds = array<i64: 2, 1, 32>}, {pipeline_mode = #tpu.pipeline_mode<synchronous>, transform_indices = @transform_5, window_bounds = array<i64: 2, 1, 32>}, {pipeline_mode = #tpu.pipeline_mode<synchronous>, transform_indices = @transform_6, window_bounds = array<i64: 2, 4, 32, 8>}, {pipeline_mode = #tpu.pipeline_mode<synchronous>, transform_indices = @transform_7, window_bounds = array<i64: 2, 4, 32, 8>}, {pipeline_mode = #tpu.pipeline_mode<synchronous>, transform_indices = @transform_8, window_bounds = array<i64: 2, 4, 32, 8>}, {pipeline_mode = #tpu.pipeline_mode<synchronous>, transform_indices = @transform_9, window_bounds = array<i64: 2, 4, 8, 32>}, {pipeline_mode = #tpu.pipeline_mode<synchronous>, transform_indices = @transform_10, window_bounds = array<i64: 2, 1, 32>}, {pipeline_mode = #tpu.pipeline_mode<synchronous>, transform_indices = @transform_11, window_bounds = array<i64: 2, 1, 32>}, {pipeline_mode = #tpu.pipeline_mode<synchronous>, transform_indices = @transform_12, window_bounds = array<i64: 2, 32, 128>}, {pipeline_mode = #tpu.pipeline_mode<synchronous>, transform_indices = @transform_13, window_bounds = array<i64: 2, 128, 32>}, {pipeline_mode = #tpu.pipeline_mode<synchronous>, transform_indices = @transform_14, window_bounds = array<i64: 1, 32>}, {pipeline_mode = #tpu.pipeline_mode<synchronous>, transform_indices = @transform_15, window_bounds = array<i64: 1, 32>}, {transform_indices = @transform_16, window_bounds = array<i64: 2, 8, 32>}]} {
    %c0 = arith.constant 0 : index
    %c0_0 = arith.constant 0 : index
    %c0_1 = arith.constant 0 : index
    %0 = vector.load %arg1[%c0, %c0_0, %c0_1] : memref<2x8x32xf32, #tpu.memory_space<vmem>>, vector<2x8x32xf32>
    %c0_2 = arith.constant 0 : index
    %c0_3 = arith.constant 0 : index
    %1 = vector.load %arg2[%c0_2, %c0_3] : memref<8x32xf32, #tpu.memory_space<vmem>>, vector<8x32xf32>
    %2 = vector.shape_cast %1 : vector<8x32xf32> to vector<1x8x32xf32>
    %3 = vector.shape_cast %2 : vector<1x8x32xf32> to vector<1x8x32xf32>
    %4 = vector.broadcast %3 : vector<1x8x32xf32> to vector<2x8x32xf32>
    %c0_4 = arith.constant 0 : index
    %c0_5 = arith.constant 0 : index
    %c0_6 = arith.constant 0 : index
    %5 = vector.load %arg3[%c0_4, %c0_5, %c0_6] : memref<2x1x32xf32, #tpu.memory_space<vmem>>, vector<1x1x32xf32>
    %6 = vector.shape_cast %5 : vector<1x1x32xf32> to vector<1x32xf32>
    %c0_7 = arith.constant 0 : index
    %c0_8 = arith.constant 0 : index
    %c0_9 = arith.constant 0 : index
    %7 = vector.load %arg4[%c0_7, %c0_8, %c0_9] : memref<2x1x32xf32, #tpu.memory_space<vmem>>, vector<1x1x32xf32>
    %8 = vector.shape_cast %7 : vector<1x1x32xf32> to vector<1x32xf32>
    %cst = arith.constant dense<0.000000e+00> : vector<2x8xf32>
    %9 = vector.multi_reduction <add>, %0, %cst [2] : vector<2x8x32xf32> to vector<2x8xf32>
    %10 = vector.shape_cast %9 : vector<2x8xf32> to vector<2x8x1xf32>
    %cst_10 = arith.constant 3.200000e+01 : f32
    %11 = vector.broadcast %cst_10 : f32 to vector<2x8x1xf32>
    %12 = arith.divf %10, %11 : vector<2x8x1xf32>
    %13 = vector.broadcast %12 : vector<2x8x1xf32> to vector<2x8x32xf32>
    %14 = arith.subf %0, %13 : vector<2x8x32xf32>
    %15 = arith.mulf %14, %14 : vector<2x8x32xf32>
    %cst_11 = arith.constant dense<0.000000e+00> : vector<2x8xf32>
    %16 = vector.multi_reduction <add>, %15, %cst_11 [2] : vector<2x8x32xf32> to vector<2x8xf32>
    %17 = vector.shape_cast %16 : vector<2x8xf32> to vector<2x8x1xf32>
    %cst_12 = arith.constant 3.200000e+01 : f32
    %18 = vector.broadcast %cst_12 : f32 to vector<2x8x1xf32>
    %19 = arith.divf %17, %18 : vector<2x8x1xf32>
    %cst_13 = arith.constant 9.99999974E-6 : f32
    %20 = vector.broadcast %cst_13 : f32 to vector<2x8x1xf32>
    %21 = arith.addf %19, %20 : vector<2x8x1xf32>
    %22 = math.rsqrt %21 : vector<2x8x1xf32>
    %23 = vector.broadcast %22 : vector<2x8x1xf32> to vector<2x8x32xf32>
    %24 = arith.mulf %14, %23 : vector<2x8x32xf32>
    %25 = vector.shape_cast %6 : vector<1x32xf32> to vector<1x1x32xf32>
    %26 = vector.broadcast %25 : vector<1x1x32xf32> to vector<2x8x32xf32>
    %27 = arith.mulf %24, %26 : vector<2x8x32xf32>
    %28 = vector.shape_cast %8 : vector<1x32xf32> to vector<1x1x32xf32>
    %29 = vector.broadcast %28 : vector<1x1x32xf32> to vector<2x8x32xf32>
    %30 = arith.addf %27, %29 : vector<2x8x32xf32>
    %c0_14 = arith.constant 0 : index
    %c0_15 = arith.constant 0 : index
    %c0_16 = arith.constant 0 : index
    %31 = vector.load %arg5[%c0_14, %c0_15, %c0_16] : memref<2x1x32xf32, #tpu.memory_space<vmem>>, vector<1x1x32xf32>
    %32 = vector.shape_cast %31 : vector<1x1x32xf32> to vector<1x32xf32>
    %c0_17 = arith.constant 0 : index
    %c0_18 = arith.constant 0 : index
    %c0_19 = arith.constant 0 : index
    %33 = vector.load %arg6[%c0_17, %c0_18, %c0_19] : memref<2x1x32xf32, #tpu.memory_space<vmem>>, vector<1x1x32xf32>
    %34 = vector.shape_cast %33 : vector<1x1x32xf32> to vector<1x32xf32>
    %cst_20 = arith.constant dense<0.000000e+00> : vector<2x8xf32>
    %35 = vector.multi_reduction <add>, %4, %cst_20 [2] : vector<2x8x32xf32> to vector<2x8xf32>
    %36 = vector.shape_cast %35 : vector<2x8xf32> to vector<2x8x1xf32>
    %cst_21 = arith.constant 3.200000e+01 : f32
    %37 = vector.broadcast %cst_21 : f32 to vector<2x8x1xf32>
    %38 = arith.divf %36, %37 : vector<2x8x1xf32>
    %39 = vector.broadcast %38 : vector<2x8x1xf32> to vector<2x8x32xf32>
    %40 = arith.subf %4, %39 : vector<2x8x32xf32>
    %41 = arith.mulf %40, %40 : vector<2x8x32xf32>
    %cst_22 = arith.constant dense<0.000000e+00> : vector<2x8xf32>
    %42 = vector.multi_reduction <add>, %41, %cst_22 [2] : vector<2x8x32xf32> to vector<2x8xf32>
    %43 = vector.shape_cast %42 : vector<2x8xf32> to vector<2x8x1xf32>
    %cst_23 = arith.constant 3.200000e+01 : f32
    %44 = vector.broadcast %cst_23 : f32 to vector<2x8x1xf32>
    %45 = arith.divf %43, %44 : vector<2x8x1xf32>
    %cst_24 = arith.constant 9.99999974E-6 : f32
    %46 = vector.broadcast %cst_24 : f32 to vector<2x8x1xf32>
    %47 = arith.addf %45, %46 : vector<2x8x1xf32>
    %48 = math.rsqrt %47 : vector<2x8x1xf32>
    %49 = vector.broadcast %48 : vector<2x8x1xf32> to vector<2x8x32xf32>
    %50 = arith.mulf %40, %49 : vector<2x8x32xf32>
    %51 = vector.shape_cast %32 : vector<1x32xf32> to vector<1x1x32xf32>
    %52 = vector.broadcast %51 : vector<1x1x32xf32> to vector<2x8x32xf32>
    %53 = arith.mulf %50, %52 : vector<2x8x32xf32>
    %54 = vector.shape_cast %34 : vector<1x32xf32> to vector<1x1x32xf32>
    %55 = vector.broadcast %54 : vector<1x1x32xf32> to vector<2x8x32xf32>
    %56 = arith.addf %53, %55 : vector<2x8x32xf32>
    %57 = tpu.concatenate %30, %56 in 1 : vector<2x8x32xf32>, vector<2x8x32xf32> -> vector<2x16x32xf32>
    %58 = vector.shape_cast %56 : vector<2x8x32xf32> to vector<16x32xf32>
    %59 = arith.truncf %58 : vector<16x32xf32> to vector<16x32xbf16>
    %60 = vector.shape_cast %57 : vector<2x16x32xf32> to vector<32x32xf32>
    %61 = arith.truncf %60 : vector<32x32xf32> to vector<32x32xbf16>
    %cst_25 = arith.constant 0.000000e+00 : f32
    %62 = vector.broadcast %cst_25 : f32 to vector<16x32xf32>
    %c0_26 = arith.constant 0 : index
    %c0_27 = arith.constant 0 : index
    %c0_28 = arith.constant 0 : index
    %c0_29 = arith.constant 0 : index
    %63 = vector.load %arg7[%c0_26, %c0_27, %c0_28, %c0_29] : memref<2x4x32x8xbf16, #tpu.memory_space<vmem>>, vector<1x1x32x8xbf16>
    %64 = vector.shape_cast %63 : vector<1x1x32x8xbf16> to vector<32x8xbf16>
    %cst_30 = arith.constant dense<0.000000e+00> : vector<16x8xf32>
    %65 = tpu.matmul %59, %64, %cst_30 {dimension_numbers = #tpu.dot_dimension_numbers<[1], [0], [0], [1], [0, 0, 1, 1], [], []>} : vector<16x32xbf16>, vector<32x8xbf16>, vector<16x8xf32> -> vector<16x8xf32>
    %c0_31 = arith.constant 0 : index
    %c0_32 = arith.constant 0 : index
    %c0_33 = arith.constant 0 : index
    %c0_34 = arith.constant 0 : index
    %66 = vector.load %arg8[%c0_31, %c0_32, %c0_33, %c0_34] : memref<2x4x32x8xbf16, #tpu.memory_space<vmem>>, vector<1x1x32x8xbf16>
    %67 = vector.shape_cast %66 : vector<1x1x32x8xbf16> to vector<32x8xbf16>
    %cst_35 = arith.constant dense<0.000000e+00> : vector<32x8xf32>
    %68 = tpu.matmul %61, %67, %cst_35 {dimension_numbers = #tpu.dot_dimension_numbers<[1], [0], [0], [1], [0, 0, 1, 1], [], []>} : vector<32x32xbf16>, vector<32x8xbf16>, vector<32x8xf32> -> vector<32x8xf32>
    %c0_36 = arith.constant 0 : index
    %c0_37 = arith.constant 0 : index
    %c0_38 = arith.constant 0 : index
    %c0_39 = arith.constant 0 : index
    %69 = vector.load %arg9[%c0_36, %c0_37, %c0_38, %c0_39] : memref<2x4x32x8xbf16, #tpu.memory_space<vmem>>, vector<1x1x32x8xbf16>
    %70 = vector.shape_cast %69 : vector<1x1x32x8xbf16> to vector<32x8xbf16>
    %cst_40 = arith.constant dense<0.000000e+00> : vector<32x8xf32>
    %71 = tpu.matmul %61, %70, %cst_40 {dimension_numbers = #tpu.dot_dimension_numbers<[1], [0], [0], [1], [0, 0, 1, 1], [], []>} : vector<32x32xbf16>, vector<32x8xbf16>, vector<32x8xf32> -> vector<32x8xf32>
    %72 = vector.shape_cast %65 : vector<16x8xf32> to vector<2x8x8xf32>
    %73 = arith.truncf %72 : vector<2x8x8xf32> to vector<2x8x8xbf16>
    %74 = vector.shape_cast %68 : vector<32x8xf32> to vector<2x16x8xf32>
    %75 = arith.truncf %74 : vector<2x16x8xf32> to vector<2x16x8xbf16>
    %76 = vector.shape_cast %71 : vector<32x8xf32> to vector<2x16x8xf32>
    %77 = arith.truncf %76 : vector<2x16x8xf32> to vector<2x16x8xbf16>
    "tpu.trace_start"() <{level = 10 : i32, message = "bqe,bke->bqk"}> : () -> ()
    %cst_41 = arith.constant dense<0.000000e+00> : vector<2x8x16xf32>
    %78 = tpu.matmul %73, %75, %cst_41 {dimension_numbers = #tpu.dot_dimension_numbers<[2], [2], [1], [1], [0, 0, 0, 1, 1, 1], [0], [0]>} : vector<2x8x8xbf16>, vector<2x16x8xbf16>, vector<2x8x16xf32> -> vector<2x8x16xf32>
    "tpu.trace_stop"() : () -> ()
    %cst_42 = arith.constant dense<0xFF800000> : vector<2x8xf32>
    %79 = vector.multi_reduction <maximumf>, %78, %cst_42 [2] : vector<2x8x16xf32> to vector<2x8xf32>
    %80 = vector.shape_cast %79 : vector<2x8xf32> to vector<2x8x1xf32>
    %81 = vector.broadcast %80 : vector<2x8x1xf32> to vector<2x8x16xf32>
    %82 = arith.subf %78, %81 : vector<2x8x16xf32>
    %83 = math.exp %82 : vector<2x8x16xf32>
    %cst_43 = arith.constant dense<0.000000e+00> : vector<2x8xf32>
    %84 = vector.multi_reduction <add>, %83, %cst_43 [2] : vector<2x8x16xf32> to vector<2x8xf32>
    %85 = vector.shape_cast %84 : vector<2x8xf32> to vector<2x8x1xf32>
    %86 = tpu.reciprocal %85 {approx = true} : vector<2x8x1xf32> -> vector<2x8x1xf32>
    %87 = vector.broadcast %86 : vector<2x8x1xf32> to vector<2x8x16xf32>
    %88 = arith.mulf %83, %87 : vector<2x8x16xf32>
    %89 = arith.truncf %88 : vector<2x8x16xf32> to vector<2x8x16xbf16>
    "tpu.trace_start"() <{level = 10 : i32, message = "bqk,bke->bqe"}> : () -> ()
    %cst_44 = arith.constant dense<0.000000e+00> : vector<2x8x8xf32>
    %90 = tpu.matmul %89, %77, %cst_44 {dimension_numbers = #tpu.dot_dimension_numbers<[2], [1], [1], [2], [0, 0, 0, 1, 1, 2], [0], [0]>} : vector<2x8x16xbf16>, vector<2x16x8xbf16>, vector<2x8x8xf32> -> vector<2x8x8xf32>
    "tpu.trace_stop"() : () -> ()
    %91 = vector.shape_cast %90 : vector<2x8x8xf32> to vector<16x8xf32>
    %92 = arith.truncf %91 : vector<16x8xf32> to vector<16x8xbf16>
    %c0_45 = arith.constant 0 : index
    %c0_46 = arith.constant 0 : index
    %c0_47 = arith.constant 0 : index
    %c0_48 = arith.constant 0 : index
    %93 = vector.load %arg10[%c0_45, %c0_46, %c0_47, %c0_48] : memref<2x4x8x32xbf16, #tpu.memory_space<vmem>>, vector<1x1x8x32xbf16>
    %94 = vector.shape_cast %93 : vector<1x1x8x32xbf16> to vector<8x32xbf16>
    %cst_49 = arith.constant dense<0.000000e+00> : vector<16x32xf32>
    %95 = tpu.matmul %92, %94, %cst_49 {dimension_numbers = #tpu.dot_dimension_numbers<[1], [0], [0], [1], [0, 0, 1, 1], [], []>} : vector<16x8xbf16>, vector<8x32xbf16>, vector<16x32xf32> -> vector<16x32xf32>
    %96 = arith.addf %62, %95 : vector<16x32xf32>
    %c0_50 = arith.constant 0 : index
    %c1 = arith.constant 1 : index
    %c0_51 = arith.constant 0 : index
    %c0_52 = arith.constant 0 : index
    %97 = vector.load %arg7[%c0_50, %c1, %c0_51, %c0_52] : memref<2x4x32x8xbf16, #tpu.memory_space<vmem>>, vector<1x1x32x8xbf16>
    %98 = vector.shape_cast %97 : vector<1x1x32x8xbf16> to vector<32x8xbf16>
    %cst_53 = arith.constant dense<0.000000e+00> : vector<16x8xf32>
    %99 = tpu.matmul %59, %98, %cst_53 {dimension_numbers = #tpu.dot_dimension_numbers<[1], [0], [0], [1], [0, 0, 1, 1], [], []>} : vector<16x32xbf16>, vector<32x8xbf16>, vector<16x8xf32> -> vector<16x8xf32>
    %c0_54 = arith.constant 0 : index
    %c1_55 = arith.constant 1 : index
    %c0_56 = arith.constant 0 : index
    %c0_57 = arith.constant 0 : index
    %100 = vector.load %arg8[%c0_54, %c1_55, %c0_56, %c0_57] : memref<2x4x32x8xbf16, #tpu.memory_space<vmem>>, vector<1x1x32x8xbf16>
    %101 = vector.shape_cast %100 : vector<1x1x32x8xbf16> to vector<32x8xbf16>
    %cst_58 = arith.constant dense<0.000000e+00> : vector<32x8xf32>
    %102 = tpu.matmul %61, %101, %cst_58 {dimension_numbers = #tpu.dot_dimension_numbers<[1], [0], [0], [1], [0, 0, 1, 1], [], []>} : vector<32x32xbf16>, vector<32x8xbf16>, vector<32x8xf32> -> vector<32x8xf32>
    %c0_59 = arith.constant 0 : index
    %c1_60 = arith.constant 1 : index
    %c0_61 = arith.constant 0 : index
    %c0_62 = arith.constant 0 : index
    %103 = vector.load %arg9[%c0_59, %c1_60, %c0_61, %c0_62] : memref<2x4x32x8xbf16, #tpu.memory_space<vmem>>, vector<1x1x32x8xbf16>
    %104 = vector.shape_cast %103 : vector<1x1x32x8xbf16> to vector<32x8xbf16>
    %cst_63 = arith.constant dense<0.000000e+00> : vector<32x8xf32>
    %105 = tpu.matmul %61, %104, %cst_63 {dimension_numbers = #tpu.dot_dimension_numbers<[1], [0], [0], [1], [0, 0, 1, 1], [], []>} : vector<32x32xbf16>, vector<32x8xbf16>, vector<32x8xf32> -> vector<32x8xf32>
    %106 = vector.shape_cast %99 : vector<16x8xf32> to vector<2x8x8xf32>
    %107 = arith.truncf %106 : vector<2x8x8xf32> to vector<2x8x8xbf16>
    %108 = vector.shape_cast %102 : vector<32x8xf32> to vector<2x16x8xf32>
    %109 = arith.truncf %108 : vector<2x16x8xf32> to vector<2x16x8xbf16>
    %110 = vector.shape_cast %105 : vector<32x8xf32> to vector<2x16x8xf32>
    %111 = arith.truncf %110 : vector<2x16x8xf32> to vector<2x16x8xbf16>
    "tpu.trace_start"() <{level = 10 : i32, message = "bqe,bke->bqk"}> : () -> ()
    %cst_64 = arith.constant dense<0.000000e+00> : vector<2x8x16xf32>
    %112 = tpu.matmul %107, %109, %cst_64 {dimension_numbers = #tpu.dot_dimension_numbers<[2], [2], [1], [1], [0, 0, 0, 1, 1, 1], [0], [0]>} : vector<2x8x8xbf16>, vector<2x16x8xbf16>, vector<2x8x16xf32> -> vector<2x8x16xf32>
    "tpu.trace_stop"() : () -> ()
    %cst_65 = arith.constant dense<0xFF800000> : vector<2x8xf32>
    %113 = vector.multi_reduction <maximumf>, %112, %cst_65 [2] : vector<2x8x16xf32> to vector<2x8xf32>
    %114 = vector.shape_cast %113 : vector<2x8xf32> to vector<2x8x1xf32>
    %115 = vector.broadcast %114 : vector<2x8x1xf32> to vector<2x8x16xf32>
    %116 = arith.subf %112, %115 : vector<2x8x16xf32>
    %117 = math.exp %116 : vector<2x8x16xf32>
    %cst_66 = arith.constant dense<0.000000e+00> : vector<2x8xf32>
    %118 = vector.multi_reduction <add>, %117, %cst_66 [2] : vector<2x8x16xf32> to vector<2x8xf32>
    %119 = vector.shape_cast %118 : vector<2x8xf32> to vector<2x8x1xf32>
    %120 = tpu.reciprocal %119 {approx = true} : vector<2x8x1xf32> -> vector<2x8x1xf32>
    %121 = vector.broadcast %120 : vector<2x8x1xf32> to vector<2x8x16xf32>
    %122 = arith.mulf %117, %121 : vector<2x8x16xf32>
    %123 = arith.truncf %122 : vector<2x8x16xf32> to vector<2x8x16xbf16>
    "tpu.trace_start"() <{level = 10 : i32, message = "bqk,bke->bqe"}> : () -> ()
    %cst_67 = arith.constant dense<0.000000e+00> : vector<2x8x8xf32>
    %124 = tpu.matmul %123, %111, %cst_67 {dimension_numbers = #tpu.dot_dimension_numbers<[2], [1], [1], [2], [0, 0, 0, 1, 1, 2], [0], [0]>} : vector<2x8x16xbf16>, vector<2x16x8xbf16>, vector<2x8x8xf32> -> vector<2x8x8xf32>
    "tpu.trace_stop"() : () -> ()
    %125 = vector.shape_cast %124 : vector<2x8x8xf32> to vector<16x8xf32>
    %126 = arith.truncf %125 : vector<16x8xf32> to vector<16x8xbf16>
    %c0_68 = arith.constant 0 : index
    %c1_69 = arith.constant 1 : index
    %c0_70 = arith.constant 0 : index
    %c0_71 = arith.constant 0 : index
    %127 = vector.load %arg10[%c0_68, %c1_69, %c0_70, %c0_71] : memref<2x4x8x32xbf16, #tpu.memory_space<vmem>>, vector<1x1x8x32xbf16>
    %128 = vector.shape_cast %127 : vector<1x1x8x32xbf16> to vector<8x32xbf16>
    %cst_72 = arith.constant dense<0.000000e+00> : vector<16x32xf32>
    %129 = tpu.matmul %126, %128, %cst_72 {dimension_numbers = #tpu.dot_dimension_numbers<[1], [0], [0], [1], [0, 0, 1, 1], [], []>} : vector<16x8xbf16>, vector<8x32xbf16>, vector<16x32xf32> -> vector<16x32xf32>
    %130 = arith.addf %96, %129 : vector<16x32xf32>
    %c0_73 = arith.constant 0 : index
    %c2 = arith.constant 2 : index
    %c0_74 = arith.constant 0 : index
    %c0_75 = arith.constant 0 : index
    %131 = vector.load %arg7[%c0_73, %c2, %c0_74, %c0_75] : memref<2x4x32x8xbf16, #tpu.memory_space<vmem>>, vector<1x1x32x8xbf16>
    %132 = vector.shape_cast %131 : vector<1x1x32x8xbf16> to vector<32x8xbf16>
    %cst_76 = arith.constant dense<0.000000e+00> : vector<16x8xf32>
    %133 = tpu.matmul %59, %132, %cst_76 {dimension_numbers = #tpu.dot_dimension_numbers<[1], [0], [0], [1], [0, 0, 1, 1], [], []>} : vector<16x32xbf16>, vector<32x8xbf16>, vector<16x8xf32> -> vector<16x8xf32>
    %c0_77 = arith.constant 0 : index
    %c2_78 = arith.constant 2 : index
    %c0_79 = arith.constant 0 : index
    %c0_80 = arith.constant 0 : index
    %134 = vector.load %arg8[%c0_77, %c2_78, %c0_79, %c0_80] : memref<2x4x32x8xbf16, #tpu.memory_space<vmem>>, vector<1x1x32x8xbf16>
    %135 = vector.shape_cast %134 : vector<1x1x32x8xbf16> to vector<32x8xbf16>
    %cst_81 = arith.constant dense<0.000000e+00> : vector<32x8xf32>
    %136 = tpu.matmul %61, %135, %cst_81 {dimension_numbers = #tpu.dot_dimension_numbers<[1], [0], [0], [1], [0, 0, 1, 1], [], []>} : vector<32x32xbf16>, vector<32x8xbf16>, vector<32x8xf32> -> vector<32x8xf32>
    %c0_82 = arith.constant 0 : index
    %c2_83 = arith.constant 2 : index
    %c0_84 = arith.constant 0 : index
    %c0_85 = arith.constant 0 : index
    %137 = vector.load %arg9[%c0_82, %c2_83, %c0_84, %c0_85] : memref<2x4x32x8xbf16, #tpu.memory_space<vmem>>, vector<1x1x32x8xbf16>
    %138 = vector.shape_cast %137 : vector<1x1x32x8xbf16> to vector<32x8xbf16>
    %cst_86 = arith.constant dense<0.000000e+00> : vector<32x8xf32>
    %139 = tpu.matmul %61, %138, %cst_86 {dimension_numbers = #tpu.dot_dimension_numbers<[1], [0], [0], [1], [0, 0, 1, 1], [], []>} : vector<32x32xbf16>, vector<32x8xbf16>, vector<32x8xf32> -> vector<32x8xf32>
    %140 = vector.shape_cast %133 : vector<16x8xf32> to vector<2x8x8xf32>
    %141 = arith.truncf %140 : vector<2x8x8xf32> to vector<2x8x8xbf16>
    %142 = vector.shape_cast %136 : vector<32x8xf32> to vector<2x16x8xf32>
    %143 = arith.truncf %142 : vector<2x16x8xf32> to vector<2x16x8xbf16>
    %144 = vector.shape_cast %139 : vector<32x8xf32> to vector<2x16x8xf32>
    %145 = arith.truncf %144 : vector<2x16x8xf32> to vector<2x16x8xbf16>
    "tpu.trace_start"() <{level = 10 : i32, message = "bqe,bke->bqk"}> : () -> ()
    %cst_87 = arith.constant dense<0.000000e+00> : vector<2x8x16xf32>
    %146 = tpu.matmul %141, %143, %cst_87 {dimension_numbers = #tpu.dot_dimension_numbers<[2], [2], [1], [1], [0, 0, 0, 1, 1, 1], [0], [0]>} : vector<2x8x8xbf16>, vector<2x16x8xbf16>, vector<2x8x16xf32> -> vector<2x8x16xf32>
    "tpu.trace_stop"() : () -> ()
    %cst_88 = arith.constant dense<0xFF800000> : vector<2x8xf32>
    %147 = vector.multi_reduction <maximumf>, %146, %cst_88 [2] : vector<2x8x16xf32> to vector<2x8xf32>
    %148 = vector.shape_cast %147 : vector<2x8xf32> to vector<2x8x1xf32>
    %149 = vector.broadcast %148 : vector<2x8x1xf32> to vector<2x8x16xf32>
    %150 = arith.subf %146, %149 : vector<2x8x16xf32>
    %151 = math.exp %150 : vector<2x8x16xf32>
    %cst_89 = arith.constant dense<0.000000e+00> : vector<2x8xf32>
    %152 = vector.multi_reduction <add>, %151, %cst_89 [2] : vector<2x8x16xf32> to vector<2x8xf32>
    %153 = vector.shape_cast %152 : vector<2x8xf32> to vector<2x8x1xf32>
    %154 = tpu.reciprocal %153 {approx = true} : vector<2x8x1xf32> -> vector<2x8x1xf32>
    %155 = vector.broadcast %154 : vector<2x8x1xf32> to vector<2x8x16xf32>
    %156 = arith.mulf %151, %155 : vector<2x8x16xf32>
    %157 = arith.truncf %156 : vector<2x8x16xf32> to vector<2x8x16xbf16>
    "tpu.trace_start"() <{level = 10 : i32, message = "bqk,bke->bqe"}> : () -> ()
    %cst_90 = arith.constant dense<0.000000e+00> : vector<2x8x8xf32>
    %158 = tpu.matmul %157, %145, %cst_90 {dimension_numbers = #tpu.dot_dimension_numbers<[2], [1], [1], [2], [0, 0, 0, 1, 1, 2], [0], [0]>} : vector<2x8x16xbf16>, vector<2x16x8xbf16>, vector<2x8x8xf32> -> vector<2x8x8xf32>
    "tpu.trace_stop"() : () -> ()
    %159 = vector.shape_cast %158 : vector<2x8x8xf32> to vector<16x8xf32>
    %160 = arith.truncf %159 : vector<16x8xf32> to vector<16x8xbf16>
    %c0_91 = arith.constant 0 : index
    %c2_92 = arith.constant 2 : index
    %c0_93 = arith.constant 0 : index
    %c0_94 = arith.constant 0 : index
    %161 = vector.load %arg10[%c0_91, %c2_92, %c0_93, %c0_94] : memref<2x4x8x32xbf16, #tpu.memory_space<vmem>>, vector<1x1x8x32xbf16>
    %162 = vector.shape_cast %161 : vector<1x1x8x32xbf16> to vector<8x32xbf16>
    %cst_95 = arith.constant dense<0.000000e+00> : vector<16x32xf32>
    %163 = tpu.matmul %160, %162, %cst_95 {dimension_numbers = #tpu.dot_dimension_numbers<[1], [0], [0], [1], [0, 0, 1, 1], [], []>} : vector<16x8xbf16>, vector<8x32xbf16>, vector<16x32xf32> -> vector<16x32xf32>
    %164 = arith.addf %130, %163 : vector<16x32xf32>
    %c0_96 = arith.constant 0 : index
    %c3 = arith.constant 3 : index
    %c0_97 = arith.constant 0 : index
    %c0_98 = arith.constant 0 : index
    %165 = vector.load %arg7[%c0_96, %c3, %c0_97, %c0_98] : memref<2x4x32x8xbf16, #tpu.memory_space<vmem>>, vector<1x1x32x8xbf16>
    %166 = vector.shape_cast %165 : vector<1x1x32x8xbf16> to vector<32x8xbf16>
    %cst_99 = arith.constant dense<0.000000e+00> : vector<16x8xf32>
    %167 = tpu.matmul %59, %166, %cst_99 {dimension_numbers = #tpu.dot_dimension_numbers<[1], [0], [0], [1], [0, 0, 1, 1], [], []>} : vector<16x32xbf16>, vector<32x8xbf16>, vector<16x8xf32> -> vector<16x8xf32>
    %c0_100 = arith.constant 0 : index
    %c3_101 = arith.constant 3 : index
    %c0_102 = arith.constant 0 : index
    %c0_103 = arith.constant 0 : index
    %168 = vector.load %arg8[%c0_100, %c3_101, %c0_102, %c0_103] : memref<2x4x32x8xbf16, #tpu.memory_space<vmem>>, vector<1x1x32x8xbf16>
    %169 = vector.shape_cast %168 : vector<1x1x32x8xbf16> to vector<32x8xbf16>
    %cst_104 = arith.constant dense<0.000000e+00> : vector<32x8xf32>
    %170 = tpu.matmul %61, %169, %cst_104 {dimension_numbers = #tpu.dot_dimension_numbers<[1], [0], [0], [1], [0, 0, 1, 1], [], []>} : vector<32x32xbf16>, vector<32x8xbf16>, vector<32x8xf32> -> vector<32x8xf32>
    %c0_105 = arith.constant 0 : index
    %c3_106 = arith.constant 3 : index
    %c0_107 = arith.constant 0 : index
    %c0_108 = arith.constant 0 : index
    %171 = vector.load %arg9[%c0_105, %c3_106, %c0_107, %c0_108] : memref<2x4x32x8xbf16, #tpu.memory_space<vmem>>, vector<1x1x32x8xbf16>
    %172 = vector.shape_cast %171 : vector<1x1x32x8xbf16> to vector<32x8xbf16>
    %cst_109 = arith.constant dense<0.000000e+00> : vector<32x8xf32>
    %173 = tpu.matmul %61, %172, %cst_109 {dimension_numbers = #tpu.dot_dimension_numbers<[1], [0], [0], [1], [0, 0, 1, 1], [], []>} : vector<32x32xbf16>, vector<32x8xbf16>, vector<32x8xf32> -> vector<32x8xf32>
    %174 = vector.shape_cast %167 : vector<16x8xf32> to vector<2x8x8xf32>
    %175 = arith.truncf %174 : vector<2x8x8xf32> to vector<2x8x8xbf16>
    %176 = vector.shape_cast %170 : vector<32x8xf32> to vector<2x16x8xf32>
    %177 = arith.truncf %176 : vector<2x16x8xf32> to vector<2x16x8xbf16>
    %178 = vector.shape_cast %173 : vector<32x8xf32> to vector<2x16x8xf32>
    %179 = arith.truncf %178 : vector<2x16x8xf32> to vector<2x16x8xbf16>
    "tpu.trace_start"() <{level = 10 : i32, message = "bqe,bke->bqk"}> : () -> ()
    %cst_110 = arith.constant dense<0.000000e+00> : vector<2x8x16xf32>
    %180 = tpu.matmul %175, %177, %cst_110 {dimension_numbers = #tpu.dot_dimension_numbers<[2], [2], [1], [1], [0, 0, 0, 1, 1, 1], [0], [0]>} : vector<2x8x8xbf16>, vector<2x16x8xbf16>, vector<2x8x16xf32> -> vector<2x8x16xf32>
    "tpu.trace_stop"() : () -> ()
    %cst_111 = arith.constant dense<0xFF800000> : vector<2x8xf32>
    %181 = vector.multi_reduction <maximumf>, %180, %cst_111 [2] : vector<2x8x16xf32> to vector<2x8xf32>
    %182 = vector.shape_cast %181 : vector<2x8xf32> to vector<2x8x1xf32>
    %183 = vector.broadcast %182 : vector<2x8x1xf32> to vector<2x8x16xf32>
    %184 = arith.subf %180, %183 : vector<2x8x16xf32>
    %185 = math.exp %184 : vector<2x8x16xf32>
    %cst_112 = arith.constant dense<0.000000e+00> : vector<2x8xf32>
    %186 = vector.multi_reduction <add>, %185, %cst_112 [2] : vector<2x8x16xf32> to vector<2x8xf32>
    %187 = vector.shape_cast %186 : vector<2x8xf32> to vector<2x8x1xf32>
    %188 = tpu.reciprocal %187 {approx = true} : vector<2x8x1xf32> -> vector<2x8x1xf32>
    %189 = vector.broadcast %188 : vector<2x8x1xf32> to vector<2x8x16xf32>
    %190 = arith.mulf %185, %189 : vector<2x8x16xf32>
    %191 = arith.truncf %190 : vector<2x8x16xf32> to vector<2x8x16xbf16>
    "tpu.trace_start"() <{level = 10 : i32, message = "bqk,bke->bqe"}> : () -> ()
    %cst_113 = arith.constant dense<0.000000e+00> : vector<2x8x8xf32>
    %192 = tpu.matmul %191, %179, %cst_113 {dimension_numbers = #tpu.dot_dimension_numbers<[2], [1], [1], [2], [0, 0, 0, 1, 1, 2], [0], [0]>} : vector<2x8x16xbf16>, vector<2x16x8xbf16>, vector<2x8x8xf32> -> vector<2x8x8xf32>
    "tpu.trace_stop"() : () -> ()
    %193 = vector.shape_cast %192 : vector<2x8x8xf32> to vector<16x8xf32>
    %194 = arith.truncf %193 : vector<16x8xf32> to vector<16x8xbf16>
    %c0_114 = arith.constant 0 : index
    %c3_115 = arith.constant 3 : index
    %c0_116 = arith.constant 0 : index
    %c0_117 = arith.constant 0 : index
    %195 = vector.load %arg10[%c0_114, %c3_115, %c0_116, %c0_117] : memref<2x4x8x32xbf16, #tpu.memory_space<vmem>>, vector<1x1x8x32xbf16>
    %196 = vector.shape_cast %195 : vector<1x1x8x32xbf16> to vector<8x32xbf16>
    %cst_118 = arith.constant dense<0.000000e+00> : vector<16x32xf32>
    %197 = tpu.matmul %194, %196, %cst_118 {dimension_numbers = #tpu.dot_dimension_numbers<[1], [0], [0], [1], [0, 0, 1, 1], [], []>} : vector<16x8xbf16>, vector<8x32xbf16>, vector<16x32xf32> -> vector<16x32xf32>
    %198 = arith.addf %164, %197 : vector<16x32xf32>
    %199 = vector.shape_cast %198 : vector<16x32xf32> to vector<2x8x32xf32>
    %200 = arith.addf %4, %199 : vector<2x8x32xf32>
    %c0_119 = arith.constant 0 : index
    %c0_120 = arith.constant 0 : index
    %c0_121 = arith.constant 0 : index
    %201 = vector.load %arg11[%c0_119, %c0_120, %c0_121] : memref<2x1x32xf32, #tpu.memory_space<vmem>>, vector<1x1x32xf32>
    %202 = vector.shape_cast %201 : vector<1x1x32xf32> to vector<1x32xf32>
    %c0_122 = arith.constant 0 : index
    %c0_123 = arith.constant 0 : index
    %c0_124 = arith.constant 0 : index
    %203 = vector.load %arg12[%c0_122, %c0_123, %c0_124] : memref<2x1x32xf32, #tpu.memory_space<vmem>>, vector<1x1x32xf32>
    %204 = vector.shape_cast %203 : vector<1x1x32xf32> to vector<1x32xf32>
    %cst_125 = arith.constant dense<0.000000e+00> : vector<2x8xf32>
    %205 = vector.multi_reduction <add>, %200, %cst_125 [2] : vector<2x8x32xf32> to vector<2x8xf32>
    %206 = vector.shape_cast %205 : vector<2x8xf32> to vector<2x8x1xf32>
    %cst_126 = arith.constant 3.200000e+01 : f32
    %207 = vector.broadcast %cst_126 : f32 to vector<2x8x1xf32>
    %208 = arith.divf %206, %207 : vector<2x8x1xf32>
    %209 = vector.broadcast %208 : vector<2x8x1xf32> to vector<2x8x32xf32>
    %210 = arith.subf %200, %209 : vector<2x8x32xf32>
    %211 = arith.mulf %210, %210 : vector<2x8x32xf32>
    %cst_127 = arith.constant dense<0.000000e+00> : vector<2x8xf32>
    %212 = vector.multi_reduction <add>, %211, %cst_127 [2] : vector<2x8x32xf32> to vector<2x8xf32>
    %213 = vector.shape_cast %212 : vector<2x8xf32> to vector<2x8x1xf32>
    %cst_128 = arith.constant 3.200000e+01 : f32
    %214 = vector.broadcast %cst_128 : f32 to vector<2x8x1xf32>
    %215 = arith.divf %213, %214 : vector<2x8x1xf32>
    %cst_129 = arith.constant 9.99999974E-6 : f32
    %216 = vector.broadcast %cst_129 : f32 to vector<2x8x1xf32>
    %217 = arith.addf %215, %216 : vector<2x8x1xf32>
    %218 = math.rsqrt %217 : vector<2x8x1xf32>
    %219 = vector.broadcast %218 : vector<2x8x1xf32> to vector<2x8x32xf32>
    %220 = arith.mulf %210, %219 : vector<2x8x32xf32>
    %221 = vector.shape_cast %202 : vector<1x32xf32> to vector<1x1x32xf32>
    %222 = vector.broadcast %221 : vector<1x1x32xf32> to vector<2x8x32xf32>
    %223 = arith.mulf %220, %222 : vector<2x8x32xf32>
    %224 = vector.shape_cast %204 : vector<1x32xf32> to vector<1x1x32xf32>
    %225 = vector.broadcast %224 : vector<1x1x32xf32> to vector<2x8x32xf32>
    %226 = arith.addf %223, %225 : vector<2x8x32xf32>
    %227 = vector.shape_cast %226 : vector<2x8x32xf32> to vector<16x32xf32>
    %228 = arith.truncf %227 : vector<16x32xf32> to vector<16x32xbf16>
    %c0_130 = arith.constant 0 : index
    %c0_131 = arith.constant 0 : index
    %c0_132 = arith.constant 0 : index
    %229 = vector.load %arg13[%c0_130, %c0_131, %c0_132] : memref<2x32x128xbf16, #tpu.memory_space<vmem>>, vector<1x32x128xbf16>
    %230 = vector.shape_cast %229 : vector<1x32x128xbf16> to vector<32x128xbf16>
    %cst_133 = arith.constant dense<0.000000e+00> : vector<16x128xf32>
    %231 = tpu.matmul %228, %230, %cst_133 {dimension_numbers = #tpu.dot_dimension_numbers<[1], [0], [0], [1], [0, 0, 1, 1], [], []>} : vector<16x32xbf16>, vector<32x128xbf16>, vector<16x128xf32> -> vector<16x128xf32>
    %cst_134 = arith.constant 5.000000e-01 : f32
    %232 = vector.broadcast %cst_134 : f32 to vector<16x128xf32>
    %233 = arith.mulf %232, %231 : vector<16x128xf32>
    %cst_135 = arith.constant 4.471500e-02 : f32
    %234 = vector.broadcast %cst_135 : f32 to vector<16x128xf32>
    %235 = arith.mulf %234, %231 : vector<16x128xf32>
    %236 = arith.mulf %235, %231 : vector<16x128xf32>
    %237 = arith.mulf %236, %231 : vector<16x128xf32>
    %238 = arith.addf %231, %237 : vector<16x128xf32>
    %cst_136 = arith.constant 0.797884583 : f32
    %239 = vector.broadcast %cst_136 : f32 to vector<16x128xf32>
    %240 = arith.mulf %239, %238 : vector<16x128xf32>
    %241 = math.tanh %240 : vector<16x128xf32>
    %cst_137 = arith.constant 1.000000e+00 : f32
    %242 = vector.broadcast %cst_137 : f32 to vector<16x128xf32>
    %243 = arith.addf %242, %241 : vector<16x128xf32>
    %244 = arith.mulf %233, %243 : vector<16x128xf32>
    %245 = arith.truncf %244 : vector<16x128xf32> to vector<16x128xbf16>
    %c0_138 = arith.constant 0 : index
    %c0_139 = arith.constant 0 : index
    %c0_140 = arith.constant 0 : index
    %246 = vector.load %arg14[%c0_138, %c0_139, %c0_140] : memref<2x128x32xbf16, #tpu.memory_space<vmem>>, vector<1x128x32xbf16>
    %247 = vector.shape_cast %246 : vector<1x128x32xbf16> to vector<128x32xbf16>
    %cst_141 = arith.constant dense<0.000000e+00> : vector<16x32xf32>
    %248 = tpu.matmul %245, %247, %cst_141 {dimension_numbers = #tpu.dot_dimension_numbers<[1], [0], [0], [1], [0, 0, 1, 1], [], []>} : vector<16x128xbf16>, vector<128x32xbf16>, vector<16x32xf32> -> vector<16x32xf32>
    %249 = vector.shape_cast %248 : vector<16x32xf32> to vector<2x8x32xf32>
    %250 = arith.addf %200, %249 : vector<2x8x32xf32>
    %c1_142 = arith.constant 1 : index
    %c0_143 = arith.constant 0 : index
    %c0_144 = arith.constant 0 : index
    %251 = vector.load %arg3[%c1_142, %c0_143, %c0_144] : memref<2x1x32xf32, #tpu.memory_space<vmem>>, vector<1x1x32xf32>
    %252 = vector.shape_cast %251 : vector<1x1x32xf32> to vector<1x32xf32>
    %c1_145 = arith.constant 1 : index
    %c0_146 = arith.constant 0 : index
    %c0_147 = arith.constant 0 : index
    %253 = vector.load %arg4[%c1_145, %c0_146, %c0_147] : memref<2x1x32xf32, #tpu.memory_space<vmem>>, vector<1x1x32xf32>
    %254 = vector.shape_cast %253 : vector<1x1x32xf32> to vector<1x32xf32>
    %cst_148 = arith.constant dense<0.000000e+00> : vector<2x8xf32>
    %255 = vector.multi_reduction <add>, %0, %cst_148 [2] : vector<2x8x32xf32> to vector<2x8xf32>
    %256 = vector.shape_cast %255 : vector<2x8xf32> to vector<2x8x1xf32>
    %cst_149 = arith.constant 3.200000e+01 : f32
    %257 = vector.broadcast %cst_149 : f32 to vector<2x8x1xf32>
    %258 = arith.divf %256, %257 : vector<2x8x1xf32>
    %259 = vector.broadcast %258 : vector<2x8x1xf32> to vector<2x8x32xf32>
    %260 = arith.subf %0, %259 : vector<2x8x32xf32>
    %261 = arith.mulf %260, %260 : vector<2x8x32xf32>
    %cst_150 = arith.constant dense<0.000000e+00> : vector<2x8xf32>
    %262 = vector.multi_reduction <add>, %261, %cst_150 [2] : vector<2x8x32xf32> to vector<2x8xf32>
    %263 = vector.shape_cast %262 : vector<2x8xf32> to vector<2x8x1xf32>
    %cst_151 = arith.constant 3.200000e+01 : f32
    %264 = vector.broadcast %cst_151 : f32 to vector<2x8x1xf32>
    %265 = arith.divf %263, %264 : vector<2x8x1xf32>
    %cst_152 = arith.constant 9.99999974E-6 : f32
    %266 = vector.broadcast %cst_152 : f32 to vector<2x8x1xf32>
    %267 = arith.addf %265, %266 : vector<2x8x1xf32>
    %268 = math.rsqrt %267 : vector<2x8x1xf32>
    %269 = vector.broadcast %268 : vector<2x8x1xf32> to vector<2x8x32xf32>
    %270 = arith.mulf %260, %269 : vector<2x8x32xf32>
    %271 = vector.shape_cast %252 : vector<1x32xf32> to vector<1x1x32xf32>
    %272 = vector.broadcast %271 : vector<1x1x32xf32> to vector<2x8x32xf32>
    %273 = arith.mulf %270, %272 : vector<2x8x32xf32>
    %274 = vector.shape_cast %254 : vector<1x32xf32> to vector<1x1x32xf32>
    %275 = vector.broadcast %274 : vector<1x1x32xf32> to vector<2x8x32xf32>
    %276 = arith.addf %273, %275 : vector<2x8x32xf32>
    %c1_153 = arith.constant 1 : index
    %c0_154 = arith.constant 0 : index
    %c0_155 = arith.constant 0 : index
    %277 = vector.load %arg5[%c1_153, %c0_154, %c0_155] : memref<2x1x32xf32, #tpu.memory_space<vmem>>, vector<1x1x32xf32>
    %278 = vector.shape_cast %277 : vector<1x1x32xf32> to vector<1x32xf32>
    %c1_156 = arith.constant 1 : index
    %c0_157 = arith.constant 0 : index
    %c0_158 = arith.constant 0 : index
    %279 = vector.load %arg6[%c1_156, %c0_157, %c0_158] : memref<2x1x32xf32, #tpu.memory_space<vmem>>, vector<1x1x32xf32>
    %280 = vector.shape_cast %279 : vector<1x1x32xf32> to vector<1x32xf32>
    %cst_159 = arith.constant dense<0.000000e+00> : vector<2x8xf32>
    %281 = vector.multi_reduction <add>, %250, %cst_159 [2] : vector<2x8x32xf32> to vector<2x8xf32>
    %282 = vector.shape_cast %281 : vector<2x8xf32> to vector<2x8x1xf32>
    %cst_160 = arith.constant 3.200000e+01 : f32
    %283 = vector.broadcast %cst_160 : f32 to vector<2x8x1xf32>
    %284 = arith.divf %282, %283 : vector<2x8x1xf32>
    %285 = vector.broadcast %284 : vector<2x8x1xf32> to vector<2x8x32xf32>
    %286 = arith.subf %250, %285 : vector<2x8x32xf32>
    %287 = arith.mulf %286, %286 : vector<2x8x32xf32>
    %cst_161 = arith.constant dense<0.000000e+00> : vector<2x8xf32>
    %288 = vector.multi_reduction <add>, %287, %cst_161 [2] : vector<2x8x32xf32> to vector<2x8xf32>
    %289 = vector.shape_cast %288 : vector<2x8xf32> to vector<2x8x1xf32>
    %cst_162 = arith.constant 3.200000e+01 : f32
    %290 = vector.broadcast %cst_162 : f32 to vector<2x8x1xf32>
    %291 = arith.divf %289, %290 : vector<2x8x1xf32>
    %cst_163 = arith.constant 9.99999974E-6 : f32
    %292 = vector.broadcast %cst_163 : f32 to vector<2x8x1xf32>
    %293 = arith.addf %291, %292 : vector<2x8x1xf32>
    %294 = math.rsqrt %293 : vector<2x8x1xf32>
    %295 = vector.broadcast %294 : vector<2x8x1xf32> to vector<2x8x32xf32>
    %296 = arith.mulf %286, %295 : vector<2x8x32xf32>
    %297 = vector.shape_cast %278 : vector<1x32xf32> to vector<1x1x32xf32>
    %298 = vector.broadcast %297 : vector<1x1x32xf32> to vector<2x8x32xf32>
    %299 = arith.mulf %296, %298 : vector<2x8x32xf32>
    %300 = vector.shape_cast %280 : vector<1x32xf32> to vector<1x1x32xf32>
    %301 = vector.broadcast %300 : vector<1x1x32xf32> to vector<2x8x32xf32>
    %302 = arith.addf %299, %301 : vector<2x8x32xf32>
    %303 = tpu.concatenate %276, %302 in 1 : vector<2x8x32xf32>, vector<2x8x32xf32> -> vector<2x16x32xf32>
    %304 = vector.shape_cast %302 : vector<2x8x32xf32> to vector<16x32xf32>
    %305 = arith.truncf %304 : vector<16x32xf32> to vector<16x32xbf16>
    %306 = vector.shape_cast %303 : vector<2x16x32xf32> to vector<32x32xf32>
    %307 = arith.truncf %306 : vector<32x32xf32> to vector<32x32xbf16>
    %cst_164 = arith.constant 0.000000e+00 : f32
    %308 = vector.broadcast %cst_164 : f32 to vector<16x32xf32>
    %c1_165 = arith.constant 1 : index
    %c0_166 = arith.constant 0 : index
    %c0_167 = arith.constant 0 : index
    %c0_168 = arith.constant 0 : index
    %309 = vector.load %arg7[%c1_165, %c0_166, %c0_167, %c0_168] : memref<2x4x32x8xbf16, #tpu.memory_space<vmem>>, vector<1x1x32x8xbf16>
    %310 = vector.shape_cast %309 : vector<1x1x32x8xbf16> to vector<32x8xbf16>
    %cst_169 = arith.constant dense<0.000000e+00> : vector<16x8xf32>
    %311 = tpu.matmul %305, %310, %cst_169 {dimension_numbers = #tpu.dot_dimension_numbers<[1], [0], [0], [1], [0, 0, 1, 1], [], []>} : vector<16x32xbf16>, vector<32x8xbf16>, vector<16x8xf32> -> vector<16x8xf32>
    %c1_170 = arith.constant 1 : index
    %c0_171 = arith.constant 0 : index
    %c0_172 = arith.constant 0 : index
    %c0_173 = arith.constant 0 : index
    %312 = vector.load %arg8[%c1_170, %c0_171, %c0_172, %c0_173] : memref<2x4x32x8xbf16, #tpu.memory_space<vmem>>, vector<1x1x32x8xbf16>
    %313 = vector.shape_cast %312 : vector<1x1x32x8xbf16> to vector<32x8xbf16>
    %cst_174 = arith.constant dense<0.000000e+00> : vector<32x8xf32>
    %314 = tpu.matmul %307, %313, %cst_174 {dimension_numbers = #tpu.dot_dimension_numbers<[1], [0], [0], [1], [0, 0, 1, 1], [], []>} : vector<32x32xbf16>, vector<32x8xbf16>, vector<32x8xf32> -> vector<32x8xf32>
    %c1_175 = arith.constant 1 : index
    %c0_176 = arith.constant 0 : index
    %c0_177 = arith.constant 0 : index
    %c0_178 = arith.constant 0 : index
    %315 = vector.load %arg9[%c1_175, %c0_176, %c0_177, %c0_178] : memref<2x4x32x8xbf16, #tpu.memory_space<vmem>>, vector<1x1x32x8xbf16>
    %316 = vector.shape_cast %315 : vector<1x1x32x8xbf16> to vector<32x8xbf16>
    %cst_179 = arith.constant dense<0.000000e+00> : vector<32x8xf32>
    %317 = tpu.matmul %307, %316, %cst_179 {dimension_numbers = #tpu.dot_dimension_numbers<[1], [0], [0], [1], [0, 0, 1, 1], [], []>} : vector<32x32xbf16>, vector<32x8xbf16>, vector<32x8xf32> -> vector<32x8xf32>
    %318 = vector.shape_cast %311 : vector<16x8xf32> to vector<2x8x8xf32>
    %319 = arith.truncf %318 : vector<2x8x8xf32> to vector<2x8x8xbf16>
    %320 = vector.shape_cast %314 : vector<32x8xf32> to vector<2x16x8xf32>
    %321 = arith.truncf %320 : vector<2x16x8xf32> to vector<2x16x8xbf16>
    %322 = vector.shape_cast %317 : vector<32x8xf32> to vector<2x16x8xf32>
    %323 = arith.truncf %322 : vector<2x16x8xf32> to vector<2x16x8xbf16>
    "tpu.trace_start"() <{level = 10 : i32, message = "bqe,bke->bqk"}> : () -> ()
    %cst_180 = arith.constant dense<0.000000e+00> : vector<2x8x16xf32>
    %324 = tpu.matmul %319, %321, %cst_180 {dimension_numbers = #tpu.dot_dimension_numbers<[2], [2], [1], [1], [0, 0, 0, 1, 1, 1], [0], [0]>} : vector<2x8x8xbf16>, vector<2x16x8xbf16>, vector<2x8x16xf32> -> vector<2x8x16xf32>
    "tpu.trace_stop"() : () -> ()
    %cst_181 = arith.constant dense<0xFF800000> : vector<2x8xf32>
    %325 = vector.multi_reduction <maximumf>, %324, %cst_181 [2] : vector<2x8x16xf32> to vector<2x8xf32>
    %326 = vector.shape_cast %325 : vector<2x8xf32> to vector<2x8x1xf32>
    %327 = vector.broadcast %326 : vector<2x8x1xf32> to vector<2x8x16xf32>
    %328 = arith.subf %324, %327 : vector<2x8x16xf32>
    %329 = math.exp %328 : vector<2x8x16xf32>
    %cst_182 = arith.constant dense<0.000000e+00> : vector<2x8xf32>
    %330 = vector.multi_reduction <add>, %329, %cst_182 [2] : vector<2x8x16xf32> to vector<2x8xf32>
    %331 = vector.shape_cast %330 : vector<2x8xf32> to vector<2x8x1xf32>
    %332 = tpu.reciprocal %331 {approx = true} : vector<2x8x1xf32> -> vector<2x8x1xf32>
    %333 = vector.broadcast %332 : vector<2x8x1xf32> to vector<2x8x16xf32>
    %334 = arith.mulf %329, %333 : vector<2x8x16xf32>
    %335 = arith.truncf %334 : vector<2x8x16xf32> to vector<2x8x16xbf16>
    "tpu.trace_start"() <{level = 10 : i32, message = "bqk,bke->bqe"}> : () -> ()
    %cst_183 = arith.constant dense<0.000000e+00> : vector<2x8x8xf32>
    %336 = tpu.matmul %335, %323, %cst_183 {dimension_numbers = #tpu.dot_dimension_numbers<[2], [1], [1], [2], [0, 0, 0, 1, 1, 2], [0], [0]>} : vector<2x8x16xbf16>, vector<2x16x8xbf16>, vector<2x8x8xf32> -> vector<2x8x8xf32>
    "tpu.trace_stop"() : () -> ()
    %337 = vector.shape_cast %336 : vector<2x8x8xf32> to vector<16x8xf32>
    %338 = arith.truncf %337 : vector<16x8xf32> to vector<16x8xbf16>
    %c1_184 = arith.constant 1 : index
    %c0_185 = arith.constant 0 : index
    %c0_186 = arith.constant 0 : index
    %c0_187 = arith.constant 0 : index
    %339 = vector.load %arg10[%c1_184, %c0_185, %c0_186, %c0_187] : memref<2x4x8x32xbf16, #tpu.memory_space<vmem>>, vector<1x1x8x32xbf16>
    %340 = vector.shape_cast %339 : vector<1x1x8x32xbf16> to vector<8x32xbf16>
    %cst_188 = arith.constant dense<0.000000e+00> : vector<16x32xf32>
    %341 = tpu.matmul %338, %340, %cst_188 {dimension_numbers = #tpu.dot_dimension_numbers<[1], [0], [0], [1], [0, 0, 1, 1], [], []>} : vector<16x8xbf16>, vector<8x32xbf16>, vector<16x32xf32> -> vector<16x32xf32>
    %342 = arith.addf %308, %341 : vector<16x32xf32>
    %c1_189 = arith.constant 1 : index
    %c1_190 = arith.constant 1 : index
    %c0_191 = arith.constant 0 : index
    %c0_192 = arith.constant 0 : index
    %343 = vector.load %arg7[%c1_189, %c1_190, %c0_191, %c0_192] : memref<2x4x32x8xbf16, #tpu.memory_space<vmem>>, vector<1x1x32x8xbf16>
    %344 = vector.shape_cast %343 : vector<1x1x32x8xbf16> to vector<32x8xbf16>
    %cst_193 = arith.constant dense<0.000000e+00> : vector<16x8xf32>
    %345 = tpu.matmul %305, %344, %cst_193 {dimension_numbers = #tpu.dot_dimension_numbers<[1], [0], [0], [1], [0, 0, 1, 1], [], []>} : vector<16x32xbf16>, vector<32x8xbf16>, vector<16x8xf32> -> vector<16x8xf32>
    %c1_194 = arith.constant 1 : index
    %c1_195 = arith.constant 1 : index
    %c0_196 = arith.constant 0 : index
    %c0_197 = arith.constant 0 : index
    %346 = vector.load %arg8[%c1_194, %c1_195, %c0_196, %c0_197] : memref<2x4x32x8xbf16, #tpu.memory_space<vmem>>, vector<1x1x32x8xbf16>
    %347 = vector.shape_cast %346 : vector<1x1x32x8xbf16> to vector<32x8xbf16>
    %cst_198 = arith.constant dense<0.000000e+00> : vector<32x8xf32>
    %348 = tpu.matmul %307, %347, %cst_198 {dimension_numbers = #tpu.dot_dimension_numbers<[1], [0], [0], [1], [0, 0, 1, 1], [], []>} : vector<32x32xbf16>, vector<32x8xbf16>, vector<32x8xf32> -> vector<32x8xf32>
    %c1_199 = arith.constant 1 : index
    %c1_200 = arith.constant 1 : index
    %c0_201 = arith.constant 0 : index
    %c0_202 = arith.constant 0 : index
    %349 = vector.load %arg9[%c1_199, %c1_200, %c0_201, %c0_202] : memref<2x4x32x8xbf16, #tpu.memory_space<vmem>>, vector<1x1x32x8xbf16>
    %350 = vector.shape_cast %349 : vector<1x1x32x8xbf16> to vector<32x8xbf16>
    %cst_203 = arith.constant dense<0.000000e+00> : vector<32x8xf32>
    %351 = tpu.matmul %307, %350, %cst_203 {dimension_numbers = #tpu.dot_dimension_numbers<[1], [0], [0], [1], [0, 0, 1, 1], [], []>} : vector<32x32xbf16>, vector<32x8xbf16>, vector<32x8xf32> -> vector<32x8xf32>
    %352 = vector.shape_cast %345 : vector<16x8xf32> to vector<2x8x8xf32>
    %353 = arith.truncf %352 : vector<2x8x8xf32> to vector<2x8x8xbf16>
    %354 = vector.shape_cast %348 : vector<32x8xf32> to vector<2x16x8xf32>
    %355 = arith.truncf %354 : vector<2x16x8xf32> to vector<2x16x8xbf16>
    %356 = vector.shape_cast %351 : vector<32x8xf32> to vector<2x16x8xf32>
    %357 = arith.truncf %356 : vector<2x16x8xf32> to vector<2x16x8xbf16>
    "tpu.trace_start"() <{level = 10 : i32, message = "bqe,bke->bqk"}> : () -> ()
    %cst_204 = arith.constant dense<0.000000e+00> : vector<2x8x16xf32>
    %358 = tpu.matmul %353, %355, %cst_204 {dimension_numbers = #tpu.dot_dimension_numbers<[2], [2], [1], [1], [0, 0, 0, 1, 1, 1], [0], [0]>} : vector<2x8x8xbf16>, vector<2x16x8xbf16>, vector<2x8x16xf32> -> vector<2x8x16xf32>
    "tpu.trace_stop"() : () -> ()
    %cst_205 = arith.constant dense<0xFF800000> : vector<2x8xf32>
    %359 = vector.multi_reduction <maximumf>, %358, %cst_205 [2] : vector<2x8x16xf32> to vector<2x8xf32>
    %360 = vector.shape_cast %359 : vector<2x8xf32> to vector<2x8x1xf32>
    %361 = vector.broadcast %360 : vector<2x8x1xf32> to vector<2x8x16xf32>
    %362 = arith.subf %358, %361 : vector<2x8x16xf32>
    %363 = math.exp %362 : vector<2x8x16xf32>
    %cst_206 = arith.constant dense<0.000000e+00> : vector<2x8xf32>
    %364 = vector.multi_reduction <add>, %363, %cst_206 [2] : vector<2x8x16xf32> to vector<2x8xf32>
    %365 = vector.shape_cast %364 : vector<2x8xf32> to vector<2x8x1xf32>
    %366 = tpu.reciprocal %365 {approx = true} : vector<2x8x1xf32> -> vector<2x8x1xf32>
    %367 = vector.broadcast %366 : vector<2x8x1xf32> to vector<2x8x16xf32>
    %368 = arith.mulf %363, %367 : vector<2x8x16xf32>
    %369 = arith.truncf %368 : vector<2x8x16xf32> to vector<2x8x16xbf16>
    "tpu.trace_start"() <{level = 10 : i32, message = "bqk,bke->bqe"}> : () -> ()
    %cst_207 = arith.constant dense<0.000000e+00> : vector<2x8x8xf32>
    %370 = tpu.matmul %369, %357, %cst_207 {dimension_numbers = #tpu.dot_dimension_numbers<[2], [1], [1], [2], [0, 0, 0, 1, 1, 2], [0], [0]>} : vector<2x8x16xbf16>, vector<2x16x8xbf16>, vector<2x8x8xf32> -> vector<2x8x8xf32>
    "tpu.trace_stop"() : () -> ()
    %371 = vector.shape_cast %370 : vector<2x8x8xf32> to vector<16x8xf32>
    %372 = arith.truncf %371 : vector<16x8xf32> to vector<16x8xbf16>
    %c1_208 = arith.constant 1 : index
    %c1_209 = arith.constant 1 : index
    %c0_210 = arith.constant 0 : index
    %c0_211 = arith.constant 0 : index
    %373 = vector.load %arg10[%c1_208, %c1_209, %c0_210, %c0_211] : memref<2x4x8x32xbf16, #tpu.memory_space<vmem>>, vector<1x1x8x32xbf16>
    %374 = vector.shape_cast %373 : vector<1x1x8x32xbf16> to vector<8x32xbf16>
    %cst_212 = arith.constant dense<0.000000e+00> : vector<16x32xf32>
    %375 = tpu.matmul %372, %374, %cst_212 {dimension_numbers = #tpu.dot_dimension_numbers<[1], [0], [0], [1], [0, 0, 1, 1], [], []>} : vector<16x8xbf16>, vector<8x32xbf16>, vector<16x32xf32> -> vector<16x32xf32>
    %376 = arith.addf %342, %375 : vector<16x32xf32>
    %c1_213 = arith.constant 1 : index
    %c2_214 = arith.constant 2 : index
    %c0_215 = arith.constant 0 : index
    %c0_216 = arith.constant 0 : index
    %377 = vector.load %arg7[%c1_213, %c2_214, %c0_215, %c0_216] : memref<2x4x32x8xbf16, #tpu.memory_space<vmem>>, vector<1x1x32x8xbf16>
    %378 = vector.shape_cast %377 : vector<1x1x32x8xbf16> to vector<32x8xbf16>
    %cst_217 = arith.constant dense<0.000000e+00> : vector<16x8xf32>
    %379 = tpu.matmul %305, %378, %cst_217 {dimension_numbers = #tpu.dot_dimension_numbers<[1], [0], [0], [1], [0, 0, 1, 1], [], []>} : vector<16x32xbf16>, vector<32x8xbf16>, vector<16x8xf32> -> vector<16x8xf32>
    %c1_218 = arith.constant 1 : index
    %c2_219 = arith.constant 2 : index
    %c0_220 = arith.constant 0 : index
    %c0_221 = arith.constant 0 : index
    %380 = vector.load %arg8[%c1_218, %c2_219, %c0_220, %c0_221] : memref<2x4x32x8xbf16, #tpu.memory_space<vmem>>, vector<1x1x32x8xbf16>
    %381 = vector.shape_cast %380 : vector<1x1x32x8xbf16> to vector<32x8xbf16>
    %cst_222 = arith.constant dense<0.000000e+00> : vector<32x8xf32>
    %382 = tpu.matmul %307, %381, %cst_222 {dimension_numbers = #tpu.dot_dimension_numbers<[1], [0], [0], [1], [0, 0, 1, 1], [], []>} : vector<32x32xbf16>, vector<32x8xbf16>, vector<32x8xf32> -> vector<32x8xf32>
    %c1_223 = arith.constant 1 : index
    %c2_224 = arith.constant 2 : index
    %c0_225 = arith.constant 0 : index
    %c0_226 = arith.constant 0 : index
    %383 = vector.load %arg9[%c1_223, %c2_224, %c0_225, %c0_226] : memref<2x4x32x8xbf16, #tpu.memory_space<vmem>>, vector<1x1x32x8xbf16>
    %384 = vector.shape_cast %383 : vector<1x1x32x8xbf16> to vector<32x8xbf16>
    %cst_227 = arith.constant dense<0.000000e+00> : vector<32x8xf32>
    %385 = tpu.matmul %307, %384, %cst_227 {dimension_numbers = #tpu.dot_dimension_numbers<[1], [0], [0], [1], [0, 0, 1, 1], [], []>} : vector<32x32xbf16>, vector<32x8xbf16>, vector<32x8xf32> -> vector<32x8xf32>
    %386 = vector.shape_cast %379 : vector<16x8xf32> to vector<2x8x8xf32>
    %387 = arith.truncf %386 : vector<2x8x8xf32> to vector<2x8x8xbf16>
    %388 = vector.shape_cast %382 : vector<32x8xf32> to vector<2x16x8xf32>
    %389 = arith.truncf %388 : vector<2x16x8xf32> to vector<2x16x8xbf16>
    %390 = vector.shape_cast %385 : vector<32x8xf32> to vector<2x16x8xf32>
    %391 = arith.truncf %390 : vector<2x16x8xf32> to vector<2x16x8xbf16>
    "tpu.trace_start"() <{level = 10 : i32, message = "bqe,bke->bqk"}> : () -> ()
    %cst_228 = arith.constant dense<0.000000e+00> : vector<2x8x16xf32>
    %392 = tpu.matmul %387, %389, %cst_228 {dimension_numbers = #tpu.dot_dimension_numbers<[2], [2], [1], [1], [0, 0, 0, 1, 1, 1], [0], [0]>} : vector<2x8x8xbf16>, vector<2x16x8xbf16>, vector<2x8x16xf32> -> vector<2x8x16xf32>
    "tpu.trace_stop"() : () -> ()
    %cst_229 = arith.constant dense<0xFF800000> : vector<2x8xf32>
    %393 = vector.multi_reduction <maximumf>, %392, %cst_229 [2] : vector<2x8x16xf32> to vector<2x8xf32>
    %394 = vector.shape_cast %393 : vector<2x8xf32> to vector<2x8x1xf32>
    %395 = vector.broadcast %394 : vector<2x8x1xf32> to vector<2x8x16xf32>
    %396 = arith.subf %392, %395 : vector<2x8x16xf32>
    %397 = math.exp %396 : vector<2x8x16xf32>
    %cst_230 = arith.constant dense<0.000000e+00> : vector<2x8xf32>
    %398 = vector.multi_reduction <add>, %397, %cst_230 [2] : vector<2x8x16xf32> to vector<2x8xf32>
    %399 = vector.shape_cast %398 : vector<2x8xf32> to vector<2x8x1xf32>
    %400 = tpu.reciprocal %399 {approx = true} : vector<2x8x1xf32> -> vector<2x8x1xf32>
    %401 = vector.broadcast %400 : vector<2x8x1xf32> to vector<2x8x16xf32>
    %402 = arith.mulf %397, %401 : vector<2x8x16xf32>
    %403 = arith.truncf %402 : vector<2x8x16xf32> to vector<2x8x16xbf16>
    "tpu.trace_start"() <{level = 10 : i32, message = "bqk,bke->bqe"}> : () -> ()
    %cst_231 = arith.constant dense<0.000000e+00> : vector<2x8x8xf32>
    %404 = tpu.matmul %403, %391, %cst_231 {dimension_numbers = #tpu.dot_dimension_numbers<[2], [1], [1], [2], [0, 0, 0, 1, 1, 2], [0], [0]>} : vector<2x8x16xbf16>, vector<2x16x8xbf16>, vector<2x8x8xf32> -> vector<2x8x8xf32>
    "tpu.trace_stop"() : () -> ()
    %405 = vector.shape_cast %404 : vector<2x8x8xf32> to vector<16x8xf32>
    %406 = arith.truncf %405 : vector<16x8xf32> to vector<16x8xbf16>
    %c1_232 = arith.constant 1 : index
    %c2_233 = arith.constant 2 : index
    %c0_234 = arith.constant 0 : index
    %c0_235 = arith.constant 0 : index
    %407 = vector.load %arg10[%c1_232, %c2_233, %c0_234, %c0_235] : memref<2x4x8x32xbf16, #tpu.memory_space<vmem>>, vector<1x1x8x32xbf16>
    %408 = vector.shape_cast %407 : vector<1x1x8x32xbf16> to vector<8x32xbf16>
    %cst_236 = arith.constant dense<0.000000e+00> : vector<16x32xf32>
    %409 = tpu.matmul %406, %408, %cst_236 {dimension_numbers = #tpu.dot_dimension_numbers<[1], [0], [0], [1], [0, 0, 1, 1], [], []>} : vector<16x8xbf16>, vector<8x32xbf16>, vector<16x32xf32> -> vector<16x32xf32>
    %410 = arith.addf %376, %409 : vector<16x32xf32>
    %c1_237 = arith.constant 1 : index
    %c3_238 = arith.constant 3 : index
    %c0_239 = arith.constant 0 : index
    %c0_240 = arith.constant 0 : index
    %411 = vector.load %arg7[%c1_237, %c3_238, %c0_239, %c0_240] : memref<2x4x32x8xbf16, #tpu.memory_space<vmem>>, vector<1x1x32x8xbf16>
    %412 = vector.shape_cast %411 : vector<1x1x32x8xbf16> to vector<32x8xbf16>
    %cst_241 = arith.constant dense<0.000000e+00> : vector<16x8xf32>
    %413 = tpu.matmul %305, %412, %cst_241 {dimension_numbers = #tpu.dot_dimension_numbers<[1], [0], [0], [1], [0, 0, 1, 1], [], []>} : vector<16x32xbf16>, vector<32x8xbf16>, vector<16x8xf32> -> vector<16x8xf32>
    %c1_242 = arith.constant 1 : index
    %c3_243 = arith.constant 3 : index
    %c0_244 = arith.constant 0 : index
    %c0_245 = arith.constant 0 : index
    %414 = vector.load %arg8[%c1_242, %c3_243, %c0_244, %c0_245] : memref<2x4x32x8xbf16, #tpu.memory_space<vmem>>, vector<1x1x32x8xbf16>
    %415 = vector.shape_cast %414 : vector<1x1x32x8xbf16> to vector<32x8xbf16>
    %cst_246 = arith.constant dense<0.000000e+00> : vector<32x8xf32>
    %416 = tpu.matmul %307, %415, %cst_246 {dimension_numbers = #tpu.dot_dimension_numbers<[1], [0], [0], [1], [0, 0, 1, 1], [], []>} : vector<32x32xbf16>, vector<32x8xbf16>, vector<32x8xf32> -> vector<32x8xf32>
    %c1_247 = arith.constant 1 : index
    %c3_248 = arith.constant 3 : index
    %c0_249 = arith.constant 0 : index
    %c0_250 = arith.constant 0 : index
    %417 = vector.load %arg9[%c1_247, %c3_248, %c0_249, %c0_250] : memref<2x4x32x8xbf16, #tpu.memory_space<vmem>>, vector<1x1x32x8xbf16>
    %418 = vector.shape_cast %417 : vector<1x1x32x8xbf16> to vector<32x8xbf16>
    %cst_251 = arith.constant dense<0.000000e+00> : vector<32x8xf32>
    %419 = tpu.matmul %307, %418, %cst_251 {dimension_numbers = #tpu.dot_dimension_numbers<[1], [0], [0], [1], [0, 0, 1, 1], [], []>} : vector<32x32xbf16>, vector<32x8xbf16>, vector<32x8xf32> -> vector<32x8xf32>
    %420 = vector.shape_cast %413 : vector<16x8xf32> to vector<2x8x8xf32>
    %421 = arith.truncf %420 : vector<2x8x8xf32> to vector<2x8x8xbf16>
    %422 = vector.shape_cast %416 : vector<32x8xf32> to vector<2x16x8xf32>
    %423 = arith.truncf %422 : vector<2x16x8xf32> to vector<2x16x8xbf16>
    %424 = vector.shape_cast %419 : vector<32x8xf32> to vector<2x16x8xf32>
    %425 = arith.truncf %424 : vector<2x16x8xf32> to vector<2x16x8xbf16>
    "tpu.trace_start"() <{level = 10 : i32, message = "bqe,bke->bqk"}> : () -> ()
    %cst_252 = arith.constant dense<0.000000e+00> : vector<2x8x16xf32>
    %426 = tpu.matmul %421, %423, %cst_252 {dimension_numbers = #tpu.dot_dimension_numbers<[2], [2], [1], [1], [0, 0, 0, 1, 1, 1], [0], [0]>} : vector<2x8x8xbf16>, vector<2x16x8xbf16>, vector<2x8x16xf32> -> vector<2x8x16xf32>
    "tpu.trace_stop"() : () -> ()
    %cst_253 = arith.constant dense<0xFF800000> : vector<2x8xf32>
    %427 = vector.multi_reduction <maximumf>, %426, %cst_253 [2] : vector<2x8x16xf32> to vector<2x8xf32>
    %428 = vector.shape_cast %427 : vector<2x8xf32> to vector<2x8x1xf32>
    %429 = vector.broadcast %428 : vector<2x8x1xf32> to vector<2x8x16xf32>
    %430 = arith.subf %426, %429 : vector<2x8x16xf32>
    %431 = math.exp %430 : vector<2x8x16xf32>
    %cst_254 = arith.constant dense<0.000000e+00> : vector<2x8xf32>
    %432 = vector.multi_reduction <add>, %431, %cst_254 [2] : vector<2x8x16xf32> to vector<2x8xf32>
    %433 = vector.shape_cast %432 : vector<2x8xf32> to vector<2x8x1xf32>
    %434 = tpu.reciprocal %433 {approx = true} : vector<2x8x1xf32> -> vector<2x8x1xf32>
    %435 = vector.broadcast %434 : vector<2x8x1xf32> to vector<2x8x16xf32>
    %436 = arith.mulf %431, %435 : vector<2x8x16xf32>
    %437 = arith.truncf %436 : vector<2x8x16xf32> to vector<2x8x16xbf16>
    "tpu.trace_start"() <{level = 10 : i32, message = "bqk,bke->bqe"}> : () -> ()
    %cst_255 = arith.constant dense<0.000000e+00> : vector<2x8x8xf32>
    %438 = tpu.matmul %437, %425, %cst_255 {dimension_numbers = #tpu.dot_dimension_numbers<[2], [1], [1], [2], [0, 0, 0, 1, 1, 2], [0], [0]>} : vector<2x8x16xbf16>, vector<2x16x8xbf16>, vector<2x8x8xf32> -> vector<2x8x8xf32>
    "tpu.trace_stop"() : () -> ()
    %439 = vector.shape_cast %438 : vector<2x8x8xf32> to vector<16x8xf32>
    %440 = arith.truncf %439 : vector<16x8xf32> to vector<16x8xbf16>
    %c1_256 = arith.constant 1 : index
    %c3_257 = arith.constant 3 : index
    %c0_258 = arith.constant 0 : index
    %c0_259 = arith.constant 0 : index
    %441 = vector.load %arg10[%c1_256, %c3_257, %c0_258, %c0_259] : memref<2x4x8x32xbf16, #tpu.memory_space<vmem>>, vector<1x1x8x32xbf16>
    %442 = vector.shape_cast %441 : vector<1x1x8x32xbf16> to vector<8x32xbf16>
    %cst_260 = arith.constant dense<0.000000e+00> : vector<16x32xf32>
    %443 = tpu.matmul %440, %442, %cst_260 {dimension_numbers = #tpu.dot_dimension_numbers<[1], [0], [0], [1], [0, 0, 1, 1], [], []>} : vector<16x8xbf16>, vector<8x32xbf16>, vector<16x32xf32> -> vector<16x32xf32>
    %444 = arith.addf %410, %443 : vector<16x32xf32>
    %445 = vector.shape_cast %444 : vector<16x32xf32> to vector<2x8x32xf32>
    %446 = arith.addf %250, %445 : vector<2x8x32xf32>
    %c1_261 = arith.constant 1 : index
    %c0_262 = arith.constant 0 : index
    %c0_263 = arith.constant 0 : index
    %447 = vector.load %arg11[%c1_261, %c0_262, %c0_263] : memref<2x1x32xf32, #tpu.memory_space<vmem>>, vector<1x1x32xf32>
    %448 = vector.shape_cast %447 : vector<1x1x32xf32> to vector<1x32xf32>
    %c1_264 = arith.constant 1 : index
    %c0_265 = arith.constant 0 : index
    %c0_266 = arith.constant 0 : index
    %449 = vector.load %arg12[%c1_264, %c0_265, %c0_266] : memref<2x1x32xf32, #tpu.memory_space<vmem>>, vector<1x1x32xf32>
    %450 = vector.shape_cast %449 : vector<1x1x32xf32> to vector<1x32xf32>
    %cst_267 = arith.constant dense<0.000000e+00> : vector<2x8xf32>
    %451 = vector.multi_reduction <add>, %446, %cst_267 [2] : vector<2x8x32xf32> to vector<2x8xf32>
    %452 = vector.shape_cast %451 : vector<2x8xf32> to vector<2x8x1xf32>
    %cst_268 = arith.constant 3.200000e+01 : f32
    %453 = vector.broadcast %cst_268 : f32 to vector<2x8x1xf32>
    %454 = arith.divf %452, %453 : vector<2x8x1xf32>
    %455 = vector.broadcast %454 : vector<2x8x1xf32> to vector<2x8x32xf32>
    %456 = arith.subf %446, %455 : vector<2x8x32xf32>
    %457 = arith.mulf %456, %456 : vector<2x8x32xf32>
    %cst_269 = arith.constant dense<0.000000e+00> : vector<2x8xf32>
    %458 = vector.multi_reduction <add>, %457, %cst_269 [2] : vector<2x8x32xf32> to vector<2x8xf32>
    %459 = vector.shape_cast %458 : vector<2x8xf32> to vector<2x8x1xf32>
    %cst_270 = arith.constant 3.200000e+01 : f32
    %460 = vector.broadcast %cst_270 : f32 to vector<2x8x1xf32>
    %461 = arith.divf %459, %460 : vector<2x8x1xf32>
    %cst_271 = arith.constant 9.99999974E-6 : f32
    %462 = vector.broadcast %cst_271 : f32 to vector<2x8x1xf32>
    %463 = arith.addf %461, %462 : vector<2x8x1xf32>
    %464 = math.rsqrt %463 : vector<2x8x1xf32>
    %465 = vector.broadcast %464 : vector<2x8x1xf32> to vector<2x8x32xf32>
    %466 = arith.mulf %456, %465 : vector<2x8x32xf32>
    %467 = vector.shape_cast %448 : vector<1x32xf32> to vector<1x1x32xf32>
    %468 = vector.broadcast %467 : vector<1x1x32xf32> to vector<2x8x32xf32>
    %469 = arith.mulf %466, %468 : vector<2x8x32xf32>
    %470 = vector.shape_cast %450 : vector<1x32xf32> to vector<1x1x32xf32>
    %471 = vector.broadcast %470 : vector<1x1x32xf32> to vector<2x8x32xf32>
    %472 = arith.addf %469, %471 : vector<2x8x32xf32>
    %473 = vector.shape_cast %472 : vector<2x8x32xf32> to vector<16x32xf32>
    %474 = arith.truncf %473 : vector<16x32xf32> to vector<16x32xbf16>
    %c1_272 = arith.constant 1 : index
    %c0_273 = arith.constant 0 : index
    %c0_274 = arith.constant 0 : index
    %475 = vector.load %arg13[%c1_272, %c0_273, %c0_274] : memref<2x32x128xbf16, #tpu.memory_space<vmem>>, vector<1x32x128xbf16>
    %476 = vector.shape_cast %475 : vector<1x32x128xbf16> to vector<32x128xbf16>
    %cst_275 = arith.constant dense<0.000000e+00> : vector<16x128xf32>
    %477 = tpu.matmul %474, %476, %cst_275 {dimension_numbers = #tpu.dot_dimension_numbers<[1], [0], [0], [1], [0, 0, 1, 1], [], []>} : vector<16x32xbf16>, vector<32x128xbf16>, vector<16x128xf32> -> vector<16x128xf32>
    %cst_276 = arith.constant 5.000000e-01 : f32
    %478 = vector.broadcast %cst_276 : f32 to vector<16x128xf32>
    %479 = arith.mulf %478, %477 : vector<16x128xf32>
    %cst_277 = arith.constant 4.471500e-02 : f32
    %480 = vector.broadcast %cst_277 : f32 to vector<16x128xf32>
    %481 = arith.mulf %480, %477 : vector<16x128xf32>
    %482 = arith.mulf %481, %477 : vector<16x128xf32>
    %483 = arith.mulf %482, %477 : vector<16x128xf32>
    %484 = arith.addf %477, %483 : vector<16x128xf32>
    %cst_278 = arith.constant 0.797884583 : f32
    %485 = vector.broadcast %cst_278 : f32 to vector<16x128xf32>
    %486 = arith.mulf %485, %484 : vector<16x128xf32>
    %487 = math.tanh %486 : vector<16x128xf32>
    %cst_279 = arith.constant 1.000000e+00 : f32
    %488 = vector.broadcast %cst_279 : f32 to vector<16x128xf32>
    %489 = arith.addf %488, %487 : vector<16x128xf32>
    %490 = arith.mulf %479, %489 : vector<16x128xf32>
    %491 = arith.truncf %490 : vector<16x128xf32> to vector<16x128xbf16>
    %c1_280 = arith.constant 1 : index
    %c0_281 = arith.constant 0 : index
    %c0_282 = arith.constant 0 : index
    %492 = vector.load %arg14[%c1_280, %c0_281, %c0_282] : memref<2x128x32xbf16, #tpu.memory_space<vmem>>, vector<1x128x32xbf16>
    %493 = vector.shape_cast %492 : vector<1x128x32xbf16> to vector<128x32xbf16>
    %cst_283 = arith.constant dense<0.000000e+00> : vector<16x32xf32>
    %494 = tpu.matmul %491, %493, %cst_283 {dimension_numbers = #tpu.dot_dimension_numbers<[1], [0], [0], [1], [0, 0, 1, 1], [], []>} : vector<16x128xbf16>, vector<128x32xbf16>, vector<16x32xf32> -> vector<16x32xf32>
    %495 = vector.shape_cast %494 : vector<16x32xf32> to vector<2x8x32xf32>
    %496 = arith.addf %446, %495 : vector<2x8x32xf32>
    %c0_284 = arith.constant 0 : index
    %c0_285 = arith.constant 0 : index
    %497 = vector.load %arg15[%c0_284, %c0_285] : memref<1x32xf32, #tpu.memory_space<vmem>>, vector<1x32xf32>
    %c0_286 = arith.constant 0 : index
    %c0_287 = arith.constant 0 : index
    %498 = vector.load %arg16[%c0_286, %c0_287] : memref<1x32xf32, #tpu.memory_space<vmem>>, vector<1x32xf32>
    %cst_288 = arith.constant dense<0.000000e+00> : vector<2x8xf32>
    %499 = vector.multi_reduction <add>, %496, %cst_288 [2] : vector<2x8x32xf32> to vector<2x8xf32>
    %500 = vector.shape_cast %499 : vector<2x8xf32> to vector<2x8x1xf32>
    %cst_289 = arith.constant 3.200000e+01 : f32
    %501 = vector.broadcast %cst_289 : f32 to vector<2x8x1xf32>
    %502 = arith.divf %500, %501 : vector<2x8x1xf32>
    %503 = vector.broadcast %502 : vector<2x8x1xf32> to vector<2x8x32xf32>
    %504 = arith.subf %496, %503 : vector<2x8x32xf32>
    %505 = arith.mulf %504, %504 : vector<2x8x32xf32>
    %cst_290 = arith.constant dense<0.000000e+00> : vector<2x8xf32>
    %506 = vector.multi_reduction <add>, %505, %cst_290 [2] : vector<2x8x32xf32> to vector<2x8xf32>
    %507 = vector.shape_cast %506 : vector<2x8xf32> to vector<2x8x1xf32>
    %cst_291 = arith.constant 3.200000e+01 : f32
    %508 = vector.broadcast %cst_291 : f32 to vector<2x8x1xf32>
    %509 = arith.divf %507, %508 : vector<2x8x1xf32>
    %cst_292 = arith.constant 9.99999974E-6 : f32
    %510 = vector.broadcast %cst_292 : f32 to vector<2x8x1xf32>
    %511 = arith.addf %509, %510 : vector<2x8x1xf32>
    %512 = math.rsqrt %511 : vector<2x8x1xf32>
    %513 = vector.broadcast %512 : vector<2x8x1xf32> to vector<2x8x32xf32>
    %514 = arith.mulf %504, %513 : vector<2x8x32xf32>
    %515 = vector.shape_cast %497 : vector<1x32xf32> to vector<1x1x32xf32>
    %516 = vector.broadcast %515 : vector<1x1x32xf32> to vector<2x8x32xf32>
    %517 = arith.mulf %514, %516 : vector<2x8x32xf32>
    %518 = vector.shape_cast %498 : vector<1x32xf32> to vector<1x1x32xf32>
    %519 = vector.broadcast %518 : vector<1x1x32xf32> to vector<2x8x32xf32>
    %520 = arith.addf %517, %519 : vector<2x8x32xf32>
    %c0_293 = arith.constant 0 : index
    %c0_294 = arith.constant 0 : index
    %c0_295 = arith.constant 0 : index
    %521 = vector.load %arg17[%c0_293, %c0_294, %c0_295] : memref<2x8x32xf32, #tpu.memory_space<vmem>>, vector<2x8x32xf32>
    tpu.vector_store %arg17[%c0_293, %c0_294, %c0_295], %520 {strides = array<i32>} : memref<2x8x32xf32, #tpu.memory_space<vmem>>, vector<2x8x32xf32>,
    return
  }
  func.func @transform_0(%arg0: i32) -> (i32, i32, i32) {
    %c0_i32 = arith.constant 0 : i32
    %c0_i32_0 = arith.constant 0 : i32
    %c0_i32_1 = arith.constant 0 : i32
    return %arg0, %c0_i32, %c0_i32_0 : i32, i32, i32
  }
  func.func @transform_1(%arg0: i32) -> (i32, i32) {
    %c0_i32 = arith.constant 0 : i32
    %c0_i32_0 = arith.constant 0 : i32
    %c0_i32_1 = arith.constant 0 : i32
    return %c0_i32, %c0_i32_0 : i32, i32
  }
  func.func @transform_2(%arg0: i32) -> (i32, i32, i32) {
    %c0_i32 = arith.constant 0 : i32
    %c0_i32_0 = arith.constant 0 : i32
    %c0_i32_1 = arith.constant 0 : i32
    %c0_i32_2 = arith.constant 0 : i32
    return %c0_i32, %c0_i32_0, %c0_i32_1 : i32, i32, i32
  }
  func.func @transform_3(%arg0: i32) -> (i32, i32, i32) {
    %c0_i32 = arith.constant 0 : i32
    %c0_i32_0 = arith.constant 0 : i32
    %c0_i32_1 = arith.constant 0 : i32
    %c0_i32_2 = arith.constant 0 : i32
    return %c0_i32, %c0_i32_0, %c0_i32_1 : i32, i32, i32
  }
  func.func @transform_4(%arg0: i32) -> (i32, i32, i32) {
    %c0_i32 = arith.constant 0 : i32
    %c0_i32_0 = arith.constant 0 : i32
    %c0_i32_1 = arith.constant 0 : i32
    %c0_i32_2 = arith.constant 0 : i32
    return %c0_i32, %c0_i32_0, %c0_i32_1 : i32, i32, i32
  }
  func.func @transform_5(%arg0: i32) -> (i32, i32, i32) {
    %c0_i32 = arith.constant 0 : i32
    %c0_i32_0 = arith.constant 0 : i32
    %c0_i32_1 = arith.constant 0 : i32
    %c0_i32_2 = arith.constant 0 : i32
    return %c0_i32, %c0_i32_0, %c0_i32_1 : i32, i32, i32
  }
  func.func @transform_6(%arg0: i32) -> (i32, i32, i32, i32) {
    %c0_i32 = arith.constant 0 : i32
    %c0_i32_0 = arith.constant 0 : i32
    %c0_i32_1 = arith.constant 0 : i32
    %c0_i32_2 = arith.constant 0 : i32
    %c0_i32_3 = arith.constant 0 : i32
    return %c0_i32, %c0_i32_0, %c0_i32_1, %c0_i32_2 : i32, i32, i32, i32
  }
  func.func @transform_7(%arg0: i32) -> (i32, i32, i32, i32) {
    %c0_i32 = arith.constant 0 : i32
    %c0_i32_0 = arith.constant 0 : i32
    %c0_i32_1 = arith.constant 0 : i32
    %c0_i32_2 = arith.constant 0 : i32
    %c0_i32_3 = arith.constant 0 : i32
    return %c0_i32, %c0_i32_0, %c0_i32_1, %c0_i32_2 : i32, i32, i32, i32
  }
  func.func @transform_8(%arg0: i32) -> (i32, i32, i32, i32) {
    %c0_i32 = arith.constant 0 : i32
    %c0_i32_0 = arith.constant 0 : i32
    %c0_i32_1 = arith.constant 0 : i32
    %c0_i32_2 = arith.constant 0 : i32
    %c0_i32_3 = arith.constant 0 : i32
    return %c0_i32, %c0_i32_0, %c0_i32_1, %c0_i32_2 : i32, i32, i32, i32
  }
  func.func @transform_9(%arg0: i32) -> (i32, i32, i32, i32) {
    %c0_i32 = arith.constant 0 : i32
    %c0_i32_0 = arith.constant 0 : i32
    %c0_i32_1 = arith.constant 0 : i32
    %c0_i32_2 = arith.constant 0 : i32
    %c0_i32_3 = arith.constant 0 : i32
    return %c0_i32, %c0_i32_0, %c0_i32_1, %c0_i32_2 : i32, i32, i32, i32
  }
  func.func @transform_10(%arg0: i32) -> (i32, i32, i32) {
    %c0_i32 = arith.constant 0 : i32
    %c0_i32_0 = arith.constant 0 : i32
    %c0_i32_1 = arith.constant 0 : i32
    %c0_i32_2 = arith.constant 0 : i32
    return %c0_i32, %c0_i32_0, %c0_i32_1 : i32, i32, i32
  }
  func.func @transform_11(%arg0: i32) -> (i32, i32, i32) {
    %c0_i32 = arith.constant 0 : i32
    %c0_i32_0 = arith.constant 0 : i32
    %c0_i32_1 = arith.constant 0 : i32
    %c0_i32_2 = arith.constant 0 : i32
    return %c0_i32, %c0_i32_0, %c0_i32_1 : i32, i32, i32
  }
  func.func @transform_12(%arg0: i32) -> (i32, i32, i32) {
    %c0_i32 = arith.constant 0 : i32
    %c0_i32_0 = arith.constant 0 : i32
    %c0_i32_1 = arith.constant 0 : i32
    %c0_i32_2 = arith.constant 0 : i32
    return %c0_i32, %c0_i32_0, %c0_i32_1 : i32, i32, i32
  }
  func.func @transform_13(%arg0: i32) -> (i32, i32, i32) {
    %c0_i32 = arith.constant 0 : i32
    %c0_i32_0 = arith.constant 0 : i32
    %c0_i32_1 = arith.constant 0 : i32
    %c0_i32_2 = arith.constant 0 : i32
    return %c0_i32, %c0_i32_0, %c0_i32_1 : i32, i32, i32
  }
  func.func @transform_14(%arg0: i32) -> (i32, i32) {
    %c0_i32 = arith.constant 0 : i32
    %c0_i32_0 = arith.constant 0 : i32
    %c0_i32_1 = arith.constant 0 : i32
    return %c0_i32, %c0_i32_0 : i32, i32
  }
  func.func @transform_15(%arg0: i32) -> (i32, i32) {
    %c0_i32 = arith.constant 0 : i32
    %c0_i32_0 = arith.constant 0 : i32
    %c0_i32_1 = arith.constant 0 : i32
    return %c0_i32, %c0_i32_0 : i32, i32
  }
  func.func @transform_16(%arg0: i32) -> (i32, i32, i32) {
    %c0_i32 = arith.constant 0 : i32
    %c0_i32_0 = arith.constant 0 : i32
    %c0_i32_1 = arith.constant 0 : i32
    return %arg0, %c0_i32, %c0_i32_0 : i32, i32, i32
  }
}

</mosaic_0001>

<bundles_post_ra>
// kernel: perceiver_resampler.1
= control target key start
LH: loop header
LB: loop body
LE: loop exit
PB: predicated region body
PF: predicated region fallthrough
CT: control target
= control target key end

     0   :  { %s4792_s0 = inlined_call_operand.vmem [shape: f32[4,8,32], index: 0, kind: input, shape index: {}]   ;;  %s4793_s1 = inlined_call_operand.vmem [shape: f32[8,32], index: 1, kind: input, shape index: {}]   ;;  %s4794_s2 = inlined_call_operand.vmem [shape: f32[2,1,32], index: 2, kind: input, shape index: {}]   ;;  %s4795_s3 = inlined_call_operand.vmem [shape: f32[2,1,32], index: 3, kind: input, shape index: {}]   ;;  %s4796_s4 = inlined_call_operand.vmem [shape: f32[2,1,32], index: 4, kind: input, shape index: {}]   ;;  %s4797_s5 = inlined_call_operand.vmem [shape: f32[2,1,32], index: 5, kind: input, shape index: {}]   ;;  %s4798_s6 = inlined_call_operand.vmem [shape: bf16[2,4,32,8], index: 6, kind: input, shape index: {}]   ;;  %s4799_s7 = inlined_call_operand.vmem [shape: bf16[2,4,32,8], index: 7, kind: input, shape index: {}]   ;;  %s4800_s8 = inlined_call_operand.vmem [shape: bf16[2,4,32,8], index: 8, kind: input, shape index: {}]   ;;  %s4801_s9 = inlined_call_operand.vmem [shape: bf16[2,4,8,32], index: 9, kind: input, shape index: {}]   ;;  %s4802_s10 = inlined_call_operand.vmem [shape: f32[2,1,32], index: 10, kind: input, shape index: {}]   ;;  %s4803_s11 = inlined_call_operand.vmem [shape: f32[2,1,32], index: 11, kind: input, shape index: {}]   ;;  %s4804_s12 = inlined_call_operand.vmem [shape: bf16[2,32,128], index: 12, kind: input, shape index: {}]   ;;  %s4805_s13 = inlined_call_operand.vmem [shape: bf16[2,128,32], index: 13, kind: input, shape index: {}]   ;;  %s4806_s14 = inlined_call_operand.vmem [shape: f32[1,32], index: 14, kind: input, shape index: {}]   ;;  %s4807_s15 = inlined_call_operand.vmem [shape: f32[1,32], index: 15, kind: input, shape index: {}]   ;;  %s4808_s16 = inlined_call_operand.hbm [shape: f32[4,8,32], index: 16, kind: output, shape index: {}]  }
   0x1   :  { %4812 = sst [smem:[#allocation8_spill]] %s4792_s0 }
   0x2   :  { %4813 = sst [smem:[#allocation9_spill]] %s4793_s1 }
   0x3   :  { %4814 = sst [smem:[#allocation10_spill]] %s4794_s2 }
   0x4   :  { %21 = vsyncpa [#allocation3], 0 }
   0x5   :  { %23 = vsyncpa [#allocation3 + $0x1], 0  ;;  %s4121_s21 = smov 0   ;;  %s4123_s22 = smov 0  }
   0x6   :  { %s4125_s23 = smov 0   ;;  %s4127_s24 = smov 0  }
   0x7 LB: > { %4815 = sst [smem:[#allocation5_spill]] %s4027_s23  ;;  %s4142_s25 = sadd.s32 4294967295, %s4031_s24   ;;  %s4031_s24 = sphi %s4127_s24, %s4823_s24   ;;  %s4027_s23 = sphi %s4125_s23, %s4828_s23   ;;  %s4023_s22 = sphi %s4123_s22, %s4827_s22   ;;  %s4019_s21 = sphi %s4121_s21, %s4826_s21  }
   0x8   : > { %s3264_s26 = sadd.s32 4294967294, %s4031_s24   ;;  %s4146_s27 = sadd.s32 1, %s4031_s24  }
   0x9   : > { %4816 = sst [smem:[#allocation6_spill]] %s4146_s27  ;;  %s377_s28 = sadd.s32 1, %s4027_s23 }
   0xa   : > { %s374_s29 = ssub.s32 %s4031_s24, %s4146_s27  ;;  %p387_p0 = scmp.ne.s32.totalorder %s4027_s23, %s4023_s22 }
   0xb   : > { %p375_p1 = scmp.eq.s32.totalorder %s374_s29, 0  ;;  %p388_p2 = scmp.eq.s32.totalorder %s4142_s25, 1 }
   0xc   : > { %p393_p3 = scmp.ne.s32.totalorder %s4023_s22, %s4019_s21  ;;  %p394_p4 = scmp.eq.s32.totalorder %s3264_s26, 1 }
   0xd   : > { %s4157_s30 = scalar_select %p375_p1, %s4027_s23, %s377_s28  }
   0xe   : > { %p4159_p5 = por %p388_p2, %p387_p0  ;;  %p4163_p6 = por %p394_p4, %p393_p3 }
   0xf   : > { %4817 = sst [smem:[#allocation7_spill]] %s4157_s30  ;;  %p3267_p7 = scmp.ge.s32.totalorder %s4031_s24, 1 }
  0x10   : > { %p466_p8 = scmp.lt.s32.totalorder %s4031_s24, 3 }
  0x12   : > { %p467_p9 = pnand %p3267_p7, %p466_p8 }
  0x13   : > { %s4820_s1 = sld [smem:[#allocation9_spill]] (!%p467_p9)  ;;  %s3269_s20 = sshll.u32 (!%p467_p9), %s4142_s25, 1 }
  0x14   : > { %470 = sbr.rel (%p467_p9) target bundleno = 6640 (0x19f0), region = 84  ;;  %p517_p10 = scmp.lt.s32.totalorder (!%p467_p9), %s3269_s20, 3 }
  0x15   : > { %s4821_s30 = sld [smem:[#allocation8_spill]] (!%p467_p9)  ;;  %s513_s28 = sand.u32 (!%p467_p9), 1, %s4023_s22  }
  0x16   : > { %s4822_s2 = sld [smem:[#allocation10_spill]] (!%p467_p9)  ;;  %s3815_s18 = sshll.u32 (!%p467_p9), %s4142_s25, 4 }
  0x17   : > { %s3187_s25 = scalar_lea.sflag (!%p467_p9), [#allocation3], %s513_s28 }
  0x19   : > { %v526_v0 = vld [vmem:[%s4820_s1] sm:$0xff]  ;;  %vm529_vm0 = vcmask 261120   ;;  %s4830_s20 = smov (!%p517_p10, %s3269_s20), 3  ;;  %v4033_v6 = vmov 32.0   ;;  %v3748_v28 = vld [vmem:[%s4798_s6 + $0x8] sm:$0xff]  ;;  %vm750_vm11 = vcmask 64512  }
  0x1a   : > { %v593_v1 = vsel %vm529_vm0, %v526_v0, 0.0  ;;  %s3270_s26 = sshll.u32 %s4830_s20, 3  ;;  %3872 = vrcp.f32 %v4033_v6  ;;  %651 = vmatpush.bf16.msra.mxu1 %v3748_v28  ;;  %v3747_v29 = vld [vmem:[%s4798_s6] sm:$0xff]  ;;  %v3752_v30 = vld [vmem:[%s4800_s8 + $0x8] sm:$0xff]  ;;  %vm794_vm12 = vcmask 130048   ;;  %vm1100_vm13 = vcmask 1043456  }
  0x1b   : > { %594 = vadd.xlane.f32.xlu0 %v593_v1  ;;  %s520_s23 = scalar_lea.vmem %s4821_s30, %s3270_s26  ;;  %722 = vmatpush.bf16.msra.mxu2 %v3752_v30  ;;  %v3751_v33 = vld [vmem:[%s4800_s8] sm:$0xff]  ;;  %v3750_v35 = vld [vmem:[%s4799_s7 + $0x8] sm:$0xff]  ;;  %s3268_s30 = sshll.u32 %s513_s28, 4 }
  0x1c   : > { %v524_v2 = vld [vmem:[%s520_s23] sm:$0xff]  ;;  %v525_v3 = vld [vmem:[%s520_s23 + $0x8] sm:$0xff]  ;;  %s3198_s26 = scalar_lea.hbm %s4808_s16, %s3815_s18  ;;  %s515_s29 = scalar_lea.vmem [#allocation2], %s3268_s30 }
  0x1d   : > { %v530_v4 = vsel %vm529_vm0, %v524_v2, 0.0  ;;  %v533_v5 = vsel %vm529_vm0, %v525_v3, 0.0  ;;  %v3749_v38 = vld [vmem:[%s4799_s7] sm:$0xff]  ;;  %s3201_s27 = sshll.u32 %s3198_s26, 4  ;;  %s3989_s20 = scalar_lea.hbm %s4808_s16, 32  ;;  %s3202_s27 = int_to_ptr.hbm [resolvable:$true] %s3201_s27 }
  0x1e   : > { %534 = vadd.xlane.f32.xlu1 %v533_v5  ;;  %652 = vmatpush.bf16.msra.mxu1 %v3747_v29  ;;  %v3858_v51 = vld [vmem:[%s4796_s4] ss:$0 sm:$0xff]  ;;  %s3983_s23 = sshra.s32 %s3202_s27, 4  ;;  %s3984_s23 = int_to_ptr.hbm [resolvable:$true] %s3983_s23 }
  0x1f   : > { %723 = vmatpush.bf16.msra.mxu2 %v3751_v33  ;;  %v3863_v55 = vld [vmem:[%s4797_s5] ss:$0 sm:$0xff]  ;;  %s3985_s19 = scalar_lea.hbm %s3984_s23, 16  ;;  %p3990_p0 = scmp.lt.s32.totalorder %s3984_s23, %s4808_s16 }
  0x20   : > { %v3873_v7 = vpop.eup %3872  ;;  %v3859_v63 = vld [vmem:[%s4822_s2] ss:$0 sm:$0xff]  ;;  %p3986_p11 = scmp.ne.s32.totalorder %s3984_s23, %s3985_s19  ;;  %p3991_p1 = scmp.lt.s32.totalorder %s3989_s20, %s3985_s19 }
  0x21   : > { %v537_v8 = vmul.f32 32.0, %v3873_v7  ;;  %vm541_vm1 = vweird.f32 %v3873_v7 }
  0x22   : > { %687 = vmatpush.bf16.msrb.mxu1 %v3750_v35  ;;  %p3987_p12 = pnand %p3986_p11, %p4159_p5  ;;  %p3992_p2 = por %p3991_p1, %p3990_p0 }
  0x23   : > { %531 = vadd.xlane.f32.xlu0 %v530_v4  ;;  %v538_v9 = vsub.f32 1.0, %v537_v8  ;;  %v3860_v4 = vld [vmem:[%s4795_s3] ss:$0 sm:$0xff] }
  0x24   : > { %p3988_p13 = pneg %p3987_p12 }
  0x25   : > { %v539_v10 = vmul.f32 %v3873_v7, %v538_v9 }
  0x26   : > { %688 = vmatpush.bf16.msrb.mxu1 %v3749_v38  ;;  %p3993_p3 = pnand %p3992_p2, %p3988_p13 }
  0x27   : > { %v540_v11 = vadd.f32 %v3873_v7, %v539_v10 }
  0x29   : > { %v4179_v12 = vsel %vm541_vm1, %v3873_v7, %v540_v11  ;;  %v3755_v7 = vld [vmem:[%s4799_s7 + $0x10] sm:$0xff] }
  0x8e   : > { %v595_v13 = vpop.xlane.xlu0 %594 }
  0x8f   : > { %v596_v14 = vmul.f32 %v595_v13, %v4179_v12 }
  0x91   : > { %v597_v15 = vsub.f32 %v526_v0, %v596_v14  ;;  %v535_v18 = vpop.xlane.xlu1 %534 }
  0x92   : > { %v544_v21 = vmul.f32 %v4179_v12, %v535_v18 }
  0x93   : > { %v598_v16 = vmul.f32 %v597_v15, %v597_v15 }
  0x94   : > { %v4187_v23 = vsub.f32 %v525_v3, %v544_v21  ;;  %v3756_v3 = vld [vmem:[%s4799_s7 + $0x18] sm:$0xff] }
  0x95   : > { %v599_v17 = vsel %vm529_vm0, %v598_v16, 0.0  ;;  %919 = vmatpush.bf16.msrb.mxu2 %v3756_v3  ;;  %v3753_v16 = vld [vmem:[%s4798_s6 + $0x10] sm:$0xff] }
  0x96   : > { %600 = vadd.xlane.f32.xlu1 %v599_v17  ;;  %v532_v19 = vpop.xlane.xlu0 %531  ;;  %v548_v26 = vmul.f32 %v4187_v23, %v4187_v23 }
  0x97   : > { %v543_v20 = vmul.f32 %v4179_v12, %v532_v19 }
  0x98   : > { %v552_v27 = vsel %vm529_vm0, %v548_v26, 0.0 }
  0x99   : > { %v4185_v22 = vsub.f32 %v524_v2, %v543_v20  ;;  %920 = vmatpush.bf16.msrb.mxu2 %v3755_v7 }
  0x9b   : > { %v547_v24 = vmul.f32 %v4185_v22, %v4185_v22 }
  0x9d   : > { %v549_v25 = vsel %vm529_vm0, %v547_v24, 0.0 }
  0x9e   : > { %550 = vadd.xlane.f32.xlu2 %v549_v25 }
  0xa6   : > { %553 = vadd.xlane.f32.xlu2 %v552_v27 }
 0x109   : > { %v601_v31 = vpop.xlane.xlu1 %600 }
 0x10a   : > { %v602_v32 = vmul.f32 %v601_v31, %v4179_v12 }
 0x10c   : > { %v603_v34 = vadd.f32 1e-05, %v602_v32 }
 0x10e   : > { %3874 = vrsqrt.f32 %v603_v34  ;;  %vm610_vm3 = vweird.f32 %v603_v34 }
 0x111   : > { %v551_v36 = vpop.xlane.xlu2 %550 }
 0x112   : > { %v555_v37 = vmul.f32 %v551_v36, %v4179_v12 }
 0x114   : > { %v3875_v39 = vpop.eup %3874  ;;  %v557_v40 = vadd.f32 1e-05, %v555_v37 }
 0x115   : > { %v605_v41 = vmul.f32 %v3875_v39, %v603_v34  ;;  %vm611_vm2 = vweird.f32 %v3875_v39 }
 0x116   : > { %3876 = vrsqrt.f32 %v557_v40  ;;  %vm612_vm4 = vmor %vm610_vm3, %vm611_vm2  ;;  %vm565_vm5 = vweird.f32 %v557_v40 }
 0x117   : > { %v606_v42 = vmul.f32 %v3875_v39, %v605_v41 }
 0x119   : > { %v607_v43 = vmul.f32 0.5, %v606_v42  ;;  %v554_v44 = vpop.xlane.xlu2 %553 }
 0x11a   : > { %v556_v45 = vmul.f32 %v554_v44, %v4179_v12 }
 0x11b   : > { %v608_v46 = vsub.f32 1.5, %v607_v43 }
 0x11c   : > { %v3877_v47 = vpop.eup %3876  ;;  %v558_v48 = vadd.f32 1e-05, %v556_v45 }
 0x11d   : > { %v609_v49 = vmul.f32 %v3875_v39, %v608_v46  ;;  %v560_v50 = vmul.f32 %v3877_v47, %v557_v40  ;;  %vm566_vm6 = vweird.f32 %v3877_v47 }
 0x11e   : > { %3878 = vrsqrt.f32 %v558_v48  ;;  %vm567_vm7 = vmor %vm565_vm5, %vm566_vm6  ;;  %vm575_vm8 = vweird.f32 %v558_v48 }
 0x11f   : > { %v613_v52 = vsel %vm612_vm4, %v3875_v39, %v609_v49  ;;  %v561_v53 = vmul.f32 %v3877_v47, %v560_v50 }
 0x120   : > { %v614_v54 = vmul.f32 %v613_v52, %v597_v15  ;;  %v3754_v15 = vld [vmem:[%s4798_s6 + $0x18] sm:$0xff] }
 0x121   : > { %v562_v56 = vmul.f32 0.5, %v561_v53 }
 0x122   : > { %v618_v57 = vmul.f32 %v3858_v51, %v614_v54 }
 0x123   : > { %v563_v58 = vsub.f32 1.5, %v562_v56 }
 0x124   : > { %v3879_v59 = vpop.eup %3878  ;;  %v622_v60 = vadd.f32 %v3863_v55, %v618_v57 }
 0x125   : > { %v564_v61 = vmul.f32 %v3877_v47, %v563_v58  ;;  %v570_v62 = vmul.f32 %v3879_v59, %v558_v48  ;;  %vm576_vm9 = vweird.f32 %v3879_v59 }
 0x126   : > { %v4225_v0 = vpack.c.bf16 %v622_v60, %v622_v60  ;;  %vm577_vm10 = vmor %vm575_vm8, %vm576_vm9 }
 0x127   : > { %v568_v1 = vsel %vm567_vm7, %v3877_v47, %v564_v61  ;;  %v571_v2 = vmul.f32 %v3879_v59, %v570_v62 }
 0x128   : > { %v4234_v5 = vmul.f32 %v568_v1, %v4185_v22  ;;  %3279 = vmatmul.msk.bf16.vlgmr.msra.gmra.mxu1 %vm529_vm0, %v4225_v0 }
 0x129   : > { %v572_v6 = vmul.f32 0.5, %v571_v2  ;;  %888 = vmatpush.bf16.msra.mxu1 %v3754_v15 }
 0x12a   : > { %v584_v8 = vmul.f32 %v3859_v63, %v4234_v5 }
 0x12b   : > { %v573_v9 = vsub.f32 1.5, %v572_v6 }
 0x12c   : > { %v589_v10 = vadd.f32 %v3860_v4, %v584_v8 }
 0x12d   : > { %v574_v11 = vmul.f32 %v3879_v59, %v573_v9  ;;  %889 = vmatpush.bf16.msra.mxu1 %v3753_v16 }
 0x12e   : > { %v4242_v13 = vpack.c.bf16 %v622_v60, %v589_v10 }
 0x12f   : > { %v578_v14 = vsel %vm577_vm10, %v3879_v59, %v574_v11 }
 0x130   : > { %3298 = vmatmul.msk.bf16.vlgmr.msra.gmra.mxu2 %vm529_vm0, %v4242_v13  ;;  %v4253_v17 = vmul.f32 %v578_v14, %v4187_v23 }
 0x132   : > { %v585_v18 = vmul.f32 %v3859_v63, %v4253_v17 }
 0x134   : > { %v590_v19 = vadd.f32 %v3860_v4, %v585_v18 }
 0x136   : > { %v4258_v20 = vpack.c.bf16 %v622_v60, %v590_v19 }
 0x138   : > { %3288 = vmatmul.msk.bf16.vlgmr.msrb.gmra.mxu1 %vm529_vm0, %v4242_v13 }
 0x140   : > { %3299 = vmatmul.msk.bf16.gmra.mxu2 %vm529_vm0, %v4258_v20 }
 0x148   : > { %3289 = vmatmul.msk.bf16.gmra.mxu1 %vm529_vm0, %v4258_v20 }
 0x150   : > { %3329 = vmatmul.msk.bf16.vlgmr.msrb.gmra.mxu2 %vm529_vm0, %v4242_v13 }
 0x158   : > { %3316 = vmatmul.msk.bf16.vlgmr.msra.gmra.mxu1 %vm529_vm0, %v4225_v0 }
 0x160   : > { %3330 = vmatmul.msk.bf16.gmra.mxu2 %vm529_vm0, %v4258_v20 }
 0x1a5   : > { %v654_v21 = vpop.f32.mrf.mxu1 }
 0x1a6   : > { %v735_v40 = vpack.c.bf16 %v654_v21, %v654_v21 }
 0x1ad   : > { %v656_v22 = vpop.f32.mrf.mxu1 }
 0x1ae   : > { %v736_v55 = vpack.c.bf16 %v656_v22, %v656_v22 }
 0x1b3   : > { %v725_v23 = vpop.f32.mrf.mxu2 }
 0x1b4   : > { %v741_v29 = vpack.c.bf16 %v725_v23, %v725_v23 }
 0x1b5   : > { %v690_v24 = vpop.f32.mrf.mxu1 }
 0x1b6   : > { %v737_v26 = vpack.c.bf16 %v690_v24, %v690_v24  ;;  %v821_v34 = vunpack.c.l.b16 %v741_v29 }
 0x1b8   : > { %v747_v31 = vunpack.c.l.b16 %v737_v26 }
 0x1bb   : > { %v727_v25 = vpop.f32.mrf.mxu2 }
 0x1bc   : > { %v742_v27 = vpack.c.bf16 %v727_v25, %v727_v25 }
 0x1bd   : > { %v692_v28 = vpop.f32.mrf.mxu1 }
 0x1be   : > { %v738_v30 = vpack.c.bf16 %v692_v28, %v692_v28  ;;  %v822_v32 = vunpack.c.l.b16 %v742_v27 }
 0x1c0   : > { %v748_v33 = vunpack.c.l.b16 %v738_v30  ;;  %v823_v38 = vpack.c.b16 %v822_v32, %v821_v34 }
 0x1c2   : > { %v749_v35 = vpack.c.b16 %v748_v33, %v747_v31 }
 0x1c3   : > { %v730_v36 = vpop.f32.mrf.mxu2 }
 0x1c4   : > { %v755_v37 = vsel %vm750_vm11, %v749_v35, 0  ;;  %v743_v45 = vpack.c.bf16 %v730_v36, %v730_v36 }
 0x1c5   : > { %v695_v39 = vpop.f32.mrf.mxu1  ;;  %764 = vmatpush.bf16.xpose.msra.mxu3 %v755_v37 }
 0x1c6   : > { %v739_v42 = vpack.c.bf16 %v695_v39, %v695_v39  ;;  %v843_v50 = vunpack.c.l.b16 %v743_v45 }
 0x1c8   : > { %v772_v47 = vunpack.c.l.b16 %v739_v42 }
 0x1cb   : > { %v732_v41 = vpop.f32.mrf.mxu2 }
 0x1cc   : > { %v744_v43 = vpack.c.bf16 %v732_v41, %v732_v41  ;;  %3300 = vmatmul.msk.bf16.vlgmr.msra.gmra.mxu3 %vm750_vm11, %v735_v40  ;;  %v3758_v40 = vld [vmem:[%s4800_s8 + $0x18] sm:$0xff]  ;;  %v3757_v41 = vld [vmem:[%s4800_s8 + $0x10] sm:$0xff] }
 0x1cd   : > { %835 = vmatpush.bf16.msrb.mxu3 %v823_v38  ;;  %v697_v44 = vpop.f32.mrf.mxu1 }
 0x1ce   : > { %v740_v46 = vpack.c.bf16 %v697_v44, %v697_v44  ;;  %v844_v48 = vunpack.c.l.b16 %v744_v43 }
 0x1d0   : > { %v773_v49 = vunpack.c.l.b16 %v740_v46  ;;  %v845_v54 = vpack.c.b16 %v844_v48, %v843_v50 }
 0x1d1   : > { %955 = vmatpush.bf16.msra.mxu3 %v3758_v40 }
 0x1d2   : > { %v774_v51 = vpack.c.b16 %v773_v49, %v772_v47 }
 0x1d3   : > { %v922_v52 = vpop.f32.mrf.mxu2 }
 0x1d4   : > { %v779_v53 = vsel %vm750_vm11, %v774_v51, 0  ;;  %v970_v56 = vpack.c.bf16 %v922_v52, %v922_v52  ;;  %v864_v51 = vld [vmem:[%s4801_s9] sm:$0xf] }
 0x1d5   : > { %788 = vmatpush.bf16.xpose.msra.mxu0 %v779_v53  ;;  %v4275_v2 = vpop.f32.mrf.mxu1  ;;  %956 = vmatpush.bf16.msra.mxu3 %v3757_v41  ;;  %v1122_v52 = vsel %vm1100_vm13, %v864_v51, 0 }
 0x1d6   : > { %v980_v59 = vunpack.c.l.b16 %v970_v56  ;;  %v968_v50 = vpack.c.bf16 %v4275_v2, %v4275_v2 }
 0x1db   : > { %v924_v57 = vpop.f32.mrf.mxu2 }
 0x1dc   : > { %v971_v58 = vpack.c.bf16 %v924_v57, %v924_v57  ;;  %3301 = vmatmul.msk.bf16.vlgmr.msra.gmra.mxu0 %vm750_vm11, %v736_v55 }
 0x1dd   : > { %857 = vmatpush.bf16.msrb.mxu0 %v845_v54  ;;  %v893_v10 = vpop.f32.mrf.mxu1 }
 0x1de   : > { %v981_v60 = vunpack.c.l.b16 %v971_v58  ;;  %v969_v11 = vpack.c.bf16 %v893_v10, %v893_v10 }
 0x1e0   : > { %v982_v61 = vpack.c.b16 %v981_v60, %v980_v59 }
 0x1e2   : > { %v987_v62 = vsel %vm750_vm11, %v982_v61, 0 }
 0x1e3   : > { %v927_v63 = vpop.f32.mrf.mxu2  ;;  %996 = vmatpush.bf16.xpose.msra.mxu0 %v987_v62 }
 0x1e4   : > { %v972_v1 = vpack.c.bf16 %v927_v63, %v927_v63 }
 0x1e6   : > { %v1004_v6 = vunpack.c.l.b16 %v972_v1 }
 0x1eb   : > { %v929_v3 = vpop.f32.mrf.mxu2 }
 0x1ec   : > { %v973_v4 = vpack.c.bf16 %v929_v3, %v929_v3 }
 0x1ee   : > { %v1005_v7 = vunpack.c.l.b16 %v973_v4 }
 0x1f0   : > { %v1006_v8 = vpack.c.b16 %v1005_v7, %v1004_v6 }
 0x1f2   : > { %v1011_v9 = vsel %vm750_vm11, %v1006_v8, 0 }
 0x1f3   : > { %1020 = vmatpush.bf16.xpose.msrb.mxu1 %v1011_v9 }
 0x1fa   : > { %3346 = vmatmul.msk.bf16.vlgmr.msrb.gmra.mxu1 %vm750_vm11, %v969_v11 }
 0x24f   : > { %v766_v14 = vpop.f32.mrf.mxu3 }
 0x250   : > { %v795_v15 = vsel %vm794_vm12, %v766_v14, -inf }
 0x251   : > { %796 = vmax.xlane.f32.xlu1 %v795_v15 }
 0x257   : > { %v768_v16 = vpop.f32.mrf.mxu3 }
 0x259   : > { %v790_v18 = vpop.f32.mrf.mxu0 }
 0x25a   : > { %v798_v19 = vsel %vm794_vm12, %v790_v18, -inf }
 0x25b   : > { %799 = vmax.xlane.f32.xlu0 %v798_v19 }
 0x261   : > { %v792_v21 = vpop.f32.mrf.mxu0 }
 0x277   : > { %v1022_v22 = vpop.f32.mrf.mxu1 }
 0x278   : > { %v1029_v23 = vsel %vm794_vm12, %v1022_v22, -inf }
 0x279   : > { %1030 = vmax.xlane.f32.xlu1 %v1029_v23 }
 0x27f   : > { %v1024_v24 = vpop.f32.mrf.mxu1 }
 0x2c4   : > { %v797_v25 = vpop.xlane.xlu1 %796 }
 0x2c5   : > { %v801_v26 = vsub.f32 %v766_v14, %v797_v25 }
 0x2c7   : > { %v803_v27 = vmul.f32 1.442695, %v801_v26 }
 0x2c9   : > { %3880 = vpow2.f32 %v803_v27 }
 0x2ce   : > { %v800_v28 = vpop.xlane.xlu0 %799 }
 0x2cf   : > { %v3881_v29 = vpop.eup %3880  ;;  %v802_v30 = vsub.f32 %v790_v18, %v800_v28  ;;  %v3762_v18 = vld [vmem:[%s4799_s7 + $0x28] sm:$0xff] }
 0x2d0   : > { %v807_v31 = vsel %vm794_vm12, %v3881_v29, 0.0 }
 0x2d1   : > { %v805_v32 = vmul.f32 1.442695, %v802_v30  ;;  %808 = vadd.xlane.f32.xlu0 %v807_v31 }
 0x2d3   : > { %3882 = vpow2.f32 %v805_v32 }
 0x2d9   : > { %v3883_v33 = vpop.eup %3882 }
 0x2da   : > { %v810_v34 = vsel %vm794_vm12, %v3883_v33, 0.0 }
 0x2db   : > { %811 = vadd.xlane.f32.xlu2 %v810_v34 }
 0x2ec   : > { %v1031_v35 = vpop.xlane.xlu1 %1030 }
 0x2ed   : > { %v1033_v36 = vsub.f32 %v1022_v22, %v1031_v35  ;;  %v3761_v22 = vld [vmem:[%s4799_s7 + $0x20] sm:$0xff] }
 0x2ef   : > { %v1036_v37 = vmul.f32 1.442695, %v1033_v36 }
 0x2f1   : > { %3884 = vpow2.f32 %v1036_v37 }
 0x2f7   : > { %v3885_v38 = vpop.eup %3884 }
 0x2f8   : > { %v1041_v39 = vsel %vm794_vm12, %v3885_v38, 0.0 }
 0x2f9   : > { %1042 = vadd.xlane.f32.xlu0 %v1041_v39  ;;  %v3759_v39 = vld [vmem:[%s4798_s6 + $0x20] sm:$0xff] }
 0x344   : > { %v809_v42 = vpop.xlane.xlu0 %808 }
 0x345   : > { %3886 = vrcp.f32 %v809_v42 }
 0x34b   : > { %v3887_v43 = vpop.eup %3886 }
 0x34c   : > { %v815_v44 = vmul.f32 %v3887_v43, %v3881_v29 }
 0x34e   : > { %v812_v45 = vpop.xlane.xlu2 %811  ;;  %v817_v46 = vpack.c.bf16 %v815_v44, %v815_v44 }
 0x34f   : > { %3888 = vrcp.f32 %v812_v45 }
 0x350   : > { %3302 = vmatmul.msk.bf16.vlgmr.msrb.gmra.mxu3 %vm794_vm12, %v817_v46 }
 0x351   : > { %1131 = vmatpush.bf16.msrb.mxu3 %v1122_v52  ;;  %v3349_v52 = vld [vmem:[%s4801_s9 + $0x4] sm:$0xf] }
 0x355   : > { %v3889_v47 = vpop.eup %3888 }
 0x356   : > { %v816_v48 = vmul.f32 %v3889_v47, %v3883_v33 }
 0x358   : > { %v818_v49 = vpack.c.bf16 %v816_v48, %v816_v48 }
 0x35a   : > { %3303 = vmatmul.msk.bf16.vlgmr.msrb.gmra.mxu0 %vm794_vm12, %v818_v49 }
 0x360   : > { %3343 = vmatmul.msk.bf16.vlgmr.msra.gmra.mxu3 %vm529_vm0, %v4242_v13 }
 0x36a   : > { %3345 = vmatmul.msk.bf16.vlgmr.msra.gmra.mxu0 %vm750_vm11, %v968_v50 }
 0x36c   : > { %v1043_v6 = vpop.xlane.xlu0 %1042 }
 0x36d   : > { %3890 = vrcp.f32 %v1043_v6 }
 0x370   : > { %3344 = vmatmul.msk.bf16.gmra.mxu3 %vm529_vm0, %v4258_v20 }
 0x373   : > { %v3891_v10 = vpop.eup %3890 }
 0x374   : > { %v1047_v16 = vmul.f32 %v3891_v10, %v3885_v38  ;;  %v3760_v38 = vld [vmem:[%s4798_s6 + $0x28] sm:$0xff] }
 0x376   : > { %v1049_v21 = vpack.c.bf16 %v1047_v16, %v1047_v16 }
 0x3d3   : > { %v837_v53 = vpop.f32.mrf.mxu3 }
 0x3d7   : > { %v859_v54 = vpop.f32.mrf.mxu0 }
 0x3d8   : > { %v863_v55 = vpack.c.bf16 %v859_v54, %v837_v53  ;;  %v1102_v53 = vsel %vm1100_vm13, %v3349_v52, 0  ;;  %v3764_v54 = vld [vmem:[%s4800_s8 + $0x28] sm:$0xff] }
 0x3d9   : > { %1111 = vmatpush.bf16.msra.mxu2 %v1102_v53  ;;  %v3397_v52 = vld [vmem:[%s4801_s9 + $0x8] sm:$0xf] }
 0x3da   : > { %3351 = vmatmul.msk.bf16.vlgmr.msrb.gmra.mxu3 %vm750_vm11, %v863_v55  ;;  %v3763_v55 = vld [vmem:[%s4800_s8 + $0x20] sm:$0xff]  ;;  %v1374_v53 = vsel %vm1100_vm13, %v3397_v52, 0 }
 0x3db   : > { %v839_v56 = vpop.f32.mrf.mxu3 }
 0x3dd   : > { %1228 = vmatpush.bf16.msrb.mxu2 %v3764_v54 }
 0x3df   : > { %v861_v57 = vpop.f32.mrf.mxu0 }
 0x3e1   : > { %1229 = vmatpush.bf16.msrb.mxu2 %v3763_v55 }
 0x3e3   : > { %v958_v58 = vpop.f32.mrf.mxu3 }
 0x3e4   : > { %v974_v61 = vpack.c.bf16 %v958_v58, %v958_v58  ;;  %v3766_v58 = vld [vmem:[%s4798_s6 + $0x38] sm:$0xff] }
 0x3e6   : > { %v1052_v1 = vunpack.c.l.b16 %v974_v61 }
 0x3e7   : > { %v998_v59 = vpop.f32.mrf.mxu0 }
 0x3e8   : > { %v1026_v60 = vsel %vm794_vm12, %v998_v59, -inf }
 0x3e9   : > { %1027 = vmax.xlane.f32.xlu2 %v1026_v60 }
 0x3eb   : > { %v960_v62 = vpop.f32.mrf.mxu3 }
 0x3ec   : > { %v975_v63 = vpack.c.bf16 %v960_v62, %v960_v62 }
 0x3ee   : > { %v1053_v2 = vunpack.c.l.b16 %v975_v63 }
 0x3ef   : > { %v1000_v3 = vpop.f32.mrf.mxu0 }
 0x3f0   : > { %v1054_v4 = vpack.c.b16 %v1053_v2, %v1052_v1 }
 0x3f2   : > { %1066 = vmatpush.bf16.msrb.mxu0 %v1054_v4 }
 0x3f3   : > { %v963_v7 = vpop.f32.mrf.mxu3 }
 0x3f4   : > { %v976_v8 = vpack.c.bf16 %v963_v7, %v963_v7 }
 0x3f6   : > { %v1074_v14 = vunpack.c.l.b16 %v976_v8  ;;  %1161 = vmatpush.bf16.msra.mxu0 %v3760_v38 }
 0x3fa   : > { %1162 = vmatpush.bf16.msra.mxu0 %v3759_v39 }
 0x3fb   : > { %v965_v9 = vpop.f32.mrf.mxu3 }
 0x3fc   : > { %v977_v11 = vpack.c.bf16 %v965_v9, %v965_v9 }
 0x3fe   : > { %v1075_v15 = vunpack.c.l.b16 %v977_v11 }
 0x400   : > { %v1076_v19 = vpack.c.b16 %v1075_v15, %v1074_v14 }
 0x402   : > { %1088 = vmatpush.bf16.msra.mxu1 %v1076_v19 }
 0x405   : > { %3348 = vmatmul.msk.bf16.vlgmr.msra.gmra.mxu1 %vm794_vm12, %v1049_v21 }
 0x406   : > { %1192 = vmatpush.bf16.msrb.mxu1 %v3762_v18 }
 0x40a   : > { %1193 = vmatpush.bf16.msrb.mxu1 %v3761_v22 }
 0x40e   : > { %1383 = vmatpush.bf16.msra.mxu1 %v1374_v53 }
 0x415   : > { %3377 = vmatmul.msk.bf16.vlgmr.msrb.gmra.mxu1 %vm529_vm0, %v4242_v13 }
 0x425   : > { %3378 = vmatmul.msk.bf16.gmra.mxu1 %vm529_vm0, %v4258_v20 }
 0x45c   : > { %v1028_v23 = vpop.xlane.xlu2 %1027 }
 0x45d   : > { %v1032_v24 = vsub.f32 %v998_v59, %v1028_v23  ;;  %v3765_v59 = vld [vmem:[%s4798_s6 + $0x30] sm:$0xff]  ;;  %v4354_v2 = vpop.f32.mrf.mxu3 }
 0x45f   : > { %v1034_v25 = vmul.f32 1.442695, %v1032_v24 }
 0x461   : > { %3892 = vpow2.f32 %v1034_v25 }
 0x465   : > { %v4358_v4 = vpop.f32.mrf.mxu3 }
 0x467   : > { %v3893_v26 = vpop.eup %3892 }
 0x468   : > { %v1038_v27 = vsel %vm794_vm12, %v3893_v26, 0.0 }
 0x469   : > { %1039 = vadd.xlane.f32.xlu1 %v1038_v27 }
 0x482   : > { %v1090_v28 = vpop.f32.mrf.mxu1 }
 0x48a   : > { %v1092_v29 = vpop.f32.mrf.mxu1 }
 0x492   : > { %v1195_v30 = vpop.f32.mrf.mxu1 }
 0x493   : > { %v1243_v31 = vpack.c.bf16 %v1195_v30, %v1195_v30 }
 0x495   : > { %v1253_v34 = vunpack.c.l.b16 %v1243_v31 }
 0x49a   : > { %v1197_v32 = vpop.f32.mrf.mxu1 }
 0x49b   : > { %v1244_v33 = vpack.c.bf16 %v1197_v32, %v1197_v32 }
 0x49d   : > { %v1254_v35 = vunpack.c.l.b16 %v1244_v33 }
 0x49f   : > { %v1255_v36 = vpack.c.b16 %v1254_v35, %v1253_v34 }
 0x4a1   : > { %v1260_v37 = vsel %vm750_vm11, %v1255_v36, 0 }
 0x4a2   : > { %1269 = vmatpush.bf16.xpose.msra.mxu3 %v1260_v37  ;;  %v1200_v40 = vpop.f32.mrf.mxu1 }
 0x4a3   : > { %v1245_v44 = vpack.c.bf16 %v1200_v40, %v1200_v40  ;;  %v3768_v40 = vld [vmem:[%s4799_s7 + $0x38] sm:$0xff] }
 0x4a5   : > { %v1277_v46 = vunpack.c.l.b16 %v1245_v44 }
 0x4aa   : > { %v1202_v41 = vpop.f32.mrf.mxu1 }
 0x4ab   : > { %v1246_v42 = vpack.c.bf16 %v1202_v41, %v1202_v41  ;;  %v3770_v41 = vld [vmem:[%s4800_s8 + $0x38] sm:$0xff] }
 0x4ad   : > { %v1278_v45 = vunpack.c.l.b16 %v1246_v42  ;;  %v3767_v42 = vld [vmem:[%s4799_s7 + $0x30] sm:$0xff] }
 0x4af   : > { %v1279_v48 = vpack.c.b16 %v1278_v45, %v1277_v46 }
 0x4b1   : > { %v1284_v51 = vsel %vm750_vm11, %v1279_v48, 0 }
 0x4dc   : > { %v1040_v43 = vpop.xlane.xlu1 %1039 }
 0x4dd   : > { %3894 = vrcp.f32 %v1040_v43  ;;  %v3769_v43 = vld [vmem:[%s4800_s8 + $0x30] sm:$0xff] }
 0x4e3   : > { %v3895_v47 = vpop.eup %3894 }
 0x4e4   : > { %v1046_v49 = vmul.f32 %v3895_v47, %v3893_v26 }
 0x4e6   : > { %v1048_v50 = vpack.c.bf16 %v1046_v49, %v1046_v49 }
 0x4e8   : > { %3347 = vmatmul.msk.bf16.vlgmr.msrb.gmra.mxu0 %vm794_vm12, %v1048_v50 }
 0x4e9   : > { %1293 = vmatpush.bf16.xpose.msrb.mxu0 %v1284_v51 }
 0x4f8   : > { %3364 = vmatmul.msk.bf16.vlgmr.msra.gmra.mxu0 %vm529_vm0, %v4225_v0 }
 0x565   : > { %v1068_v56 = vpop.f32.mrf.mxu0 }
 0x566   : > { %v1094_v57 = vpack.c.bf16 %v1090_v28, %v1068_v56 }
 0x568   : > { %3350 = vmatmul.msk.bf16.vlgmr.msra.gmra.mxu2 %vm750_vm11, %v1094_v57 }
 0x569   : > { %1415 = vmatpush.bf16.msra.mxu2 %v3766_v58 }
 0x56d   : > { %v1070_v60 = vpop.f32.mrf.mxu0  ;;  %1416 = vmatpush.bf16.msra.mxu2 %v3765_v59 }
 0x575   : > { %v1164_v61 = vpop.f32.mrf.mxu0 }
 0x576   : > { %v1241_v62 = vpack.c.bf16 %v1164_v61, %v1164_v61 }
 0x578   : > { %3391 = vmatmul.msk.bf16.vlgmr.msrb.gmra.mxu2 %vm529_vm0, %v4242_v13  ;;  %3393 = vmatmul.msk.bf16.vlgmr.msra.gmra.mxu3 %vm750_vm11, %v1241_v62 }
 0x57d   : > { %v1166_v63 = vpop.f32.mrf.mxu0 }
 0x57e   : > { %v1242_v1 = vpack.c.bf16 %v1166_v63, %v1166_v63 }
 0x580   : > { %3394 = vmatmul.msk.bf16.vlgmr.msrb.gmra.mxu0 %vm750_vm11, %v1242_v1 }
 0x588   : > { %3392 = vmatmul.msk.bf16.gmra.mxu2 %vm529_vm0, %v4258_v20 }
 0x598   : > { %3411 = vmatmul.msk.bf16.vlgmr.msra.gmra.mxu2 %vm529_vm0, %v4225_v0 }
 0x5eb   : > { %v4356_v3 = vpop.f32.mrf.mxu2 }
 0x5f3   : > { %v4360_v6 = vpop.f32.mrf.mxu2 }
 0x5fb   : > { %v1231_v7 = vpop.f32.mrf.mxu2  ;;  %v1271_v8 = vpop.f32.mrf.mxu3 }
 0x5fc   : > { %v1299_v9 = vsel %vm794_vm12, %v1271_v8, -inf  ;;  %v1247_v14 = vpack.c.bf16 %v1231_v7, %v1231_v7 }
 0x5fd   : > { %1300 = vmax.xlane.f32.xlu2 %v1299_v9  ;;  %v1295_v10 = vpop.f32.mrf.mxu0 }
 0x5fe   : > { %v1302_v11 = vsel %vm794_vm12, %v1295_v10, -inf  ;;  %v1325_v19 = vunpack.c.l.b16 %v1247_v14 }
 0x5ff   : > { %1303 = vmax.xlane.f32.xlu1 %v1302_v11 }
 0x603   : > { %v1233_v15 = vpop.f32.mrf.mxu2  ;;  %v1273_v0 = vpop.f32.mrf.mxu3 }
 0x604   : > { %v1248_v16 = vpack.c.bf16 %v1233_v15, %v1233_v15 }
 0x605   : > { %v1297_v18 = vpop.f32.mrf.mxu0 }
 0x606   : > { %v1326_v21 = vunpack.c.l.b16 %v1248_v16 }
 0x608   : > { %v1327_v22 = vpack.c.b16 %v1326_v21, %v1325_v19 }
 0x60a   : > { %1339 = vmatpush.bf16.msrb.mxu3 %v1327_v22 }
 0x60b   : > { %v1236_v23 = vpop.f32.mrf.mxu2 }
 0x60c   : > { %v1249_v24 = vpack.c.bf16 %v1236_v23, %v1236_v23 }
 0x60e   : > { %v1347_v27 = vunpack.c.l.b16 %v1249_v24  ;;  %1446 = vmatpush.bf16.msra.mxu3 %v3768_v40 }
 0x612   : > { %1447 = vmatpush.bf16.msra.mxu3 %v3767_v42 }
 0x613   : > { %v1238_v25 = vpop.f32.mrf.mxu2 }
 0x614   : > { %v1250_v26 = vpack.c.bf16 %v1238_v25, %v1238_v25 }
 0x616   : > { %v1348_v28 = vunpack.c.l.b16 %v1250_v26 }
 0x618   : > { %v1349_v29 = vpack.c.b16 %v1348_v28, %v1347_v27 }
 0x61a   : > { %1361 = vmatpush.bf16.msra.mxu0 %v1349_v29 }
 0x61b   : > { %v1418_v18 = vpop.f32.mrf.mxu2 }
 0x61c   : > { %v1495_v21 = vpack.c.bf16 %v1418_v18, %v1418_v18 }
 0x61e   : > { %1482 = vmatpush.bf16.msrb.mxu0 %v3770_v41 }
 0x622   : > { %1483 = vmatpush.bf16.msrb.mxu0 %v3769_v43 }
 0x670   : > { %v1301_v30 = vpop.xlane.xlu2 %1300 }
 0x671   : > { %v1305_v31 = vsub.f32 %v1271_v8, %v1301_v30 }
 0x672   : > { %v1304_v32 = vpop.xlane.xlu1 %1303 }
 0x673   : > { %v1307_v33 = vmul.f32 1.442695, %v1305_v31  ;;  %v1306_v34 = vsub.f32 %v1295_v10, %v1304_v32 }
 0x675   : > { %3896 = vpow2.f32 %v1307_v33  ;;  %v1309_v35 = vmul.f32 1.442695, %v1306_v34  ;;  %v1420_v34 = vpop.f32.mrf.mxu2 }
 0x677   : > { %3898 = vpow2.f32 %v1309_v35  ;;  %v1496_v35 = vpack.c.bf16 %v1420_v34, %v1420_v34 }
 0x67b   : > { %v3897_v36 = vpop.eup %3896 }
 0x67c   : > { %v1311_v37 = vsel %vm794_vm12, %v3897_v36, 0.0 }
 0x67d   : > { %v3899_v38 = vpop.eup %3898  ;;  %1312 = vadd.xlane.f32.xlu0 %v1311_v37 }
 0x67e   : > { %v1314_v39 = vsel %vm794_vm12, %v3899_v38, 0.0 }
 0x67f   : > { %1315 = vadd.xlane.f32.xlu2 %v1314_v39 }
 0x6f0   : > { %v1313_v44 = vpop.xlane.xlu0 %1312 }
 0x6f1   : > { %3900 = vrcp.f32 %v1313_v44 }
 0x6f2   : > { %v1316_v45 = vpop.xlane.xlu2 %1315 }
 0x6f3   : > { %3902 = vrcp.f32 %v1316_v45 }
 0x6f7   : > { %v3901_v46 = vpop.eup %3900 }
 0x6f8   : > { %v1319_v47 = vmul.f32 %v3901_v46, %v3897_v36  ;;  %v1134_v36 = vadd.f32 %v4354_v2, %v4356_v3 }
 0x6f9   : > { %v3903_v48 = vpop.eup %3902 }
 0x6fa   : > { %v1321_v49 = vpack.c.bf16 %v1319_v47, %v1319_v47  ;;  %v1320_v50 = vmul.f32 %v3903_v48, %v3899_v38 }
 0x6fc   : > { %v1322_v51 = vpack.c.bf16 %v1320_v50, %v1320_v50  ;;  %3395 = vmatmul.msk.bf16.vlgmr.msrb.gmra.mxu3 %vm794_vm12, %v1321_v49 }
 0x6fe   : > { %3396 = vmatmul.msk.bf16.vlgmr.msra.gmra.mxu0 %vm794_vm12, %v1322_v51 }
 0x70c   : > { %3424 = vmatmul.msk.bf16.vlgmr.msra.gmra.mxu3 %vm529_vm0, %v4242_v13 }
 0x70e   : > { %3438 = vmatmul.msk.bf16.vlgmr.msrb.gmra.mxu0 %vm529_vm0, %v4242_v13 }
 0x71c   : > { %3425 = vmatmul.msk.bf16.gmra.mxu3 %vm529_vm0, %v4258_v20 }
 0x71e   : > { %3439 = vmatmul.msk.bf16.gmra.mxu0 %vm529_vm0, %v4258_v20 }
 0x77b   : > { %v1363_v54 = vpop.f32.mrf.mxu0 }
 0x77f   : > { %v1341_v55 = vpop.f32.mrf.mxu3 }
 0x780   : > { %v1367_v56 = vpack.c.bf16 %v1363_v54, %v1341_v55 }
 0x782   : > { %3398 = vmatmul.msk.bf16.vlgmr.msra.gmra.mxu1 %vm750_vm11, %v1367_v56 }
 0x783   : > { %v1365_v57 = vpop.f32.mrf.mxu0 }
 0x787   : > { %v1343_v13 = vpop.f32.mrf.mxu3 }
 0x78b   : > { %v1485_v58 = vpop.f32.mrf.mxu0 }
 0x78c   : > { %v1501_v63 = vpack.c.bf16 %v1485_v58, %v1485_v58 }
 0x78e   : > { %v1579_v11 = vunpack.c.l.b16 %v1501_v63 }
 0x78f   : > { %v1449_v59 = vpop.f32.mrf.mxu3 }
 0x790   : > { %v1497_v61 = vpack.c.bf16 %v1449_v59, %v1449_v59 }
 0x792   : > { %v1507_v7 = vunpack.c.l.b16 %v1497_v61  ;;  %v3444_v61 = vld [vmem:[%s4801_s9 + $0xc] sm:$0xf] }
 0x793   : > { %v1487_v60 = vpop.f32.mrf.mxu0 }
 0x794   : > { %v1502_v62 = vpack.c.bf16 %v1487_v60, %v1487_v60 }
 0x796   : > { %v1580_v8 = vunpack.c.l.b16 %v1502_v62  ;;  %v1628_v62 = vsel %vm1100_vm13, %v3444_v61, 0  ;;  %v3778_v61 = vld [vmem:[%s4805_s13 + $0x28] sm:$0xff] }
 0x797   : > { %v1451_v20 = vpop.f32.mrf.mxu3  ;;  %1637 = vmatpush.bf16.msrb.mxu3 %v1628_v62  ;;  %v3777_v62 = vld [vmem:[%s4805_s13 + $0x20] sm:$0xff] }
 0x798   : > { %v1498_v1 = vpack.c.bf16 %v1451_v20, %v1451_v20  ;;  %v1581_v15 = vpack.c.b16 %v1580_v8, %v1579_v11  ;;  %v3968_v11 = vld [vmem:[%s4820_s1] sm:$0xff]  ;;  %s3199_s1 = sshll.u32 %s515_s29, 4  ;;  %s3200_s1 = int_to_ptr.vmem [resolvable:$true] %s3199_s1 }
 0x79a   : > { %v1508_v9 = vunpack.c.l.b16 %v1498_v1 }
 0x79b   : > { %v1490_v10 = vpop.f32.mrf.mxu0 }
 0x79c   : > { %v1509_v14 = vpack.c.b16 %v1508_v9, %v1507_v7  ;;  %v1503_v25 = vpack.c.bf16 %v1490_v10, %v1490_v10 }
 0x79e   : > { %v1514_v0 = vsel %vm750_vm11, %v1509_v14, 0  ;;  %v1601_v30 = vunpack.c.l.b16 %v1503_v25 }
 0x79f   : > { %v1454_v16 = vpop.f32.mrf.mxu3  ;;  %1523 = vmatpush.bf16.xpose.msrb.mxu1 %v1514_v0 }
 0x7a0   : > { %v1499_v22 = vpack.c.bf16 %v1454_v16, %v1454_v16 }
 0x7a2   : > { %v1531_v27 = vunpack.c.l.b16 %v1499_v22 }
 0x7a3   : > { %v1492_v19 = vpop.f32.mrf.mxu0 }
 0x7a4   : > { %v1504_v23 = vpack.c.bf16 %v1492_v19, %v1492_v19 }
 0x7a6   : > { %3440 = vmatmul.msk.bf16.vlgmr.msrb.gmra.mxu1 %vm750_vm11, %v1495_v21  ;;  %v1602_v28 = vunpack.c.l.b16 %v1504_v23 }
 0x7a7   : > { %1593 = vmatpush.bf16.msra.mxu1 %v1581_v15  ;;  %v1456_v24 = vpop.f32.mrf.mxu3  ;;  %v1136_v15 = vadd.f32 %v4358_v4, %v4360_v6 }
 0x7a8   : > { %v1500_v26 = vpack.c.bf16 %v1456_v24, %v1456_v24  ;;  %v1603_v32 = vpack.c.b16 %v1602_v28, %v1601_v30 }
 0x7aa   : > { %v1532_v29 = vunpack.c.l.b16 %v1500_v26 }
 0x7ac   : > { %v1533_v31 = vpack.c.b16 %v1532_v29, %v1531_v27 }
 0x7ae   : > { %v1538_v33 = vsel %vm750_vm11, %v1533_v31, 0  ;;  %v3772_v31 = vld [vmem:[%s4804_s12 + $0x8] sm:$0xff] }
 0x7af   : > { %1547 = vmatpush.bf16.xpose.msrb.mxu2 %v1538_v33  ;;  %1730 = vmatpush.bf16.msra.mxu0 %v3772_v31 }
 0x7b6   : > { %3441 = vmatmul.msk.bf16.vlgmr.msrb.gmra.mxu2 %vm750_vm11, %v1496_v35  ;;  %v3771_v35 = vld [vmem:[%s4804_s12] sm:$0xff] }
 0x7b7   : > { %1615 = vmatpush.bf16.msra.mxu2 %v1603_v32  ;;  %1731 = vmatpush.bf16.msra.mxu0 %v3771_v35 }
 0x7ff   : > { %v1385_v37 = vpop.f32.mrf.mxu1 }
 0x800   : > { %v1390_v38 = vadd.f32 %v1385_v37, %v1134_v36 }
 0x807   : > { %v1387_v39 = vpop.f32.mrf.mxu1 }
 0x808   : > { %v1391_v16 = vadd.f32 %v1387_v39, %v1136_v15 }
 0x823   : > { %v1525_v40 = vpop.f32.mrf.mxu1 }
 0x824   : > { %v1553_v41 = vsel %vm794_vm12, %v1525_v40, -inf }
 0x825   : > { %1554 = vmax.xlane.f32.xlu1 %v1553_v41 }
 0x82b   : > { %v1527_v42 = vpop.f32.mrf.mxu1 }
 0x839   : > { %v1549_v43 = vpop.f32.mrf.mxu2 }
 0x83a   : > { %v1556_v44 = vsel %vm794_vm12, %v1549_v43, -inf }
 0x83b   : > { %1557 = vmax.xlane.f32.xlu0 %v1556_v44 }
 0x841   : > { %v1551_v45 = vpop.f32.mrf.mxu2 }
 0x898   : > { %v1555_v46 = vpop.xlane.xlu1 %1554 }
 0x899   : > { %v1559_v47 = vsub.f32 %v1525_v40, %v1555_v46 }
 0x89b   : > { %v1561_v48 = vmul.f32 1.442695, %v1559_v47 }
 0x89d   : > { %3904 = vpow2.f32 %v1561_v48 }
 0x8a3   : > { %v3905_v49 = vpop.eup %3904 }
 0x8a4   : > { %v1565_v2 = vsel %vm794_vm12, %v3905_v49, 0.0 }
 0x8a5   : > { %1566 = vadd.xlane.f32.xlu0 %v1565_v2 }
 0x8ae   : > { %v1558_v3 = vpop.xlane.xlu0 %1557 }
 0x8af   : > { %v1560_v50 = vsub.f32 %v1549_v43, %v1558_v3  ;;  %v3864_v3 = vld [vmem:[%s4802_s10] ss:$0 sm:$0xff] }
 0x8b1   : > { %v1563_v51 = vmul.f32 1.442695, %v1560_v50 }
 0x8b3   : > { %3906 = vpow2.f32 %v1563_v51 }
 0x8b9   : > { %v3907_v52 = vpop.eup %3906 }
 0x8ba   : > { %v1568_v53 = vsel %vm794_vm12, %v3907_v52, 0.0 }
 0x8bb   : > { %1569 = vadd.xlane.f32.xlu2 %v1568_v53  ;;  %v3865_v53 = vld [vmem:[%s4803_s11] ss:$0 sm:$0xff] }
 0x918   : > { %v1567_v54 = vpop.xlane.xlu0 %1566 }
 0x919   : > { %3908 = vrcp.f32 %v1567_v54 }
 0x91f   : > { %v3909_v55 = vpop.eup %3908 }
 0x920   : > { %v1573_v56 = vmul.f32 %v3909_v55, %v3905_v49 }
 0x922   : > { %v1575_v57 = vpack.c.bf16 %v1573_v56, %v1573_v56 }
 0x924   : > { %3442 = vmatmul.msk.bf16.vlgmr.msra.gmra.mxu1 %vm794_vm12, %v1575_v57 }
 0x92e   : > { %v1570_v13 = vpop.xlane.xlu2 %1569 }
 0x92f   : > { %3910 = vrcp.f32 %v1570_v13 }
 0x935   : > { %v3911_v58 = vpop.eup %3910 }
 0x936   : > { %v1574_v59 = vmul.f32 %v3911_v58, %v3907_v52 }
 0x938   : > { %v1576_v60 = vpack.c.bf16 %v1574_v59, %v1574_v59  ;;  %v3780_v59 = vld [vmem:[%s4805_s13 + $0x38] sm:$0xff] }
 0x939   : > { %1821 = vmatpush.bf16.msrb.mxu1 %v3780_v59 }
 0x93a   : > { %3443 = vmatmul.msk.bf16.vlgmr.msra.gmra.mxu2 %vm794_vm12, %v1576_v60  ;;  %v3779_v60 = vld [vmem:[%s4805_s13 + $0x30] sm:$0xff] }
 0x93d   : > { %1822 = vmatpush.bf16.msrb.mxu1 %v3779_v60  ;;  %v3787_v60 = vld [vmem:[%s4798_s6 + $0x50] sm:$0xff] }
 0x941   : > { %1823 = vmatpush.bf16.msrb.mxu1 %v3778_v61 }
 0x945   : > { %1824 = vmatpush.bf16.msrb.mxu1 %v3777_v62 }
 0x9a1   : > { %v1595_v20 = vpop.f32.mrf.mxu1 }
 0x9a9   : > { %v1597_v63 = vpop.f32.mrf.mxu1 }
 0x9aa   : > { %v3775_v63 = vld [vmem:[%s4805_s13 + $0x10] sm:$0xff] }
 0x9bd   : > { %v1617_v1 = vpop.f32.mrf.mxu2 }
 0x9be   : > { %v1621_v7 = vpack.c.bf16 %v1617_v1, %v1595_v20  ;;  %v3776_v20 = vld [vmem:[%s4805_s13 + $0x18] sm:$0xff]  ;;  %v3774_v1 = vld [vmem:[%s4805_s13 + $0x8] sm:$0xff] }
 0x9bf   : > { %1825 = vmatpush.bf16.msrb.mxu1 %v3776_v20  ;;  %v3861_v20 = vld [vmem:[%s4822_s2 + $0x1] ss:$0 sm:$0xff] }
 0x9c0   : > { %3445 = vmatmul.msk.bf16.vlgmr.msrb.gmra.mxu3 %vm750_vm11, %v1621_v7  ;;  %v3773_v7 = vld [vmem:[%s4805_s13] sm:$0xff] }
 0x9c3   : > { %1826 = vmatpush.bf16.msrb.mxu1 %v3775_v63 }
 0x9c5   : > { %v1619_v8 = vpop.f32.mrf.mxu2 }
 0x9c7   : > { %1827 = vmatpush.bf16.msrb.mxu1 %v3774_v1 }
 0x9cb   : > { %1828 = vmatpush.bf16.msrb.mxu1 %v3773_v7  ;;  %v3866_v7 = vld [vmem:[%s4796_s4 + $0x1] ss:$0 sm:$0xff] }
 0xa43   : > { %v1639_v9 = vpop.f32.mrf.mxu3 }
 0xa44   : > { %v1644_v10 = vadd.f32 %v1639_v9, %v1390_v38 }
 0xa46   : > { %v4413_v14 = vadd.f32 %v3968_v11, %v1644_v10 }
 0xa48   : > { %v1650_v0 = vsel %vm529_vm0, %v4413_v14, 0.0 }
 0xa49   : > { %1651 = vadd.xlane.f32.xlu1 %v1650_v0 }
 0xa4b   : > { %v1641_v18 = vpop.f32.mrf.mxu3 }
 0xa4c   : > { %v1645_v19 = vadd.f32 %v1641_v18, %v1391_v16 }
 0xa4e   : > { %v4419_v21 = vadd.f32 %v3968_v11, %v1645_v19 }
 0xa50   : > { %v1653_v22 = vsel %vm529_vm0, %v4419_v21, 0.0 }
 0xa51   : > { %1654 = vadd.xlane.f32.xlu2 %v1653_v22 }
 0xabc   : > { %v1652_v23 = vpop.xlane.xlu1 %1651 }
 0xabd   : > { %v1656_v24 = vmul.f32 %v1652_v23, %v4179_v12 }
 0xabf   : > { %v1658_v25 = vsub.f32 %v4413_v14, %v1656_v24 }
 0xac1   : > { %v1660_v26 = vmul.f32 %v1658_v25, %v1658_v25 }
 0xac3   : > { %v1662_v4 = vsel %vm529_vm0, %v1660_v26, 0.0 }
 0xac4   : > { %1663 = vadd.xlane.f32.xlu0 %v1662_v4  ;;  %v1655_v6 = vpop.xlane.xlu2 %1654 }
 0xac5   : > { %v1657_v27 = vmul.f32 %v1655_v6, %v4179_v12 }
 0xac7   : > { %v1659_v28 = vsub.f32 %v4419_v21, %v1657_v27 }
 0xac9   : > { %v1661_v29 = vmul.f32 %v1659_v28, %v1659_v28 }
 0xacb   : > { %v1665_v30 = vsel %vm529_vm0, %v1661_v29, 0.0 }
 0xacc   : > { %1666 = vadd.xlane.f32.xlu1 %v1665_v30 }
 0xb37   : > { %v1664_v32 = vpop.xlane.xlu0 %1663 }
 0xb38   : > { %v1668_v33 = vmul.f32 %v1664_v32, %v4179_v12 }
 0xb3a   : > { %v1670_v34 = vadd.f32 1e-05, %v1668_v33 }
 0xb3c   : > { %3912 = vrsqrt.f32 %v1670_v34  ;;  %vm1678_vm15 = vweird.f32 %v1670_v34 }
 0xb3f   : > { %v1667_v36 = vpop.xlane.xlu1 %1666 }
 0xb40   : > { %v1669_v37 = vmul.f32 %v1667_v36, %v4179_v12 }
 0xb42   : > { %v3913_v38 = vpop.eup %3912  ;;  %v1671_v39 = vadd.f32 1e-05, %v1669_v37 }
 0xb43   : > { %v1673_v40 = vmul.f32 %v3913_v38, %v1670_v34  ;;  %vm1679_vm14 = vweird.f32 %v3913_v38 }
 0xb44   : > { %3914 = vrsqrt.f32 %v1671_v39  ;;  %vm1680_vm1 = vmor %vm1678_vm15, %vm1679_vm14  ;;  %vm1688_vm3 = vweird.f32 %v1671_v39 }
 0xb45   : > { %v1674_v41 = vmul.f32 %v3913_v38, %v1673_v40 }
 0xb47   : > { %v1675_v42 = vmul.f32 0.5, %v1674_v41 }
 0xb49   : > { %v1676_v43 = vsub.f32 1.5, %v1675_v42 }
 0xb4a   : > { %v3915_v44 = vpop.eup %3914 }
 0xb4b   : > { %v1677_v45 = vmul.f32 %v3913_v38, %v1676_v43  ;;  %v1683_v46 = vmul.f32 %v3915_v44, %v1671_v39  ;;  %vm1689_vm2 = vweird.f32 %v3915_v44 }
 0xb4c   : > { %vm1690_vm4 = vmor %vm1688_vm3, %vm1689_vm2 }
 0xb4d   : > { %v1684_v47 = vmul.f32 %v3915_v44, %v1683_v46  ;;  %v1681_v48 = vsel %vm1680_vm1, %v3913_v38, %v1677_v45  ;;  %v3784_v46 = vld [vmem:[%s4799_s7 + $0x48] sm:$0xff] }
 0xb4e   : > { %v1692_v50 = vmul.f32 %v1681_v48, %v1658_v25  ;;  %1975 = vmatpush.bf16.msra.mxu3 %v3784_v46  ;;  %v3783_v48 = vld [vmem:[%s4799_s7 + $0x40] sm:$0xff] }
 0xb4f   : > { %v1685_v49 = vmul.f32 0.5, %v1684_v47  ;;  %v3786_v47 = vld [vmem:[%s4800_s8 + $0x48] sm:$0xff] }
 0xb50   : > { %v1697_v54 = vmul.f32 %v3864_v3, %v1692_v50  ;;  %2011 = vmatpush.bf16.msrb.mxu0 %v3786_v47 }
 0xb51   : > { %v1686_v2 = vsub.f32 1.5, %v1685_v49  ;;  %v3785_v49 = vld [vmem:[%s4800_s8 + $0x40] sm:$0xff] }
 0xb52   : > { %v1702_v57 = vadd.f32 %v3865_v53, %v1697_v54  ;;  %1976 = vmatpush.bf16.msra.mxu3 %v3783_v48 }
 0xb53   : > { %v1687_v51 = vmul.f32 %v3915_v44, %v1686_v2  ;;  %v3782_v2 = vld [vmem:[%s4798_s6 + $0x48] sm:$0xff] }
 0xb54   : > { %2012 = vmatpush.bf16.msrb.mxu0 %v3785_v49  ;;  %1938 = vmatpush.bf16.msrb.mxu2 %v3782_v2 }
 0xb55   : > { %v1691_v52 = vsel %vm1690_vm4, %v3915_v44, %v1687_v51 }
 0xb56   : > { %v1693_v55 = vmul.f32 %v1691_v52, %v1659_v28  ;;  %v3781_v52 = vld [vmem:[%s4798_s6 + $0x40] sm:$0xff] }
 0xb58   : > { %v1698_v56 = vmul.f32 %v3864_v3, %v1693_v55  ;;  %1939 = vmatpush.bf16.msrb.mxu2 %v3781_v52 }
 0xb5a   : > { %v1703_v13 = vadd.f32 %v3865_v53, %v1698_v56 }
 0xb5c   : > { %v1704_v58 = vpack.c.bf16 %v1703_v13, %v1702_v57 }
 0xb5e   : > { %3454 = vmatmul.msk.bf16.vlgmr.msra.gmra.mxu0 %vm529_vm0, %v1704_v58  ;;  %v3788_v58 = vld [vmem:[%s4798_s6 + $0x58] sm:$0xff] }
 0xb5f   : > { %2176 = vmatpush.bf16.msra.mxu0 %v3788_v58  ;;  %v3790_v58 = vld [vmem:[%s4799_s7 + $0x58] sm:$0xff] }
 0xb63   : > { %2177 = vmatpush.bf16.msra.mxu0 %v3787_v60  ;;  %v3789_v60 = vld [vmem:[%s4799_s7 + $0x50] sm:$0xff] }
 0xbdb   : > { %v1733_v8 = vpop.f32.mrf.mxu0 }
 0xbdc   : > { %v1740_v9 = vmul.f32 0.044715, %v1733_v8  ;;  %v1738_v6 = vmul.f32 0.5, %v1733_v8 }
 0xbde   : > { %v1742_v10 = vmul.f32 %v1740_v9, %v1733_v8 }
 0xbe0   : > { %v1744_v11 = vmul.f32 %v1742_v10, %v1733_v8  ;;  %v3862_v10 = vld [vmem:[%s4795_s3 + $0x1] ss:$0 sm:$0xff] }
 0xbe2   : > { %v1746_v15 = vadd.f32 %v1744_v11, %v1733_v8  ;;  %v1844_v11 = vmul.f32 %v3861_v20, %v4234_v5 }
 0xbe3   : > { %v1735_v0 = vpop.f32.mrf.mxu0 }
 0xbe4   : > { %v1741_v16 = vmul.f32 0.044715, %v1735_v0  ;;  %v1748_v18 = vmul.f32 0.7978846, %v1746_v15  ;;  %v1739_v27 = vmul.f32 0.5, %v1735_v0 }
 0xbe5   : > { %v3867_v15 = vld [vmem:[%s4797_s5 + $0x1] ss:$0 sm:$0xff] }
 0xbe6   : > { %v1743_v19 = vmul.f32 %v1741_v16, %v1735_v0  ;;  %3916 = vtanh.f32 %v1748_v18 }
 0xbe8   : > { %v1745_v22 = vmul.f32 %v1743_v19, %v1735_v0 }
 0xbea   : > { %v1747_v23 = vadd.f32 %v1745_v22, %v1735_v0  ;;  %v1849_v22 = vadd.f32 %v3862_v10, %v1844_v11 }
 0xbec   : > { %v1749_v24 = vmul.f32 0.7978846, %v1747_v23  ;;  %v3917_v25 = vpop.eup %3916 }
 0xbed   : > { %v1752_v26 = vadd.f32 1.0, %v3917_v25 }
 0xbee   : > { %3918 = vtanh.f32 %v1749_v24 }
 0xbef   : > { %v1754_v29 = vmul.f32 %v1752_v26, %v1738_v6 }
 0xbf4   : > { %v3919_v4 = vpop.eup %3918 }
 0xbf5   : > { %v1753_v28 = vadd.f32 1.0, %v3919_v4 }
 0xbf7   : > { %v1755_v30 = vmul.f32 %v1753_v28, %v1739_v27  ;;  %v1845_v28 = vmul.f32 %v3861_v20, %v4253_v17 }
 0xbf9   : > { %v1756_v31 = vpack.c.bf16 %v1755_v30, %v1754_v29  ;;  %v1850_v29 = vadd.f32 %v3862_v10, %v1845_v28 }
 0xbfb   : > { %1829 = vmatmul.bf16.vlgmr.msrb.gmra.mxu1 %v1756_v31 }
 0xc78   : > { %v1830_v32 = vpop.f32.mrf.mxu1 }
 0xc79   : > { %v4469_v33 = vadd.f32 %v1830_v32, %v4413_v14 }
 0xc7b   : > { %v1855_v34 = vsel %vm529_vm0, %v4469_v33, 0.0 }
 0xc7c   : > { %1856 = vadd.xlane.f32.xlu2 %v1855_v34 }
 0xc80   : > { %v1832_v35 = vpop.f32.mrf.mxu1 }
 0xc81   : > { %v4474_v36 = vadd.f32 %v1832_v35, %v4419_v21 }
 0xc83   : > { %v1858_v37 = vsel %vm529_vm0, %v4474_v36, 0.0 }
 0xc84   : > { %1859 = vadd.xlane.f32.xlu0 %v1858_v37 }
 0xcef   : > { %v1857_v38 = vpop.xlane.xlu2 %1856 }
 0xcf0   : > { %v1861_v39 = vmul.f32 %v1857_v38, %v4179_v12 }
 0xcf2   : > { %v1863_v40 = vsub.f32 %v4469_v33, %v1861_v39 }
 0xcf4   : > { %v1865_v41 = vmul.f32 %v1863_v40, %v1863_v40 }
 0xcf6   : > { %v1867_v14 = vsel %vm529_vm0, %v1865_v41, 0.0 }
 0xcf7   : > { %1868 = vadd.xlane.f32.xlu1 %v1867_v14  ;;  %v1860_v42 = vpop.xlane.xlu0 %1859 }
 0xcf8   : > { %v1862_v43 = vmul.f32 %v1860_v42, %v4179_v12 }
 0xcfa   : > { %v1864_v44 = vsub.f32 %v4474_v36, %v1862_v43 }
 0xcfc   : > { %v1866_v21 = vmul.f32 %v1864_v44, %v1864_v44 }
 0xcfe   : > { %v1870_v45 = vsel %vm529_vm0, %v1866_v21, 0.0 }
 0xcff   : > { %1871 = vadd.xlane.f32.xlu2 %v1870_v45 }
 0xd6a   : > { %v1869_v3 = vpop.xlane.xlu1 %1868 }
 0xd6b   : > { %v1873_v50 = vmul.f32 %v1869_v3, %v4179_v12 }
 0xd6d   : > { %v1875_v51 = vadd.f32 1e-05, %v1873_v50 }
 0xd6f   : > { %3920 = vrsqrt.f32 %v1875_v51  ;;  %vm1883_vm6 = vweird.f32 %v1875_v51 }
 0xd72   : > { %v1872_v53 = vpop.xlane.xlu2 %1871 }
 0xd73   : > { %v1874_v54 = vmul.f32 %v1872_v53, %v4179_v12 }
 0xd75   : > { %v3921_v55 = vpop.eup %3920  ;;  %v1876_v56 = vadd.f32 1e-05, %v1874_v54 }
 0xd76   : > { %v1878_v57 = vmul.f32 %v3921_v55, %v1875_v51  ;;  %vm1884_vm5 = vweird.f32 %v3921_v55 }
 0xd77   : > { %3922 = vrsqrt.f32 %v1876_v56  ;;  %vm1885_vm7 = vmor %vm1883_vm6, %vm1884_vm5  ;;  %vm1893_vm9 = vweird.f32 %v1876_v56 }
 0xd78   : > { %v1879_v13 = vmul.f32 %v3921_v55, %v1878_v57 }
 0xd7a   : > { %v1880_v59 = vmul.f32 0.5, %v1879_v13 }
 0xd7c   : > { %v1881_v61 = vsub.f32 1.5, %v1880_v59 }
 0xd7d   : > { %v3923_v62 = vpop.eup %3922 }
 0xd7e   : > { %v1882_v63 = vmul.f32 %v3921_v55, %v1881_v61  ;;  %v1888_v1 = vmul.f32 %v3923_v62, %v1876_v56  ;;  %vm1894_vm8 = vweird.f32 %v3923_v62 }
 0xd7f   : > { %vm1895_vm10 = vmor %vm1893_vm9, %vm1894_vm8 }
 0xd80   : > { %v1886_v8 = vsel %vm1885_vm7, %v3921_v55, %v1882_v63  ;;  %v1889_v9 = vmul.f32 %v3923_v62, %v1888_v1 }
 0xd81   : > { %v1897_v0 = vmul.f32 %v1886_v8, %v1863_v40 }
 0xd82   : > { %v1890_v16 = vmul.f32 0.5, %v1889_v9 }
 0xd83   : > { %v1902_v18 = vmul.f32 %v3866_v7, %v1897_v0 }
 0xd84   : > { %v1891_v19 = vsub.f32 1.5, %v1890_v16 }
 0xd85   : > { %v1907_v23 = vadd.f32 %v3867_v15, %v1902_v18 }
 0xd86   : > { %v1892_v24 = vmul.f32 %v3923_v62, %v1891_v19 }
 0xd87   : > { %v4523_v25 = vpack.c.bf16 %v1907_v23, %v1849_v22 }
 0xd88   : > { %v1896_v26 = vsel %vm1895_vm10, %v3923_v62, %v1892_v24 }
 0xd89   : > { %v1898_v4 = vmul.f32 %v1896_v26, %v1864_v44  ;;  %3516 = vmatmul.msk.bf16.vlgmr.msra.gmra.mxu3 %vm529_vm0, %v4523_v25  ;;  %3530 = vmatmul.msk.bf16.vlgmr.msrb.gmra.mxu0 %vm529_vm0, %v4523_v25 }
 0xd8b   : > { %v1903_v5 = vmul.f32 %v3866_v7, %v1898_v4 }
 0xd8d   : > { %v1908_v6 = vadd.f32 %v3867_v15, %v1903_v5 }
 0xd8f   : > { %v4529_v27 = vpack.c.bf16 %v1908_v6, %v1907_v23  ;;  %v4534_v30 = vpack.c.bf16 %v1908_v6, %v1850_v29 }
 0xd91   : > { %3503 = vmatmul.msk.bf16.vlgmr.msrb.gmra.mxu2 %vm529_vm0, %v4529_v27 }
 0xd99   : > { %3517 = vmatmul.msk.bf16.gmra.mxu3 %vm529_vm0, %v4534_v30  ;;  %3531 = vmatmul.msk.bf16.gmra.mxu0 %vm529_vm0, %v4534_v30 }
 0xda9   : > { %3549 = vmatmul.msk.bf16.vlgmr.msra.gmra.mxu0 %vm529_vm0, %v4529_v27 }
 0xe06   : > { %v2014_v31 = vpop.f32.mrf.mxu0 }
 0xe07   : > { %v2030_v38 = vpack.c.bf16 %v2014_v31, %v2014_v31 }
 0xe09   : > { %v2108_v43 = vunpack.c.l.b16 %v2030_v38 }
 0xe0c   : > { %v1978_v32 = vpop.f32.mrf.mxu3 }
 0xe0d   : > { %v2026_v35 = vpack.c.bf16 %v1978_v32, %v1978_v32 }
 0xe0e   : > { %v2016_v34 = vpop.f32.mrf.mxu0 }
 0xe0f   : > { %v2031_v17 = vpack.c.bf16 %v2016_v34, %v2016_v34  ;;  %v2036_v41 = vunpack.c.l.b16 %v2026_v35 }
 0xe11   : > { %v2109_v14 = vunpack.c.l.b16 %v2031_v17 }
 0xe13   : > { %v2110_v21 = vpack.c.b16 %v2109_v14, %v2108_v43 }
 0xe14   : > { %v1980_v37 = vpop.f32.mrf.mxu3  ;;  %v1941_v48 = vpop.f32.mrf.mxu2 }
 0xe15   : > { %v2027_v39 = vpack.c.bf16 %v1980_v37, %v1980_v37  ;;  %v2024_v3 = vpack.c.bf16 %v1941_v48, %v1941_v48 }
 0xe16   : > { %v2019_v40 = vpop.f32.mrf.mxu0 }
 0xe17   : > { %v2037_v42 = vunpack.c.l.b16 %v2027_v39  ;;  %v2032_v47 = vpack.c.bf16 %v2019_v40, %v2019_v40 }
 0xe19   : > { %v2038_v44 = vpack.c.b16 %v2037_v42, %v2036_v41  ;;  %v2130_v50 = vunpack.c.l.b16 %v2032_v47  ;;  %v3791_v47 = vld [vmem:[%s4800_s8 + $0x50] sm:$0xff] }
 0xe1b   : > { %v2043_v45 = vsel %vm750_vm11, %v2038_v44, 0 }
 0xe1c   : > { %v1983_v46 = vpop.f32.mrf.mxu3  ;;  %2052 = vmatpush.bf16.xpose.msra.mxu2 %v2043_v45  ;;  %v1943_v61 = vpop.f32.mrf.mxu2 }
 0xe1d   : > { %v2028_v52 = vpack.c.bf16 %v1983_v46, %v1983_v46  ;;  %v2025_v62 = vpack.c.bf16 %v1943_v61, %v1943_v61  ;;  %v3792_v46 = vld [vmem:[%s4800_s8 + $0x58] sm:$0xff] }
 0xe1e   : > { %v2021_v49 = vpop.f32.mrf.mxu0 }
 0xe1f   : > { %v2033_v2 = vpack.c.bf16 %v2021_v49, %v2021_v49  ;;  %v2060_v56 = vunpack.c.l.b16 %v2028_v52 }
 0xe21   : > { %v2131_v51 = vunpack.c.l.b16 %v2033_v2 }
 0xe23   : > { %v2132_v53 = vpack.c.b16 %v2131_v51, %v2130_v50  ;;  %3532 = vmatmul.msk.bf16.vlgmr.msra.gmra.mxu2 %vm750_vm11, %v2024_v3 }
 0xe24   : > { %2122 = vmatpush.bf16.msrb.mxu2 %v2110_v21  ;;  %v1985_v54 = vpop.f32.mrf.mxu3 }
 0xe25   : > { %v2029_v55 = vpack.c.bf16 %v1985_v54, %v1985_v54  ;;  %2144 = vmatpush.bf16.msrb.mxu3 %v2132_v53 }
 0xe26   : > { %v2179_v26 = vpop.f32.mrf.mxu0 }
 0xe27   : > { %v2061_v57 = vunpack.c.l.b16 %v2029_v55  ;;  %v2256_v54 = vpack.c.bf16 %v2179_v26, %v2179_v26 }
 0xe28   : > { %2243 = vmatpush.bf16.msra.mxu2 %v3792_v46 }
 0xe29   : > { %v2062_v13 = vpack.c.b16 %v2061_v57, %v2060_v56 }
 0xe2b   : > { %v2067_v59 = vsel %vm750_vm11, %v2062_v13, 0 }
 0xe2c   : > { %2076 = vmatpush.bf16.xpose.msra.mxu1 %v2067_v59  ;;  %2244 = vmatpush.bf16.msra.mxu2 %v3791_v47  ;;  %v3536_v59 = vld [vmem:[%s4801_s9 + $0x10] sm:$0xf] }
 0xe2e   : > { %v2181_v32 = vpop.f32.mrf.mxu0 }
 0xe2f   : > { %v2257_v34 = vpack.c.bf16 %v2181_v32, %v2181_v32 }
 0xe33   : > { %3533 = vmatmul.msk.bf16.vlgmr.msra.gmra.mxu1 %vm750_vm11, %v2025_v62 }
 0xe34   : > { %2207 = vmatpush.bf16.msrb.mxu1 %v3790_v58 }
 0xe38   : > { %2208 = vmatpush.bf16.msrb.mxu1 %v3789_v60  ;;  %v2409_v60 = vsel %vm1100_vm13, %v3536_v59, 0 }
 0xe43   : > { %3562 = vmatmul.msk.bf16.vlgmr.msrb.gmra.mxu1 %vm529_vm0, %v4523_v25 }
 0xe53   : > { %3563 = vmatmul.msk.bf16.gmra.mxu1 %vm529_vm0, %v4534_v30 }
 0xea6   : > { %v2054_v20 = vpop.f32.mrf.mxu2 }
 0xea7   : > { %v2082_v63 = vsel %vm794_vm12, %v2054_v20, -inf }
 0xea8   : > { %2083 = vmax.xlane.f32.xlu2 %v2082_v63 }
 0xeae   : > { %v2056_v1 = vpop.f32.mrf.mxu2 }
 0xeb0   : > { %v2078_v7 = vpop.f32.mrf.mxu1 }
 0xeb1   : > { %v2085_v8 = vsel %vm794_vm12, %v2078_v7, -inf }
 0xeb2   : > { %2086 = vmax.xlane.f32.xlu0 %v2085_v8 }
 0xeb8   : > { %v2080_v9 = vpop.f32.mrf.mxu1 }
 0xec0   : > { %v2210_v10 = vpop.f32.mrf.mxu1 }
 0xec1   : > { %v2258_v11 = vpack.c.bf16 %v2210_v10, %v2210_v10 }
 0xec3   : > { %v2268_v16 = vunpack.c.l.b16 %v2258_v11 }
 0xec8   : > { %v2212_v15 = vpop.f32.mrf.mxu1 }
 0xec9   : > { %v2259_v0 = vpack.c.bf16 %v2212_v15, %v2212_v15 }
 0xecb   : > { %v2269_v18 = vunpack.c.l.b16 %v2259_v0 }
 0xecd   : > { %v2270_v19 = vpack.c.b16 %v2269_v18, %v2268_v16 }
 0xecf   : > { %v2275_v22 = vsel %vm750_vm11, %v2270_v19, 0 }
 0xed0   : > { %v2215_v23 = vpop.f32.mrf.mxu1  ;;  %2284 = vmatpush.bf16.xpose.msra.mxu3 %v2275_v22 }
 0xed1   : > { %v2260_v24 = vpack.c.bf16 %v2215_v23, %v2215_v23 }
 0xed3   : > { %v2292_v6 = vunpack.c.l.b16 %v2260_v24 }
 0xed8   : > { %v2217_v4 = vpop.f32.mrf.mxu1 }
 0xed9   : > { %v2261_v5 = vpack.c.bf16 %v2217_v4, %v2217_v4 }
 0xedb   : > { %v2293_v28 = vunpack.c.l.b16 %v2261_v5 }
 0xedd   : > { %v2294_v29 = vpack.c.b16 %v2293_v28, %v2292_v6  ;;  %v3796_v6 = vld [vmem:[%s4799_s7 + $0x68] sm:$0xff] }
 0xedf   : > { %v2299_v31 = vsel %vm750_vm11, %v2294_v29, 0 }
 0xee0   : > { %2308 = vmatpush.bf16.xpose.msrb.mxu0 %v2299_v31  ;;  %v3795_v31 = vld [vmem:[%s4799_s7 + $0x60] sm:$0xff] }
 0xee7   : > { %3579 = vmatmul.msk.bf16.vlgmr.msrb.gmra.mxu0 %vm750_vm11, %v2257_v34 }
 0xf1b   : > { %v2084_v35 = vpop.xlane.xlu2 %2083 }
 0xf1c   : > { %v2088_v17 = vsub.f32 %v2054_v20, %v2084_v35 }
 0xf1e   : > { %v2090_v37 = vmul.f32 1.442695, %v2088_v17 }
 0xf20   : > { %3924 = vpow2.f32 %v2090_v37 }
 0xf25   : > { %v2087_v38 = vpop.xlane.xlu0 %2086 }
 0xf26   : > { %v3925_v39 = vpop.eup %3924  ;;  %v2089_v40 = vsub.f32 %v2078_v7, %v2087_v38 }
 0xf27   : > { %v2094_v41 = vsel %vm794_vm12, %v3925_v39, 0.0 }
 0xf28   : > { %v2092_v14 = vmul.f32 1.442695, %v2089_v40  ;;  %2095 = vadd.xlane.f32.xlu0 %v2094_v41 }
 0xf2a   : > { %3926 = vpow2.f32 %v2092_v14 }
 0xf30   : > { %v3927_v42 = vpop.eup %3926 }
 0xf31   : > { %v2097_v43 = vsel %vm794_vm12, %v3927_v42, 0.0 }
 0xf32   : > { %2098 = vadd.xlane.f32.xlu1 %v2097_v43 }
 0xf64   : > { %v2310_v44 = vpop.f32.mrf.mxu0 }
 0xf65   : > { %v2317_v21 = vsel %vm794_vm12, %v2310_v44, -inf }
 0xf66   : > { %2318 = vmax.xlane.f32.xlu1 %v2317_v21 }
 0xf6c   : > { %v2312_v45 = vpop.f32.mrf.mxu0 }
 0xf9b   : > { %v2096_v48 = vpop.xlane.xlu0 %2095 }
 0xf9c   : > { %3928 = vrcp.f32 %v2096_v48 }
 0xfa2   : > { %v3929_v49 = vpop.eup %3928 }
 0xfa3   : > { %v2102_v2 = vmul.f32 %v3929_v49, %v3925_v39  ;;  %v3794_v49 = vld [vmem:[%s4798_s6 + $0x68] sm:$0xff] }
 0xfa5   : > { %v2104_v3 = vpack.c.bf16 %v2102_v2, %v2102_v2  ;;  %v2099_v50 = vpop.xlane.xlu1 %2098  ;;  %v3793_v2 = vld [vmem:[%s4798_s6 + $0x60] sm:$0xff] }
 0xfa6   : > { %3930 = vrcp.f32 %v2099_v50 }
 0xfa7   : > { %3534 = vmatmul.msk.bf16.vlgmr.msrb.gmra.mxu2 %vm794_vm12, %v2104_v3 }
 0xfa8   : > { %2418 = vmatpush.bf16.msrb.mxu2 %v2409_v60  ;;  %v3582_v60 = vld [vmem:[%s4801_s9 + $0x14] sm:$0xf] }
 0xfac   : > { %v3931_v51 = vpop.eup %3930 }
 0xfad   : > { %v2103_v52 = vmul.f32 %v3931_v51, %v3927_v42 }
 0xfaf   : > { %v2105_v53 = vpack.c.bf16 %v2103_v52, %v2103_v52 }
 0xfb1   : > { %3535 = vmatmul.msk.bf16.vlgmr.msrb.gmra.mxu3 %vm794_vm12, %v2105_v53 }
 0xfb7   : > { %3576 = vmatmul.msk.bf16.vlgmr.msra.gmra.mxu2 %vm529_vm0, %v4523_v25 }
 0xfc1   : > { %3578 = vmatmul.msk.bf16.vlgmr.msra.gmra.mxu3 %vm750_vm11, %v2256_v54 }
 0xfc7   : > { %3577 = vmatmul.msk.bf16.gmra.mxu2 %vm529_vm0, %v4534_v30 }
 0xfd9   : > { %v2319_v55 = vpop.xlane.xlu1 %2318 }
 0xfda   : > { %v2321_v56 = vsub.f32 %v2310_v44, %v2319_v55 }
 0xfdc   : > { %v2324_v57 = vmul.f32 1.442695, %v2321_v56 }
 0xfde   : > { %3932 = vpow2.f32 %v2324_v57 }
 0xfe4   : > { %v3933_v13 = vpop.eup %3932 }
 0xfe5   : > { %v2329_v58 = vsel %vm794_vm12, %v3933_v13, 0.0 }
 0xfe6   : > { %2330 = vadd.xlane.f32.xlu0 %v2329_v58 }
0x102a   : > { %v2124_v61 = vpop.f32.mrf.mxu2 }
0x1032   : > { %v2126_v62 = vpop.f32.mrf.mxu2 }
0x1033   : > { %v3798_v62 = vld [vmem:[%s4800_s8 + $0x68] sm:$0xff] }
0x1034   : > { %v2146_v20 = vpop.f32.mrf.mxu3 }
0x1035   : > { %v2150_v63 = vpack.c.bf16 %v2146_v20, %v2124_v61  ;;  %v2389_v61 = vsel %vm1100_vm13, %v3582_v60, 0  ;;  %v3797_v20 = vld [vmem:[%s4800_s8 + $0x60] sm:$0xff] }
0x1036   : > { %2398 = vmatpush.bf16.msra.mxu1 %v2389_v61  ;;  %v3630_v61 = vld [vmem:[%s4801_s9 + $0x18] sm:$0xf] }
0x1037   : > { %3584 = vmatmul.msk.bf16.vlgmr.msrb.gmra.mxu2 %vm750_vm11, %v2150_v63 }
0x103a   : > { %v2246_v1 = vpop.f32.mrf.mxu2  ;;  %2515 = vmatpush.bf16.msrb.mxu1 %v3798_v62  ;;  %v2661_v62 = vsel %vm1100_vm13, %v3630_v61, 0 }
0x103b   : > { %v2262_v8 = vpack.c.bf16 %v2246_v1, %v2246_v1 }
0x103c   : > { %v2148_v7 = vpop.f32.mrf.mxu3 }
0x103d   : > { %v2340_v15 = vunpack.c.l.b16 %v2262_v8  ;;  %v3800_v7 = vld [vmem:[%s4798_s6 + $0x78] sm:$0xff]  ;;  %v3799_v8 = vld [vmem:[%s4798_s6 + $0x70] sm:$0xff] }
0x103e   : > { %2516 = vmatpush.bf16.msrb.mxu1 %v3797_v20 }
0x1042   : > { %v2248_v9 = vpop.f32.mrf.mxu2 }
0x1043   : > { %v2263_v10 = vpack.c.bf16 %v2248_v9, %v2248_v9 }
0x1044   : > { %v2286_v11 = vpop.f32.mrf.mxu3 }
0x1045   : > { %v2341_v0 = vunpack.c.l.b16 %v2263_v10  ;;  %v2314_v16 = vsel %vm794_vm12, %v2286_v11, -inf }
0x1046   : > { %2315 = vmax.xlane.f32.xlu2 %v2314_v16 }
0x1047   : > { %v2342_v18 = vpack.c.b16 %v2341_v0, %v2340_v15 }
0x1049   : > { %2354 = vmatpush.bf16.msrb.mxu3 %v2342_v18 }
0x104a   : > { %v2251_v19 = vpop.f32.mrf.mxu2 }
0x104b   : > { %v2264_v23 = vpack.c.bf16 %v2251_v19, %v2251_v19 }
0x104c   : > { %v2288_v22 = vpop.f32.mrf.mxu3 }
0x104d   : > { %v2362_v4 = vunpack.c.l.b16 %v2264_v23  ;;  %2448 = vmatpush.bf16.msra.mxu3 %v3794_v49 }
0x1051   : > { %2449 = vmatpush.bf16.msra.mxu3 %v3793_v2 }
0x1052   : > { %v2253_v24 = vpop.f32.mrf.mxu2 }
0x1053   : > { %v2265_v26 = vpack.c.bf16 %v2253_v24, %v2253_v24 }
0x1055   : > { %v2363_v5 = vunpack.c.l.b16 %v2265_v26 }
0x1057   : > { %v2364_v28 = vpack.c.b16 %v2363_v5, %v2362_v4 }
0x1059   : > { %2376 = vmatpush.bf16.msra.mxu0 %v2364_v28  ;;  %v2331_v29 = vpop.xlane.xlu0 %2330 }
0x105a   : > { %3934 = vrcp.f32 %v2331_v29 }
0x105d   : > { %2479 = vmatpush.bf16.msrb.mxu0 %v3796_v6 }
0x1060   : > { %v3935_v32 = vpop.eup %3934 }
0x1061   : > { %2480 = vmatpush.bf16.msrb.mxu0 %v3795_v31  ;;  %v2335_v34 = vmul.f32 %v3935_v32, %v3933_v13 }
0x1063   : > { %v2337_v35 = vpack.c.bf16 %v2335_v34, %v2335_v34 }
0x1065   : > { %3581 = vmatmul.msk.bf16.vlgmr.msra.gmra.mxu0 %vm794_vm12, %v2337_v35 }
0x1066   : > { %2670 = vmatpush.bf16.msra.mxu0 %v2661_v62  ;;  %v3677_v62 = vld [vmem:[%s4801_s9 + $0x1c] sm:$0xf] }
0x1075   : > { %3610 = vmatmul.msk.bf16.vlgmr.msrb.gmra.mxu0 %vm529_vm0, %v4523_v25 }
0x1085   : > { %3611 = vmatmul.msk.bf16.gmra.mxu0 %vm529_vm0, %v4534_v30 }
0x10b9   : > { %v2316_v17 = vpop.xlane.xlu2 %2315 }
0x10ba   : > { %v2320_v37 = vsub.f32 %v2286_v11, %v2316_v17  ;;  %v4632_v16 = vpop.f32.mrf.mxu2 }
0x10bc   : > { %v2322_v38 = vmul.f32 1.442695, %v2320_v37 }
0x10be   : > { %3936 = vpow2.f32 %v2322_v38 }
0x10c2   : > { %v2422_v19 = vpop.f32.mrf.mxu2 }
0x10c4   : > { %v3937_v39 = vpop.eup %3936 }
0x10c5   : > { %v2326_v40 = vsel %vm794_vm12, %v3937_v39, 0.0 }
0x10c6   : > { %2327 = vadd.xlane.f32.xlu1 %v2326_v40 }
0x10e2   : > { %v2378_v41 = vpop.f32.mrf.mxu0 }
0x10ea   : > { %v2380_v14 = vpop.f32.mrf.mxu0 }
0x10f2   : > { %v2482_v42 = vpop.f32.mrf.mxu0 }
0x10f3   : > { %v2530_v43 = vpack.c.bf16 %v2482_v42, %v2482_v42 }
0x10f5   : > { %v2540_v45 = vunpack.c.l.b16 %v2530_v43 }
0x10fa   : > { %v2484_v44 = vpop.f32.mrf.mxu0 }
0x10fb   : > { %v2531_v21 = vpack.c.bf16 %v2484_v44, %v2484_v44 }
0x10fd   : > { %v2541_v46 = vunpack.c.l.b16 %v2531_v21 }
0x10ff   : > { %v2542_v47 = vpack.c.b16 %v2541_v46, %v2540_v45 }
0x1101   : > { %v2547_v48 = vsel %vm750_vm11, %v2542_v47, 0 }
0x1102   : > { %2556 = vmatpush.bf16.xpose.msra.mxu2 %v2547_v48  ;;  %v2487_v3 = vpop.f32.mrf.mxu0 }
0x1103   : > { %v2532_v53 = vpack.c.bf16 %v2487_v3, %v2487_v3 }
0x1105   : > { %v2564_v55 = vunpack.c.l.b16 %v2532_v53  ;;  %v3803_v53 = vld [vmem:[%s4800_s8 + $0x70] sm:$0xff] }
0x110a   : > { %v2489_v50 = vpop.f32.mrf.mxu0 }
0x110b   : > { %v2533_v51 = vpack.c.bf16 %v2489_v50, %v2489_v50  ;;  %v3802_v50 = vld [vmem:[%s4799_s7 + $0x78] sm:$0xff] }
0x110d   : > { %v2565_v54 = vunpack.c.l.b16 %v2533_v51  ;;  %v3801_v51 = vld [vmem:[%s4799_s7 + $0x70] sm:$0xff] }
0x110f   : > { %v2566_v57 = vpack.c.b16 %v2565_v54, %v2564_v55 }
0x1111   : > { %v2571_v59 = vsel %vm750_vm11, %v2566_v57, 0 }
0x1139   : > { %v2328_v52 = vpop.xlane.xlu1 %2327 }
0x113a   : > { %3938 = vrcp.f32 %v2328_v52  ;;  %v3804_v52 = vld [vmem:[%s4800_s8 + $0x78] sm:$0xff] }
0x1140   : > { %v3939_v56 = vpop.eup %3938 }
0x1141   : > { %v2334_v13 = vmul.f32 %v3939_v56, %v3937_v39 }
0x1143   : > { %v2336_v58 = vpack.c.bf16 %v2334_v13, %v2334_v13 }
0x1145   : > { %3580 = vmatmul.msk.bf16.vlgmr.msrb.gmra.mxu3 %vm794_vm12, %v2336_v58 }
0x1146   : > { %2580 = vmatpush.bf16.xpose.msrb.mxu3 %v2571_v59 }
0x1155   : > { %3597 = vmatmul.msk.bf16.vlgmr.msra.gmra.mxu3 %vm529_vm0, %v4529_v27 }
0x11c8   : > { %v2356_v63 = vpop.f32.mrf.mxu3 }
0x11c9   : > { %v2382_v1 = vpack.c.bf16 %v2378_v41, %v2356_v63 }
0x11cb   : > { %3583 = vmatmul.msk.bf16.vlgmr.msra.gmra.mxu1 %vm750_vm11, %v2382_v1 }
0x11cc   : > { %2702 = vmatpush.bf16.msra.mxu1 %v3800_v7 }
0x11d0   : > { %v2358_v9 = vpop.f32.mrf.mxu3  ;;  %2703 = vmatpush.bf16.msra.mxu1 %v3799_v8 }
0x11d8   : > { %v2451_v10 = vpop.f32.mrf.mxu3 }
0x11d9   : > { %v2528_v11 = vpack.c.bf16 %v2451_v10, %v2451_v10 }
0x11db   : > { %3624 = vmatmul.msk.bf16.vlgmr.msrb.gmra.mxu1 %vm529_vm0, %v4523_v25  ;;  %3626 = vmatmul.msk.bf16.vlgmr.msra.gmra.mxu2 %vm750_vm11, %v2528_v11 }
0x11e0   : > { %v2453_v15 = vpop.f32.mrf.mxu3 }
0x11e1   : > { %v2529_v0 = vpack.c.bf16 %v2453_v15, %v2453_v15 }
0x11e3   : > { %3627 = vmatmul.msk.bf16.vlgmr.msrb.gmra.mxu3 %vm750_vm11, %v2529_v0 }
0x11eb   : > { %3625 = vmatmul.msk.bf16.gmra.mxu1 %vm529_vm0, %v4534_v30 }
0x11fb   : > { %3644 = vmatmul.msk.bf16.vlgmr.msra.gmra.mxu1 %vm529_vm0, %v4529_v27 }
0x1248   : > { %v4634_v18 = vpop.f32.mrf.mxu1 }
0x1250   : > { %v2402_v22 = vpop.f32.mrf.mxu1 }
0x1251   : > { %v4636_v23 = vadd.f32 %v2422_v19, %v2402_v22 }
0x1258   : > { %v2518_v24 = vpop.f32.mrf.mxu1 }
0x1259   : > { %v2534_v4 = vpack.c.bf16 %v2518_v24, %v2518_v24 }
0x125b   : > { %v2612_v29 = vunpack.c.l.b16 %v2534_v4 }
0x125e   : > { %v2558_v26 = vpop.f32.mrf.mxu2 }
0x125f   : > { %v2586_v5 = vsel %vm794_vm12, %v2558_v26, -inf }
0x1260   : > { %v2520_v6 = vpop.f32.mrf.mxu1  ;;  %2587 = vmax.xlane.f32.xlu2 %v2586_v5 }
0x1261   : > { %v2535_v28 = vpack.c.bf16 %v2520_v6, %v2520_v6 }
0x1263   : > { %v2613_v31 = vunpack.c.l.b16 %v2535_v28 }
0x1265   : > { %v2614_v32 = vpack.c.b16 %v2613_v31, %v2612_v29 }
0x1266   : > { %v2560_v27 = vpop.f32.mrf.mxu2  ;;  %v2582_v34 = vpop.f32.mrf.mxu3 }
0x1267   : > { %2626 = vmatpush.bf16.msrb.mxu2 %v2614_v32  ;;  %v2589_v35 = vsel %vm794_vm12, %v2582_v34, -inf }
0x1268   : > { %v2523_v17 = vpop.f32.mrf.mxu1  ;;  %2590 = vmax.xlane.f32.xlu0 %v2589_v35 }
0x1269   : > { %v2536_v38 = vpack.c.bf16 %v2523_v17, %v2523_v17 }
0x126b   : > { %v2634_v41 = vunpack.c.l.b16 %v2536_v38  ;;  %2733 = vmatpush.bf16.msra.mxu2 %v3802_v50 }
0x126e   : > { %v2584_v37 = vpop.f32.mrf.mxu3 }
0x126f   : > { %2734 = vmatpush.bf16.msra.mxu2 %v3801_v51 }
0x1270   : > { %v2525_v39 = vpop.f32.mrf.mxu1 }
0x1271   : > { %v2537_v40 = vpack.c.bf16 %v2525_v39, %v2525_v39 }
0x1273   : > { %v2635_v14 = vunpack.c.l.b16 %v2537_v40 }
0x1275   : > { %v2636_v42 = vpack.c.b16 %v2635_v14, %v2634_v41 }
0x1277   : > { %2648 = vmatpush.bf16.msra.mxu3 %v2636_v42 }
0x1278   : > { %v2705_v6 = vpop.f32.mrf.mxu1 }
0x1279   : > { %v2782_v31 = vpack.c.bf16 %v2705_v6, %v2705_v6 }
0x127b   : > { %2769 = vmatpush.bf16.msrb.mxu3 %v3804_v52 }
0x127f   : > { %2770 = vmatpush.bf16.msrb.mxu3 %v3803_v53 }
0x12d3   : > { %v2588_v43 = vpop.xlane.xlu2 %2587 }
0x12d4   : > { %v2592_v44 = vsub.f32 %v2558_v26, %v2588_v43  ;;  %v2707_v43 = vpop.f32.mrf.mxu1 }
0x12d6   : > { %v2594_v21 = vmul.f32 1.442695, %v2592_v44 }
0x12d8   : > { %3940 = vpow2.f32 %v2594_v21 }
0x12db   : > { %v2591_v45 = vpop.xlane.xlu0 %2590 }
0x12dc   : > { %v2593_v46 = vsub.f32 %v2582_v34, %v2591_v45  ;;  %v2783_v45 = vpack.c.bf16 %v2707_v43, %v2707_v43  ;;  %v3805_v43 = vld [vmem:[%s4804_s12 + $0x10] sm:$0xff] }
0x12de   : > { %v3941_v47 = vpop.eup %3940  ;;  %v2596_v48 = vmul.f32 1.442695, %v2593_v46 }
0x12df   : > { %v2598_v49 = vsel %vm794_vm12, %v3941_v47, 0.0 }
0x12e0   : > { %3942 = vpow2.f32 %v2596_v48  ;;  %2599 = vadd.xlane.f32.xlu1 %v2598_v49 }
0x12e6   : > { %v3943_v2 = vpop.eup %3942 }
0x12e7   : > { %v2601_v3 = vsel %vm794_vm12, %v3943_v2, 0.0 }
0x12e8   : > { %2602 = vadd.xlane.f32.xlu2 %v2601_v3 }
0x1353   : > { %v2600_v54 = vpop.xlane.xlu1 %2599 }
0x1354   : > { %3944 = vrcp.f32 %v2600_v54 }
0x135a   : > { %v3945_v55 = vpop.eup %3944 }
0x135b   : > { %v2606_v56 = vmul.f32 %v3945_v55, %v3941_v47  ;;  %v2603_v57 = vpop.xlane.xlu2 %2602  ;;  %v2421_v47 = vadd.f32 %v4632_v16, %v4634_v18 }
0x135c   : > { %3946 = vrcp.f32 %v2603_v57 }
0x135d   : > { %v2608_v13 = vpack.c.bf16 %v2606_v56, %v2606_v56 }
0x135f   : > { %3628 = vmatmul.msk.bf16.vlgmr.msrb.gmra.mxu2 %vm794_vm12, %v2608_v13 }
0x1362   : > { %v3947_v58 = vpop.eup %3946 }
0x1363   : > { %v2607_v59 = vmul.f32 %v3947_v58, %v3943_v2 }
0x1365   : > { %v2609_v60 = vpack.c.bf16 %v2607_v59, %v2607_v59 }
0x1367   : > { %3629 = vmatmul.msk.bf16.vlgmr.msra.gmra.mxu3 %vm794_vm12, %v2609_v60 }
0x136f   : > { %3657 = vmatmul.msk.bf16.vlgmr.msra.gmra.mxu2 %vm529_vm0, %v4523_v25 }
0x1377   : > { %3671 = vmatmul.msk.bf16.vlgmr.msrb.gmra.mxu3 %vm529_vm0, %v4523_v25 }
0x137f   : > { %3658 = vmatmul.msk.bf16.gmra.mxu2 %vm529_vm0, %v4534_v30 }
0x1387   : > { %3672 = vmatmul.msk.bf16.gmra.mxu3 %vm529_vm0, %v4534_v30 }
0x13e2   : > { %v2628_v20 = vpop.f32.mrf.mxu2 }
0x13ea   : > { %v2630_v63 = vpop.f32.mrf.mxu2  ;;  %v2650_v1 = vpop.f32.mrf.mxu3 }
0x13eb   : > { %v2654_v7 = vpack.c.bf16 %v2650_v1, %v2628_v20  ;;  %v2915_v20 = vsel %vm1100_vm13, %v3677_v62, 0 }
0x13ec   : > { %2924 = vmatpush.bf16.msrb.mxu2 %v2915_v20  ;;  %v3814_v20 = vld [vmem:[%s4805_s13 + $0x78] sm:$0xff] }
0x13ed   : > { %3631 = vmatmul.msk.bf16.vlgmr.msra.gmra.mxu0 %vm750_vm11, %v2654_v7 }
0x13f2   : > { %v2652_v25 = vpop.f32.mrf.mxu3  ;;  %v2736_v8 = vpop.f32.mrf.mxu2 }
0x13f3   : > { %v2784_v9 = vpack.c.bf16 %v2736_v8, %v2736_v8 }
0x13f5   : > { %v2794_v30 = vunpack.c.l.b16 %v2784_v9 }
0x13fa   : > { %v2738_v10 = vpop.f32.mrf.mxu2  ;;  %v2772_v11 = vpop.f32.mrf.mxu3 }
0x13fb   : > { %v2785_v15 = vpack.c.bf16 %v2738_v10, %v2738_v10  ;;  %v2788_v22 = vpack.c.bf16 %v2772_v11, %v2772_v11 }
0x13fd   : > { %v2795_v0 = vunpack.c.l.b16 %v2785_v15  ;;  %v2866_v28 = vunpack.c.l.b16 %v2788_v22 }
0x13ff   : > { %v2796_v19 = vpack.c.b16 %v2795_v0, %v2794_v30 }
0x1401   : > { %v2801_v24 = vsel %vm750_vm11, %v2796_v19, 0 }
0x1402   : > { %v2741_v26 = vpop.f32.mrf.mxu2  ;;  %v2774_v4 = vpop.f32.mrf.mxu3  ;;  %2810 = vmatpush.bf16.xpose.msrb.mxu0 %v2801_v24 }
0x1403   : > { %v2789_v5 = vpack.c.bf16 %v2774_v4, %v2774_v4  ;;  %v2786_v27 = vpack.c.bf16 %v2741_v26, %v2741_v26 }
0x1405   : > { %v2867_v29 = vunpack.c.l.b16 %v2789_v5  ;;  %v2818_v37 = vunpack.c.l.b16 %v2786_v27 }
0x1407   : > { %v2868_v32 = vpack.c.b16 %v2867_v29, %v2866_v28 }
0x1409   : > { %3673 = vmatmul.msk.bf16.vlgmr.msrb.gmra.mxu0 %vm750_vm11, %v2782_v31 }
0x140a   : > { %2880 = vmatpush.bf16.msra.mxu0 %v2868_v32  ;;  %v2743_v34 = vpop.f32.mrf.mxu2  ;;  %v2777_v35 = vpop.f32.mrf.mxu3 }
0x140b   : > { %v2787_v17 = vpack.c.bf16 %v2743_v34, %v2743_v34  ;;  %v2790_v40 = vpack.c.bf16 %v2777_v35, %v2777_v35 }
0x140d   : > { %v2819_v38 = vunpack.c.l.b16 %v2787_v17  ;;  %v2888_v44 = vunpack.c.l.b16 %v2790_v40  ;;  %v3806_v40 = vld [vmem:[%s4804_s12 + $0x18] sm:$0xff] }
0x140e   : > { %3020 = vmatpush.bf16.msra.mxu3 %v3806_v40  ;;  %3112 = vmatpush.bf16.msrb.mxu0 %v3814_v20 }
0x140f   : > { %v2820_v39 = vpack.c.b16 %v2819_v38, %v2818_v37 }
0x1411   : > { %v2825_v41 = vsel %vm750_vm11, %v2820_v39, 0 }
0x1412   : > { %v2779_v14 = vpop.f32.mrf.mxu3  ;;  %2834 = vmatpush.bf16.xpose.msrb.mxu1 %v2825_v41  ;;  %3021 = vmatpush.bf16.msra.mxu3 %v3805_v43 }
0x1413   : > { %v2791_v42 = vpack.c.bf16 %v2779_v14, %v2779_v14 }
0x1415   : > { %v2889_v21 = vunpack.c.l.b16 %v2791_v42 }
0x1417   : > { %v2890_v46 = vpack.c.b16 %v2889_v21, %v2888_v44 }
0x1419   : > { %3674 = vmatmul.msk.bf16.vlgmr.msrb.gmra.mxu1 %vm750_vm11, %v2783_v45 }
0x141a   : > { %2902 = vmatpush.bf16.msra.mxu1 %v2890_v46 }
0x146a   : > { %v2672_v48 = vpop.f32.mrf.mxu0 }
0x146b   : > { %v2677_v49 = vadd.f32 %v2672_v48, %v2421_v47 }
0x1472   : > { %v2674_v2 = vpop.f32.mrf.mxu0 }
0x1473   : > { %v2678_v3 = vadd.f32 %v2674_v2, %v4636_v23 }
0x1486   : > { %v2812_v50 = vpop.f32.mrf.mxu0 }
0x1487   : > { %v2840_v51 = vsel %vm794_vm12, %v2812_v50, -inf }
0x1488   : > { %2841 = vmax.xlane.f32.xlu0 %v2840_v51 }
0x148e   : > { %v2814_v52 = vpop.f32.mrf.mxu0 }
0x1496   : > { %v2836_v53 = vpop.f32.mrf.mxu1 }
0x1497   : > { %v2843_v54 = vsel %vm794_vm12, %v2836_v53, -inf }
0x1498   : > { %2844 = vmax.xlane.f32.xlu1 %v2843_v54 }
0x149e   : > { %v2838_v55 = vpop.f32.mrf.mxu1 }
0x14fb   : > { %v2842_v56 = vpop.xlane.xlu0 %2841 }
0x14fc   : > { %v2846_v57 = vsub.f32 %v2812_v50, %v2842_v56  ;;  %v3868_v56 = vld [vmem:[%s4802_s10 + $0x1] ss:$0 sm:$0xff] }
0x14fe   : > { %v2848_v13 = vmul.f32 1.442695, %v2846_v57 }
0x1500   : > { %3948 = vpow2.f32 %v2848_v13 }
0x1506   : > { %v3949_v16 = vpop.eup %3948 }
0x1507   : > { %v2852_v18 = vsel %vm794_vm12, %v3949_v16, 0.0 }
0x1508   : > { %2853 = vadd.xlane.f32.xlu2 %v2852_v18  ;;  %v3869_v18 = vld [vmem:[%s4803_s11 + $0x1] ss:$0 sm:$0xff] }
0x150b   : > { %v2845_v58 = vpop.xlane.xlu1 %2844 }
0x150c   : > { %v2847_v23 = vsub.f32 %v2836_v53, %v2845_v58 }
0x150e   : > { %v2850_v59 = vmul.f32 1.442695, %v2847_v23 }
0x1510   : > { %3950 = vpow2.f32 %v2850_v59 }
0x1516   : > { %v3951_v60 = vpop.eup %3950 }
0x1517   : > { %v2855_v61 = vsel %vm794_vm12, %v3951_v60, 0.0 }
0x1518   : > { %2856 = vadd.xlane.f32.xlu0 %v2855_v61 }
0x157b   : > { %v2854_v63 = vpop.xlane.xlu2 %2853 }
0x157c   : > { %3952 = vrcp.f32 %v2854_v63  ;;  %v3813_v63 = vld [vmem:[%s4805_s13 + $0x70] sm:$0xff] }
0x157d   : > { %3113 = vmatpush.bf16.msrb.mxu0 %v3813_v63 }
0x1582   : > { %v3953_v1 = vpop.eup %3952 }
0x1583   : > { %v2860_v7 = vmul.f32 %v3953_v1, %v3949_v16  ;;  %v3812_v1 = vld [vmem:[%s4805_s13 + $0x68] sm:$0xff] }
0x1584   : > { %3114 = vmatpush.bf16.msrb.mxu0 %v3812_v1 }
0x1585   : > { %v2862_v25 = vpack.c.bf16 %v2860_v7, %v2860_v7  ;;  %v3811_v7 = vld [vmem:[%s4805_s13 + $0x60] sm:$0xff] }
0x1587   : > { %3675 = vmatmul.msk.bf16.vlgmr.msra.gmra.mxu0 %vm794_vm12, %v2862_v25  ;;  %v3810_v25 = vld [vmem:[%s4805_s13 + $0x58] sm:$0xff] }
0x1588   : > { %3115 = vmatpush.bf16.msrb.mxu0 %v3811_v7 }
0x158b   : > { %v2857_v8 = vpop.xlane.xlu0 %2856 }
0x158c   : > { %3954 = vrcp.f32 %v2857_v8  ;;  %3116 = vmatpush.bf16.msrb.mxu0 %v3810_v25  ;;  %v3809_v8 = vld [vmem:[%s4805_s13 + $0x50] sm:$0xff] }
0x1590   : > { %3117 = vmatpush.bf16.msrb.mxu0 %v3809_v8 }
0x1592   : > { %v3955_v9 = vpop.eup %3954 }
0x1593   : > { %v2861_v10 = vmul.f32 %v3955_v9, %v3951_v60  ;;  %v3808_v9 = vld [vmem:[%s4805_s13 + $0x48] sm:$0xff] }
0x1594   : > { %3118 = vmatpush.bf16.msrb.mxu0 %v3808_v9 }
0x1595   : > { %v2863_v11 = vpack.c.bf16 %v2861_v10, %v2861_v10  ;;  %v3807_v10 = vld [vmem:[%s4805_s13 + $0x40] sm:$0xff] }
0x1597   : > { %3676 = vmatmul.msk.bf16.vlgmr.msra.gmra.mxu1 %vm794_vm12, %v2863_v11 }
0x1598   : > { %3119 = vmatpush.bf16.msrb.mxu0 %v3807_v10 }
0x1604   : > { %v2882_v15 = vpop.f32.mrf.mxu0 }
0x160c   : > { %v2884_v30 = vpop.f32.mrf.mxu0 }
0x1614   : > { %v2904_v0 = vpop.f32.mrf.mxu1 }
0x1615   : > { %v2908_v19 = vpack.c.bf16 %v2904_v0, %v2882_v15 }
0x1617   : > { %3678 = vmatmul.msk.bf16.vlgmr.msrb.gmra.mxu2 %vm750_vm11, %v2908_v19 }
0x161c   : > { %v2906_v22 = vpop.f32.mrf.mxu1 }
0x169a   : > { %v2926_v24 = vpop.f32.mrf.mxu2 }
0x169b   : > { %v2931_v26 = vadd.f32 %v2926_v24, %v2677_v49 }
0x169d   : > { %v4688_v4 = vadd.f32 %v2931_v26, %v4469_v33 }
0x169f   : > { %v2939_v5 = vsel %vm529_vm0, %v4688_v4, 0.0 }
0x16a0   : > { %2940 = vadd.xlane.f32.xlu1 %v2939_v5 }
0x16a2   : > { %v2928_v6 = vpop.f32.mrf.mxu2 }
0x16a3   : > { %v2932_v28 = vadd.f32 %v2928_v6, %v2678_v3 }
0x16a5   : > { %v4693_v29 = vadd.f32 %v2932_v28, %v4474_v36 }
0x16a7   : > { %v2942_v31 = vsel %vm529_vm0, %v4693_v29, 0.0 }
0x16a8   : > { %2943 = vadd.xlane.f32.xlu2 %v2942_v31 }
0x1713   : > { %v2941_v32 = vpop.xlane.xlu1 %2940 }
0x1714   : > { %v2945_v27 = vmul.f32 %v2941_v32, %v4179_v12 }
0x1716   : > { %v2947_v34 = vsub.f32 %v4688_v4, %v2945_v27 }
0x1718   : > { %v2949_v33 = vmul.f32 %v2947_v34, %v2947_v34 }
0x171a   : > { %v2951_v35 = vsel %vm529_vm0, %v2949_v33, 0.0 }
0x171b   : > { %2952 = vadd.xlane.f32.xlu0 %v2951_v35  ;;  %v2944_v17 = vpop.xlane.xlu2 %2943 }
0x171c   : > { %v2946_v37 = vmul.f32 %v2944_v17, %v4179_v12 }
0x171e   : > { %v2948_v38 = vsub.f32 %v4693_v29, %v2946_v37 }
0x1720   : > { %v2950_v36 = vmul.f32 %v2948_v38, %v2948_v38 }
0x1722   : > { %v2954_v39 = vsel %vm529_vm0, %v2950_v36, 0.0 }
0x1723   : > { %2955 = vadd.xlane.f32.xlu1 %v2954_v39 }
0x178e   : > { %v2953_v41 = vpop.xlane.xlu0 %2952 }
0x178f   : > { %v2957_v14 = vmul.f32 %v2953_v41, %v4179_v12 }
0x1791   : > { %v2959_v42 = vadd.f32 1e-05, %v2957_v14 }
0x1793   : > { %3956 = vrsqrt.f32 %v2959_v42  ;;  %vm2967_vm12 = vweird.f32 %v2959_v42 }
0x1796   : > { %v2956_v44 = vpop.xlane.xlu1 %2955 }
0x1797   : > { %v2958_v21 = vmul.f32 %v2956_v44, %v4179_v12 }
0x1799   : > { %v3957_v45 = vpop.eup %3956  ;;  %v2960_v46 = vadd.f32 1e-05, %v2958_v21 }
0x179a   : > { %v2962_v47 = vmul.f32 %v3957_v45, %v2959_v42  ;;  %vm2968_vm11 = vweird.f32 %v3957_v45 }
0x179b   : > { %3958 = vrsqrt.f32 %v2960_v46  ;;  %vm2969_vm13 = vmor %vm2967_vm12, %vm2968_vm11  ;;  %vm2977_vm15 = vweird.f32 %v2960_v46 }
0x179c   : > { %v2963_v48 = vmul.f32 %v3957_v45, %v2962_v47 }
0x179e   : > { %v2964_v49 = vmul.f32 0.5, %v2963_v48 }
0x17a0   : > { %v2965_v2 = vsub.f32 1.5, %v2964_v49 }
0x17a1   : > { %v3959_v3 = vpop.eup %3958 }
0x17a2   : > { %v2966_v50 = vmul.f32 %v3957_v45, %v2965_v2  ;;  %v2972_v51 = vmul.f32 %v3959_v3, %v2960_v46  ;;  %vm2978_vm14 = vweird.f32 %v3959_v3 }
0x17a3   : > { %vm2979_vm1 = vmor %vm2977_vm15, %vm2978_vm14 }
0x17a4   : > { %v2973_v52 = vmul.f32 %v3959_v3, %v2972_v51  ;;  %v2970_v53 = vsel %vm2969_vm13, %v3957_v45, %v2966_v50 }
0x17a5   : > { %v2981_v57 = vmul.f32 %v2970_v53, %v2947_v34 }
0x17a6   : > { %v2974_v54 = vmul.f32 0.5, %v2973_v52 }
0x17a7   : > { %v2986_v58 = vmul.f32 %v3868_v56, %v2981_v57 }
0x17a8   : > { %v2975_v55 = vsub.f32 1.5, %v2974_v54 }
0x17a9   : > { %v2991_v60 = vadd.f32 %v3869_v18, %v2986_v58 }
0x17aa   : > { %v2976_v13 = vmul.f32 %v3959_v3, %v2975_v55 }
0x17ac   : > { %v2980_v16 = vsel %vm2979_vm1, %v3959_v3, %v2976_v13 }
0x17ad   : > { %v2982_v23 = vmul.f32 %v2980_v16, %v2948_v38 }
0x17af   : > { %v2987_v59 = vmul.f32 %v3868_v56, %v2982_v23 }
0x17b1   : > { %v2992_v61 = vadd.f32 %v3869_v18, %v2987_v59  ;;  %v3870_v59 = vld [vmem:[%s4806_s14] ss:$0 sm:$0xff] }
0x17b3   : > { %v2993_v62 = vpack.c.bf16 %v2992_v61, %v2991_v60  ;;  %v3871_v61 = vld [vmem:[%s4807_s15] ss:$0 sm:$0xff] }
0x17b5   : > { %3693 = vmatmul.msk.bf16.vlgmr.msra.gmra.mxu3 %vm529_vm0, %v2993_v62 }
0x1838   : > { %v3023_v11 = vpop.f32.mrf.mxu3 }
0x1839   : > { %v3030_v15 = vmul.f32 0.044715, %v3023_v11  ;;  %v3028_v33 = vmul.f32 0.5, %v3023_v11 }
0x183b   : > { %v3032_v30 = vmul.f32 %v3030_v15, %v3023_v11 }
0x183d   : > { %v3034_v0 = vmul.f32 %v3032_v30, %v3023_v11 }
0x183f   : > { %v3036_v19 = vadd.f32 %v3034_v0, %v3023_v11 }
0x1840   : > { %v3025_v22 = vpop.f32.mrf.mxu3 }
0x1841   : > { %v3031_v24 = vmul.f32 0.044715, %v3025_v22  ;;  %v3038_v26 = vmul.f32 0.7978846, %v3036_v19  ;;  %v3029_v35 = vmul.f32 0.5, %v3025_v22 }
0x1843   : > { %v3033_v5 = vmul.f32 %v3031_v24, %v3025_v22  ;;  %3960 = vtanh.f32 %v3038_v26 }
0x1845   : > { %v3035_v6 = vmul.f32 %v3033_v5, %v3025_v22 }
0x1847   : > { %v3037_v28 = vadd.f32 %v3035_v6, %v3025_v22 }
0x1849   : > { %v3039_v31 = vmul.f32 0.7978846, %v3037_v28  ;;  %v3961_v32 = vpop.eup %3960 }
0x184a   : > { %v3042_v27 = vadd.f32 1.0, %v3961_v32 }
0x184b   : > { %3962 = vtanh.f32 %v3039_v31 }
0x184c   : > { %v3044_v37 = vmul.f32 %v3042_v27, %v3028_v33 }
0x1851   : > { %v3963_v34 = vpop.eup %3962 }
0x1852   : > { %v3043_v17 = vadd.f32 1.0, %v3963_v34 }
0x1854   : > { %v3045_v38 = vmul.f32 %v3043_v17, %v3029_v35 }
0x1856   : > { %v3046_v36 = vpack.c.bf16 %v3045_v38, %v3044_v37 }
0x1858   : > { %3120 = vmatmul.bf16.vlgmr.msrb.gmra.mxu0 %v3046_v36 }
0x18d5   : > { %v3121_v39 = vpop.f32.mrf.mxu0 }
0x18d6   : > { %v3126_v40 = vadd.f32 %v3121_v39, %v4688_v4 }
0x18d8   : > { %v3130_v41 = vsel %vm529_vm0, %v3126_v40, 0.0 }
0x18d9   : > { %3131 = vadd.xlane.f32.xlu2 %v3130_v41 }
0x18dd   : > { %v3123_v14 = vpop.f32.mrf.mxu0 }
0x18de   : > { %v3127_v42 = vadd.f32 %v3123_v14, %v4693_v29 }
0x18e0   : > { %v3133_v43 = vsel %vm529_vm0, %v3127_v42, 0.0 }
0x18e1   : > { %3134 = vadd.xlane.f32.xlu0 %v3133_v43 }
0x194c   : > { %v3132_v44 = vpop.xlane.xlu2 %3131 }
0x194d   : > { %v3136_v21 = vmul.f32 %v3132_v44, %v4179_v12 }
0x194f   : > { %v3138_v45 = vsub.f32 %v3126_v40, %v3136_v21 }
0x1951   : > { %v3140_v46 = vmul.f32 %v3138_v45, %v3138_v45 }
0x1953   : > { %v3142_v47 = vsel %vm529_vm0, %v3140_v46, 0.0 }
0x1954   : > { %3143 = vadd.xlane.f32.xlu1 %v3142_v47  ;;  %v3135_v48 = vpop.xlane.xlu0 %3134 }
0x1955   : > { %v3137_v4 = vmul.f32 %v3135_v48, %v4179_v12 }
0x1957   : > { %v3139_v49 = vsub.f32 %v3127_v42, %v3137_v4 }
0x1959   : > { %v3141_v2 = vmul.f32 %v3139_v49, %v3139_v49 }
0x195b   : > { %v3145_v3 = vsel %vm529_vm0, %v3141_v2, 0.0 }
0x195c   : > { %3146 = vadd.xlane.f32.xlu2 %v3145_v3 }
0x19c7   : > { %v3144_v29 = vpop.xlane.xlu1 %3143 }
0x19c8   : > { %v3148_v50 = vmul.f32 %v3144_v29, %v4179_v12 }
0x19ca   : > { %v3150_v51 = vadd.f32 1e-05, %v3148_v50 }
0x19cc   : > { %3964 = vrsqrt.f32 %v3150_v51  ;;  %vm3158_vm3 = vweird.f32 %v3150_v51 }
0x19cf   : > { %v3147_v52 = vpop.xlane.xlu2 %3146 }
0x19d0   : > { %v3149_v53 = vmul.f32 %v3147_v52, %v4179_v12 }
0x19d2   : > { %v3965_v54 = vpop.eup %3964  ;;  %v3151_v55 = vadd.f32 1e-05, %v3149_v53 }
0x19d3   : > { %v3153_v56 = vmul.f32 %v3965_v54, %v3150_v51  ;;  %vm3159_vm2 = vweird.f32 %v3965_v54 }
0x19d4   : > { %3966 = vrsqrt.f32 %v3151_v55  ;;  %vm3160_vm4 = vmor %vm3158_vm3, %vm3159_vm2  ;;  %vm3168_vm6 = vweird.f32 %v3151_v55 }
0x19d5   : > { %v3154_v57 = vmul.f32 %v3965_v54, %v3153_v56 }
0x19d7   : > { %v3155_v13 = vmul.f32 0.5, %v3154_v57 }
0x19d9   : > { %v3156_v16 = vsub.f32 1.5, %v3155_v13 }
0x19da   : > { %v3967_v18 = vpop.eup %3966 }
0x19db   : > { %v3157_v58 = vmul.f32 %v3965_v54, %v3156_v16  ;;  %v3163_v23 = vmul.f32 %v3967_v18, %v3151_v55  ;;  %vm3169_vm5 = vweird.f32 %v3967_v18 }
0x19dc   : > { %vm3170_vm7 = vmor %vm3168_vm6, %vm3169_vm5 }
0x19dd   : > { %v3161_v12 = vsel %vm3160_vm4, %v3965_v54, %v3157_v58  ;;  %v3164_v60 = vmul.f32 %v3967_v18, %v3163_v23 }
0x19de   : > { %v3172_v62 = vmul.f32 %v3161_v12, %v3138_v45 }
0x19df   : > { %v3165_v20 = vmul.f32 0.5, %v3164_v60 }
0x19e0   : > { %v3177_v63 = vmul.f32 %v3870_v59, %v3172_v62 }
0x19e1   : > { %v3166_v1 = vsub.f32 1.5, %v3165_v20 }
0x19e2   : > { %v3182_v7 = vadd.f32 %v3871_v61, %v3177_v63 }
0x19e3   : > { %v3167_v25 = vmul.f32 %v3967_v18, %v3166_v1 }
0x19e4   : > { %3184 = vst.msk [vmem:[%s515_s29] sm:$0xff] %vm529_vm0, %v3182_v7 }
0x19e5   : > { %v3171_v8 = vsel %vm3170_vm7, %v3967_v18, %v3167_v25 }
0x19e6   : > { %v3173_v9 = vmul.f32 %v3171_v8, %v3139_v49 }
0x19e8   : > { %v3178_v10 = vmul.f32 %v3870_v59, %v3173_v9 }
0x19ea   : > { %v3183_v11 = vadd.f32 %v3871_v61, %v3178_v10 }
0x19ec   : > { %3185 = vst.msk [vmem:[%s515_s29 + $0x8] sm:$0xff] %vm529_vm0, %v3183_v11 }
0x19ed   : > { %3996 = shalt.err (!%p3993_p3)
}
0x19ee   : > { %s4034_s28 = smov 128   ;;  %s4035_s29 = smov 8  }
0x19ef   : > { %3816 = dma.vmem_to_hbm [thread:$0]  (%p4159_p5), %s3200_s1, 256, %s3202_s27, %s3187_s25, %s4034_s28, %s4034_s28, %s4035_s29  }
0x19f0 PF: > { %p3822_p4 = scmp.ge.s32.totalorder %s4031_s24, 2  ;;  %s3216_s30 = sand.u32 1, %s4019_s21  }
0x19f1   : > { %s3217_s2 = scalar_lea.sflag [#allocation3], %s3216_s30 }
0x19f2   : > { %p3819_p7 = pnand %p3822_p4, %p4163_p6 }
0x19f4   : > { %p3820_p8 = pneg %p3819_p7 }
0x19f6   : > { %4014 = dma.done.wait (%p3820_p8), %s3217_s2, 256  }
0x19f7   : > { %4016 = vsyncadd (%p3820_p8), %s3217_s2, 4294967040  ;;  %s4823_s24 = sld [smem:[#allocation6_spill]]  ;;  %s4826_s21 = smov %s4023_s22 }
0x19f8   : > { %s4824_s23 = sld [smem:[#allocation5_spill]] }
0x19f9   : > { %s4825_s19 = sld [smem:[#allocation7_spill]] }
0x19fd   : > { %p26_p9 = scmp.ge.s32.totalorder %s4823_s24, 4  }
0x19fe   : > { %s4827_s22 = smov %s4824_s23 }
0x19ff   : > { %s4828_s23 = smov %s4825_s19  ;;  %28 = sbr.rel (!%p26_p9) target bundleno = 7 (0x7), region = 155 }
0x1a04   :  { %3223 = vsyncpa [#allocation3], 1 }
0x1a05   :  { %3225 = vsyncpa [#allocation3 + $0x1], 1 }

</bundles_post_ra>
